<compile_context>
chip_gen: v7x
topology: tpu7x:2x2x1
jax: 0.10.0
libtpu: 0.0.40
codegen_flags: <defaults>
</compile_context>

<pallas_src>
import functools
import math

import jax
import jax.numpy as jnp
from jax.experimental import pallas as pl
from jax.experimental.pallas import tpu as pltpu


def _memory_attention_kernel(
    x_ref, stm_ref, wq_ref, bq_ref, wkv_ref, bkv_ref, wo_ref, bo_ref,
    cos_ref, sin_ref, out_ref, *, num_q_heads, head_dim, approx_softmax):
    f32 = jnp.float32
    bf16 = jnp.bfloat16
    # TODO(synk): PyTorch nn.RMSNorm(eps=None) uses the *input* dtype's eps (~7.8e-3 for bf16);
    # we normalize in f32 so f32 eps is used (matches the f32 reference below).
    eps = jnp.finfo(f32).eps

    S, D = x_ref.shape
    M = stm_ref.shape[0]
    Hq, hd = num_q_heads, head_dim
    Dq = Hq * hd
    Dkv = hd                      # single KV head (att_groups = 1)
    half = hd // 2

    def rmsnorm(ref):
        # RMSNorm per-channel weight is folded into the projection weights on the host;
        # only the normalization runs here (f32), output cast to the bf16 MXU operand.
        v = ref[...].astype(f32)
        return (v * jax.lax.rsqrt(jnp.mean(v * v, axis=-1, keepdims=True) + eps)).astype(bf16)

    nx = rmsnorm(x_ref)           # (S, D)  encoded layer data (keys/values source)
    nstm = rmsnorm(stm_ref)       # (M, D)  memory slots (queries source)

    # --- query path (recomputed per batch element; only M*D*Dq MACs, negligible vs. S*D projs) ---
    scale = 1.0 / math.sqrt(hd)
    q = (jnp.dot(nstm, wq_ref[...], preferred_element_type=f32)
         + bq_ref[...].astype(f32)) * scale                          # (M, Dq), 1/sqrt(hd) folded in
    q_heads = q.reshape(M * Hq, hd).astype(bf16)                     # rows ordered (slot, head)

    # --- fused K/V projection: one (S, D) x (D, 2*Dkv) matmul, lane-sliced ---
    kv = (jnp.dot(nx, wkv_ref[...], preferred_element_type=f32)
          + bkv_ref[...].astype(f32))                                # (S, 2*Dkv) f32
    k = kv[:, :Dkv]
    v = kv[:, Dkv:].astype(bf16)

    # RoPE on keys only. rotate_half's sign pattern is folded into the host-side sin table,
    # so the rotation is a plain lane roll (XLU slot, effectively free).
    k_rot = pltpu.roll(k, shift=half, axis=1)
    k = (k * cos_ref[...].astype(f32) + k_rot * sin_ref[...].astype(f32)).astype(bf16)   # (S, hd)

    # --- attention: all query heads share the single KV head -> one (M*Hq, hd)x(hd, S) matmul ---
    s = jax.lax.dot_general(q_heads, k, (((1,), (1,)), ((), ())),
                            preferred_element_type=f32)              # (M*Hq, S) f32
    s = s - jnp.max(s, axis=-1, keepdims=True)
    p = jnp.exp(s)
    denom = jnp.sum(p, axis=-1, keepdims=True)
    if approx_softmax:
        # EUP approximate reciprocal (~2^-12 rel. error): deliberate deviation from exact softmax.
        p = p * pl.reciprocal(denom, approx=True)
    else:
        p = p / denom
    o = jnp.dot(p.astype(bf16), v, preferred_element_type=f32)       # (M*Hq, hd)

    attn = o.reshape(M, Dq).astype(bf16)
    y = jnp.dot(attn, wo_ref[...], preferred_element_type=f32) + bo_ref[...].astype(f32)  # (M, D)

    # ResidualGate(use_gate=False): plain residual add with the (un-normalized) layer STM.
    out_ref[...] = (stm_ref[...].astype(f32) + y).astype(out_ref.dtype)


def rxt_alpha_memory_attention(x, stm, params, *, num_q_heads, num_kv_heads, head_dim,
                               approx_softmax=True):
    L, B, S, D = x.shape
    M = stm.shape[2]
    assert num_kv_heads == 1, "fused-head kernel requires num_kv_heads == 1 (module default att_groups=1)"
    hd = head_dim
    Dq = num_q_heads * hd
    Dkv = num_kv_heads * hd
    f32 = jnp.float32

    # ---------- host-side (XLA) precompute: exact algebraic folds ----------
    # 1) RMSNorm per-channel weights folded into the projection weights.
    mem_w = jnp.swapaxes(params["mem_norm_w"].astype(f32), 1, 2)      # (L, D, 1)
    in_w = jnp.swapaxes(params["in_norm_w"].astype(f32), 1, 2)        # (L, D, 1)
    wq_f = (mem_w * params["wq"].astype(f32)).astype(x.dtype)
    # 2) K and V projections fused into a single (D, 2*Dkv) weight.
    wkv_f = (in_w * jnp.concatenate([params["wk"].astype(f32),
                                     params["wv"].astype(f32)], axis=-1)).astype(x.dtype)
    bkv = jnp.concatenate([params["bk"], params["bv"]], axis=-1)      # (L, 1, 2*Dkv)
    # 3) rotate_half sign folded into the sin table:  rotate_half(k) = sign * roll(k, hd/2).
    sign = jnp.concatenate([-jnp.ones((hd // 2,), f32), jnp.ones((hd // 2,), f32)])
    cos = params["cos"].astype(f32)
    sin_signed = params["sin"].astype(f32) * sign

    kernel = functools.partial(_memory_attention_kernel, num_q_heads=num_q_heads,
                               head_dim=hd, approx_softmax=approx_softmax)

    in_specs = [
        pl.BlockSpec((None, None, S, D), lambda l, b: (l, b, 0, 0)),   # x[l, b]
        pl.BlockSpec((None, None, M, D), lambda l, b: (l, 0, 0, 0)),   # stm[l] (batch-broadcast)
        pl.BlockSpec((None, D, Dq),      lambda l, b: (l, 0, 0)),      # Wq  (mem-norm folded)
        pl.BlockSpec((None, 1, Dq),      lambda l, b: (l, 0, 0)),      # bq
        pl.BlockSpec((None, D, 2 * Dkv), lambda l, b: (l, 0, 0)),      # Wkv (in-norm folded)
        pl.BlockSpec((None, 1, 2 * Dkv), lambda l, b: (l, 0, 0)),      # bkv
        pl.BlockSpec((None, Dq, D),      lambda l, b: (l, 0, 0)),      # Wo
        pl.BlockSpec((None, 1, D),       lambda l, b: (l, 0, 0)),      # bo
        pl.BlockSpec((S, Dkv),           lambda l, b: (0, 0)),         # RoPE cos
        pl.BlockSpec((S, Dkv),           lambda l, b: (0, 0)),         # RoPE sin (sign folded)
    ]
    out_spec = pl.BlockSpec((None, None, M, D), lambda l, b: (l, b, 0, 0))

    # Advisory cost estimate for XLA scheduling around the custom call.
    per_step_flops = 2 * (S * D * 2 * Dkv               # fused K/V projection
                          + M * D * Dq                   # Q projection
                          + 2 * (M * num_q_heads) * hd * S  # scores + PV
                          + M * Dq * D)                  # output projection
    flops = int(L * B * per_step_flops)
    transcendentals = int(L * B * M * num_q_heads * S)
    isz = jnp.dtype(x.dtype).itemsize
    bytes_accessed = int((x.size + stm.size + L * B * M * D) * isz
                         + (wq_f.size + bkv.size + wkv_f.size + params["wo"].size
                            + params["bq"].size + params["bo"].size) * isz
                         + 2 * S * Dkv * 4)

    # Per-step working set (one batch element + per-layer weights) is well under the default
    # scoped-VMEM budget on v5e/v6e/v7x, so no vmem_limit override is needed.
    return pl.pallas_call(
        kernel,
        out_shape=jax.ShapeDtypeStruct((L, B, M, D), stm.dtype),
        grid_spec=pltpu.PrefetchScalarGridSpec(
            num_scalar_prefetch=0,
            grid=(L, B),
            in_specs=in_specs,
            out_specs=out_spec,
        ),
        compiler_params=pltpu.CompilerParams(
            dimension_semantics=("parallel", "parallel")),
        cost_estimate=pl.CostEstimate(flops=flops, transcendentals=transcendentals,
                                      bytes_accessed=bytes_accessed),
    )(x, stm, wq_f, params["bq"], wkv_f, bkv, params["wo"], params["bo"], cos, sin_signed)


def reference(x, stm, params, num_q_heads, num_kv_heads, head_dim):
    """Plain-JAX f32 reference mirroring StmMemoryAttention's per-layer loop."""
    f32 = jnp.float32
    L, B, S, D = x.shape
    M = stm.shape[2]
    eps = jnp.finfo(f32).eps
    cos, sin = params["cos"].astype(f32), params["sin"].astype(f32)
    half = head_dim // 2
    rep = num_q_heads // num_kv_heads

    def rms(v, w):
        return v * jax.lax.rsqrt(jnp.mean(v * v, -1, keepdims=True) + eps) * w

    outs = []
    for l in range(L):
        xs = x[l].astype(f32)                                   # (B,S,D)
        ms = jnp.broadcast_to(stm[l].astype(f32), (B, M, D))    # (B,M,D)
        nx = rms(xs, params["in_norm_w"][l].astype(f32))
        nm = rms(ms, params["mem_norm_w"][l].astype(f32))
        q = nm @ params["wq"][l].astype(f32) + params["bq"][l].astype(f32)
        k = nx @ params["wk"][l].astype(f32) + params["bk"][l].astype(f32)
        v = nx @ params["wv"][l].astype(f32) + params["bv"][l].astype(f32)
        q = q.reshape(B, M, num_q_heads, head_dim).transpose(0, 2, 1, 3)
        k = k.reshape(B, S, num_kv_heads, head_dim).transpose(0, 2, 1, 3)
        v = v.reshape(B, S, num_kv_heads, head_dim).transpose(0, 2, 1, 3)
        k_rot = jnp.concatenate([-k[..., half:], k[..., :half]], -1)
        k = k * cos + k_rot * sin
        k = jnp.repeat(k, rep, axis=1)
        v = jnp.repeat(v, rep, axis=1)
        s = jnp.einsum("bhmd,bhsd->bhms", q, k) / math.sqrt(head_dim)
        p = jax.nn.softmax(s, axis=-1)
        o = jnp.einsum("bhms,bhsd->bhmd", p, v)
        o = o.transpose(0, 2, 1, 3).reshape(B, M, num_q_heads * head_dim)
        y = o @ params["wo"][l].astype(f32) + params["bo"][l].astype(f32)
        outs.append(ms + y)
    return jnp.stack(outs, axis=0)


if __name__ == "__main__":
    # Small-but-lane-aligned config consistent with the module: num_layers=2, batch=2,
    # seq_len=128, stm_size=16, embed_dim=512, att_heads=4, att_type='sqa'
    # (query heads = att_heads // 2 = 2), att_groups=1 (single KV head),
    # head_dim = embed_dim // att_heads = 128 (so head reshapes / lane roll are aligned).
    L, B, S, M, D, H = 2, 2, 128, 16, 512, 4
    hd = D // H
    Hq = H // 2        # SQA default number of query heads
    Hkv = 1            # att_groups = 1
    Dq, Dkv = Hq * hd, Hkv * hd

    key = jax.random.PRNGKey(0)
    ks = jax.random.split(key, 12)
    bf16 = jnp.bfloat16

    def lin(k, fan_in, shape):
        bound = 1.0 / math.sqrt(fan_in)
        return jax.random.uniform(k, shape, jnp.float32, -bound, bound)

    # Inputs / weights stored in bf16 (kernel matmul operand dtype); reference upcasts the same values.
    x = jax.random.normal(ks[0], (L, B, S, D), jnp.float32).astype(bf16)
    stm = (jax.random.normal(ks[1], (L, 1, M, D), jnp.float32) * 0.02).astype(bf16)

    # RoPE tables (rotate-half convention), head_dim freqs, base 10000, kept in f32.
    inv_freq = 1.0 / (10000.0 ** (jnp.arange(0, hd, 2, dtype=jnp.float32) / hd))
    t = jnp.arange(S, dtype=jnp.float32)
    freqs = jnp.outer(t, inv_freq)                     # (S, hd/2)
    emb = jnp.concatenate([freqs, freqs], axis=-1)     # (S, hd)

    params = {
        # nn.RMSNorm default init is ones; perturb slightly so the host-side norm-weight fold
        # is actually exercised by the test.
        "in_norm_w": (1.0 + 0.1 * jax.random.normal(ks[10], (L, 1, D), jnp.float32)).astype(bf16),
        "mem_norm_w": (1.0 + 0.1 * jax.random.normal(ks[11], (L, 1, D), jnp.float32)).astype(bf16),
        "wq": lin(ks[2], D, (L, D, Dq)).astype(bf16),
        "bq": lin(ks[3], D, (L, 1, Dq)).astype(bf16),
        "wk": lin(ks[4], D, (L, D, Dkv)).astype(bf16),
        "bk": lin(ks[5], D, (L, 1, Dkv)).astype(bf16),
        "wv": lin(ks[6], D, (L, D, Dkv)).astype(bf16),
        "bv": lin(ks[7], D, (L, 1, Dkv)).astype(bf16),
        "wo": lin(ks[8], Dq, (L, Dq, D)).astype(bf16),
        "bo": lin(ks[9], Dq, (L, 1, D)).astype(bf16),
        "cos": jnp.cos(emb),
        "sin": jnp.sin(emb),
    }

    out = rxt_alpha_memory_attention(
        x, stm, params, num_q_heads=Hq, num_kv_heads=Hkv, head_dim=hd)
    out = jax.block_until_ready(out)

    ref = reference(x, stm, params, Hq, Hkv, hd)
    assert out.shape == (L, B, M, D), out.shape
    err = float(jnp.max(jnp.abs(out.astype(jnp.float32) - ref)))
    # bf16 MXU operands + approx softmax reciprocal vs. pure-f32 reference.
    assert err < 4e-2, f"max abs err {err}"

    print("KERNEL_OK")
</pallas_src>

<mosaic_0001>
module attributes {stable_mosaic.version = 11 : i64} {
  func.func @_memory_attention_kernel(%arg0: i32, %arg1: i32, %arg2: memref<1x1x128x512xbf16, #tpu.memory_space<vmem>>, %arg3: memref<1x1x16x512xbf16, #tpu.memory_space<vmem>>, %arg4: memref<1x512x256xbf16, #tpu.memory_space<vmem>>, %arg5: memref<1x1x256xbf16, #tpu.memory_space<vmem>>, %arg6: memref<1x512x256xbf16, #tpu.memory_space<vmem>>, %arg7: memref<1x1x256xbf16, #tpu.memory_space<vmem>>, %arg8: memref<1x256x512xbf16, #tpu.memory_space<vmem>>, %arg9: memref<1x1x512xbf16, #tpu.memory_space<vmem>>, %arg10: memref<128x128xf32, #tpu.memory_space<vmem>>, %arg11: memref<128x128xf32, #tpu.memory_space<vmem>>, %arg12: memref<1x1x16x512xbf16, #tpu.memory_space<vmem>>) attributes {dimension_semantics = [#tpu.dimension_semantics<parallel>, #tpu.dimension_semantics<parallel>], iteration_bounds = array<i64: 2, 2>, scalar_prefetch = 0 : i64, scratch_operands = 0 : i64, tpu.core_type = #tpu.core_type<tc>, window_params = [{transform_indices = @transform_0, window_bounds = array<i64: 1, 1, 128, 512>}, {transform_indices = @transform_1, window_bounds = array<i64: 1, 1, 16, 512>}, {transform_indices = @transform_2, window_bounds = array<i64: 1, 512, 256>}, {transform_indices = @transform_3, window_bounds = array<i64: 1, 1, 256>}, {transform_indices = @transform_4, window_bounds = array<i64: 1, 512, 256>}, {transform_indices = @transform_5, window_bounds = array<i64: 1, 1, 256>}, {transform_indices = @transform_6, window_bounds = array<i64: 1, 256, 512>}, {transform_indices = @transform_7, window_bounds = array<i64: 1, 1, 512>}, {pipeline_mode = #tpu.pipeline_mode<synchronous>, transform_indices = @transform_8, window_bounds = array<i64: 128, 128>}, {pipeline_mode = #tpu.pipeline_mode<synchronous>, transform_indices = @transform_9, window_bounds = array<i64: 128, 128>}, {transform_indices = @transform_10, window_bounds = array<i64: 1, 1, 16, 512>}]} {
    %c0 = arith.constant 0 : index
    %c0_0 = arith.constant 0 : index
    %c0_1 = arith.constant 0 : index
    %c0_2 = arith.constant 0 : index
    %0 = vector.load %arg2[%c0, %c0_0, %c0_1, %c0_2] : memref<1x1x128x512xbf16, #tpu.memory_space<vmem>>, vector<1x1x128x512xbf16>
    %1 = vector.shape_cast %0 : vector<1x1x128x512xbf16> to vector<128x512xbf16>
    %2 = arith.extf %1 : vector<128x512xbf16> to vector<128x512xf32>
    %3 = arith.mulf %2, %2 : vector<128x512xf32>
    %cst = arith.constant dense<0.000000e+00> : vector<128xf32>
    %4 = vector.multi_reduction <add>, %3, %cst [1] : vector<128x512xf32> to vector<128xf32>
    %5 = vector.shape_cast %4 : vector<128xf32> to vector<128x1xf32>
    %cst_3 = arith.constant 5.120000e+02 : f32
    %6 = vector.broadcast %cst_3 : f32 to vector<128x1xf32>
    %7 = arith.divf %5, %6 : vector<128x1xf32>
    %cst_4 = arith.constant 1.1920929E-7 : f32
    %8 = vector.broadcast %cst_4 : f32 to vector<128x1xf32>
    %9 = arith.addf %7, %8 : vector<128x1xf32>
    %10 = math.rsqrt %9 : vector<128x1xf32>
    %11 = vector.broadcast %10 : vector<128x1xf32> to vector<128x512xf32>
    %12 = arith.mulf %2, %11 : vector<128x512xf32>
    %13 = arith.truncf %12 : vector<128x512xf32> to vector<128x512xbf16>
    %c0_5 = arith.constant 0 : index
    %c0_6 = arith.constant 0 : index
    %c0_7 = arith.constant 0 : index
    %c0_8 = arith.constant 0 : index
    %14 = vector.load %arg3[%c0_5, %c0_6, %c0_7, %c0_8] : memref<1x1x16x512xbf16, #tpu.memory_space<vmem>>, vector<1x1x16x512xbf16>
    %15 = vector.shape_cast %14 : vector<1x1x16x512xbf16> to vector<16x512xbf16>
    %16 = arith.extf %15 : vector<16x512xbf16> to vector<16x512xf32>
    %17 = arith.mulf %16, %16 : vector<16x512xf32>
    %cst_9 = arith.constant dense<0.000000e+00> : vector<16xf32>
    %18 = vector.multi_reduction <add>, %17, %cst_9 [1] : vector<16x512xf32> to vector<16xf32>
    %19 = vector.shape_cast %18 : vector<16xf32> to vector<16x1xf32>
    %cst_10 = arith.constant 5.120000e+02 : f32
    %20 = vector.broadcast %cst_10 : f32 to vector<16x1xf32>
    %21 = arith.divf %19, %20 : vector<16x1xf32>
    %cst_11 = arith.constant 1.1920929E-7 : f32
    %22 = vector.broadcast %cst_11 : f32 to vector<16x1xf32>
    %23 = arith.addf %21, %22 : vector<16x1xf32>
    %24 = math.rsqrt %23 : vector<16x1xf32>
    %25 = vector.broadcast %24 : vector<16x1xf32> to vector<16x512xf32>
    %26 = arith.mulf %16, %25 : vector<16x512xf32>
    %27 = arith.truncf %26 : vector<16x512xf32> to vector<16x512xbf16>
    %c0_12 = arith.constant 0 : index
    %c0_13 = arith.constant 0 : index
    %c0_14 = arith.constant 0 : index
    %28 = vector.load %arg4[%c0_12, %c0_13, %c0_14] : memref<1x512x256xbf16, #tpu.memory_space<vmem>>, vector<1x512x256xbf16>
    %29 = vector.shape_cast %28 : vector<1x512x256xbf16> to vector<512x256xbf16>
    %cst_15 = arith.constant dense<0.000000e+00> : vector<16x256xf32>
    %30 = tpu.matmul %27, %29, %cst_15 {dimension_numbers = #tpu.dot_dimension_numbers<[1], [0], [0], [1], [0, 0, 1, 1], [], []>} : vector<16x512xbf16>, vector<512x256xbf16>, vector<16x256xf32> -> vector<16x256xf32>
    %c0_16 = arith.constant 0 : index
    %c0_17 = arith.constant 0 : index
    %c0_18 = arith.constant 0 : index
    %31 = vector.load %arg5[%c0_16, %c0_17, %c0_18] : memref<1x1x256xbf16, #tpu.memory_space<vmem>>, vector<1x1x256xbf16>
    %32 = vector.shape_cast %31 : vector<1x1x256xbf16> to vector<1x256xbf16>
    %33 = arith.extf %32 : vector<1x256xbf16> to vector<1x256xf32>
    %34 = vector.broadcast %33 : vector<1x256xf32> to vector<16x256xf32>
    %35 = arith.addf %30, %34 : vector<16x256xf32>
    %cst_19 = arith.constant 0.0883883461 : f32
    %36 = vector.broadcast %cst_19 : f32 to vector<16x256xf32>
    %37 = arith.mulf %35, %36 : vector<16x256xf32>
    %38 = vector.shape_cast %37 : vector<16x256xf32> to vector<32x128xf32>
    %39 = arith.truncf %38 : vector<32x128xf32> to vector<32x128xbf16>
    %c0_20 = arith.constant 0 : index
    %c0_21 = arith.constant 0 : index
    %c0_22 = arith.constant 0 : index
    %40 = vector.load %arg6[%c0_20, %c0_21, %c0_22] : memref<1x512x256xbf16, #tpu.memory_space<vmem>>, vector<1x512x256xbf16>
    %41 = vector.shape_cast %40 : vector<1x512x256xbf16> to vector<512x256xbf16>
    %cst_23 = arith.constant dense<0.000000e+00> : vector<128x256xf32>
    %42 = tpu.matmul %13, %41, %cst_23 {dimension_numbers = #tpu.dot_dimension_numbers<[1], [0], [0], [1], [0, 0, 1, 1], [], []>} : vector<128x512xbf16>, vector<512x256xbf16>, vector<128x256xf32> -> vector<128x256xf32>
    %c0_24 = arith.constant 0 : index
    %c0_25 = arith.constant 0 : index
    %c0_26 = arith.constant 0 : index
    %43 = vector.load %arg7[%c0_24, %c0_25, %c0_26] : memref<1x1x256xbf16, #tpu.memory_space<vmem>>, vector<1x1x256xbf16>
    %44 = vector.shape_cast %43 : vector<1x1x256xbf16> to vector<1x256xbf16>
    %45 = arith.extf %44 : vector<1x256xbf16> to vector<1x256xf32>
    %46 = vector.broadcast %45 : vector<1x256xf32> to vector<128x256xf32>
    %47 = arith.addf %42, %46 : vector<128x256xf32>
    %48 = vector.extract_strided_slice %47 {offsets = [0, 0], sizes = [128, 128], strides = [1, 1]} : vector<128x256xf32> to vector<128x128xf32>
    %49 = vector.extract_strided_slice %47 {offsets = [0, 128], sizes = [128, 128], strides = [1, 1]} : vector<128x256xf32> to vector<128x128xf32>
    %50 = arith.truncf %49 : vector<128x128xf32> to vector<128x128xbf16>
    %c64_i32 = arith.constant 64 : i32
    %51 = tpu.dynamic_rotate %48 by %c64_i32 dim 1 : vector<128x128xf32>, i32 -> vector<128x128xf32>
    %c0_27 = arith.constant 0 : index
    %c0_28 = arith.constant 0 : index
    %52 = vector.load %arg10[%c0_27, %c0_28] : memref<128x128xf32, #tpu.memory_space<vmem>>, vector<128x128xf32>
    %53 = arith.mulf %48, %52 : vector<128x128xf32>
    %c0_29 = arith.constant 0 : index
    %c0_30 = arith.constant 0 : index
    %54 = vector.load %arg11[%c0_29, %c0_30] : memref<128x128xf32, #tpu.memory_space<vmem>>, vector<128x128xf32>
    %55 = arith.mulf %51, %54 : vector<128x128xf32>
    %56 = arith.addf %53, %55 : vector<128x128xf32>
    %57 = arith.truncf %56 : vector<128x128xf32> to vector<128x128xbf16>
    %cst_31 = arith.constant dense<0.000000e+00> : vector<32x128xf32>
    %58 = tpu.matmul %39, %57, %cst_31 {dimension_numbers = #tpu.dot_dimension_numbers<[1], [1], [0], [0], [0, 0, 1, 0], [], []>} : vector<32x128xbf16>, vector<128x128xbf16>, vector<32x128xf32> -> vector<32x128xf32>
    %cst_32 = arith.constant dense<0xFF800000> : vector<32xf32>
    %59 = vector.multi_reduction <maximumf>, %58, %cst_32 [1] : vector<32x128xf32> to vector<32xf32>
    %60 = vector.shape_cast %59 : vector<32xf32> to vector<32x1xf32>
    %61 = vector.broadcast %60 : vector<32x1xf32> to vector<32x128xf32>
    %62 = arith.subf %58, %61 : vector<32x128xf32>
    %63 = math.exp %62 : vector<32x128xf32>
    %cst_33 = arith.constant dense<0.000000e+00> : vector<32xf32>
    %64 = vector.multi_reduction <add>, %63, %cst_33 [1] : vector<32x128xf32> to vector<32xf32>
    %65 = vector.shape_cast %64 : vector<32xf32> to vector<32x1xf32>
    %66 = tpu.reciprocal %65 {approx = true} : vector<32x1xf32> -> vector<32x1xf32>
    %67 = vector.broadcast %66 : vector<32x1xf32> to vector<32x128xf32>
    %68 = arith.mulf %63, %67 : vector<32x128xf32>
    %69 = arith.truncf %68 : vector<32x128xf32> to vector<32x128xbf16>
    %cst_34 = arith.constant dense<0.000000e+00> : vector<32x128xf32>
    %70 = tpu.matmul %69, %50, %cst_34 {dimension_numbers = #tpu.dot_dimension_numbers<[1], [0], [0], [1], [0, 0, 1, 1], [], []>} : vector<32x128xbf16>, vector<128x128xbf16>, vector<32x128xf32> -> vector<32x128xf32>
    %71 = vector.shape_cast %70 : vector<32x128xf32> to vector<16x256xf32>
    %72 = arith.truncf %71 : vector<16x256xf32> to vector<16x256xbf16>
    %c0_35 = arith.constant 0 : index
    %c0_36 = arith.constant 0 : index
    %c0_37 = arith.constant 0 : index
    %73 = vector.load %arg8[%c0_35, %c0_36, %c0_37] : memref<1x256x512xbf16, #tpu.memory_space<vmem>>, vector<1x256x512xbf16>
    %74 = vector.shape_cast %73 : vector<1x256x512xbf16> to vector<256x512xbf16>
    %cst_38 = arith.constant dense<0.000000e+00> : vector<16x512xf32>
    %75 = tpu.matmul %72, %74, %cst_38 {dimension_numbers = #tpu.dot_dimension_numbers<[1], [0], [0], [1], [0, 0, 1, 1], [], []>} : vector<16x256xbf16>, vector<256x512xbf16>, vector<16x512xf32> -> vector<16x512xf32>
    %c0_39 = arith.constant 0 : index
    %c0_40 = arith.constant 0 : index
    %c0_41 = arith.constant 0 : index
    %76 = vector.load %arg9[%c0_39, %c0_40, %c0_41] : memref<1x1x512xbf16, #tpu.memory_space<vmem>>, vector<1x1x512xbf16>
    %77 = vector.shape_cast %76 : vector<1x1x512xbf16> to vector<1x512xbf16>
    %78 = arith.extf %77 : vector<1x512xbf16> to vector<1x512xf32>
    %79 = vector.broadcast %78 : vector<1x512xf32> to vector<16x512xf32>
    %80 = arith.addf %75, %79 : vector<16x512xf32>
    %c0_42 = arith.constant 0 : index
    %c0_43 = arith.constant 0 : index
    %c0_44 = arith.constant 0 : index
    %c0_45 = arith.constant 0 : index
    %81 = vector.load %arg3[%c0_42, %c0_43, %c0_44, %c0_45] : memref<1x1x16x512xbf16, #tpu.memory_space<vmem>>, vector<1x1x16x512xbf16>
    %82 = vector.shape_cast %81 : vector<1x1x16x512xbf16> to vector<16x512xbf16>
    %83 = arith.extf %82 : vector<16x512xbf16> to vector<16x512xf32>
    %84 = arith.addf %83, %80 : vector<16x512xf32>
    %85 = arith.truncf %84 : vector<16x512xf32> to vector<16x512xbf16>
    %c0_46 = arith.constant 0 : index
    %c0_47 = arith.constant 0 : index
    %c0_48 = arith.constant 0 : index
    %c0_49 = arith.constant 0 : index
    %86 = vector.load %arg12[%c0_46, %c0_47, %c0_48, %c0_49] : memref<1x1x16x512xbf16, #tpu.memory_space<vmem>>, vector<1x1x16x512xbf16>
    %87 = vector.shape_cast %86 : vector<1x1x16x512xbf16> to vector<16x512xbf16>
    %88 = vector.shape_cast %85 : vector<16x512xbf16> to vector<1x1x16x512xbf16>
    tpu.vector_store %arg12[%c0_46, %c0_47, %c0_48, %c0_49], %88 {strides = array<i32>} : memref<1x1x16x512xbf16, #tpu.memory_space<vmem>>, vector<1x1x16x512xbf16>,
    return
  }
  func.func @transform_0(%arg0: i32, %arg1: i32) -> (i32, i32, i32, i32) {
    %c0_i32 = arith.constant 0 : i32
    %c0_i32_0 = arith.constant 0 : i32
    %c0_i32_1 = arith.constant 0 : i32
    return %arg0, %arg1, %c0_i32, %c0_i32_0 : i32, i32, i32, i32
  }
  func.func @transform_1(%arg0: i32, %arg1: i32) -> (i32, i32, i32, i32) {
    %c0_i32 = arith.constant 0 : i32
    %c0_i32_0 = arith.constant 0 : i32
    %c0_i32_1 = arith.constant 0 : i32
    %c0_i32_2 = arith.constant 0 : i32
    return %arg0, %c0_i32, %c0_i32_0, %c0_i32_1 : i32, i32, i32, i32
  }
  func.func @transform_2(%arg0: i32, %arg1: i32) -> (i32, i32, i32) {
    %c0_i32 = arith.constant 0 : i32
    %c0_i32_0 = arith.constant 0 : i32
    %c0_i32_1 = arith.constant 0 : i32
    return %arg0, %c0_i32, %c0_i32_0 : i32, i32, i32
  }
  func.func @transform_3(%arg0: i32, %arg1: i32) -> (i32, i32, i32) {
    %c0_i32 = arith.constant 0 : i32
    %c0_i32_0 = arith.constant 0 : i32
    %c0_i32_1 = arith.constant 0 : i32
    return %arg0, %c0_i32, %c0_i32_0 : i32, i32, i32
  }
  func.func @transform_4(%arg0: i32, %arg1: i32) -> (i32, i32, i32) {
    %c0_i32 = arith.constant 0 : i32
    %c0_i32_0 = arith.constant 0 : i32
    %c0_i32_1 = arith.constant 0 : i32
    return %arg0, %c0_i32, %c0_i32_0 : i32, i32, i32
  }
  func.func @transform_5(%arg0: i32, %arg1: i32) -> (i32, i32, i32) {
    %c0_i32 = arith.constant 0 : i32
    %c0_i32_0 = arith.constant 0 : i32
    %c0_i32_1 = arith.constant 0 : i32
    return %arg0, %c0_i32, %c0_i32_0 : i32, i32, i32
  }
  func.func @transform_6(%arg0: i32, %arg1: i32) -> (i32, i32, i32) {
    %c0_i32 = arith.constant 0 : i32
    %c0_i32_0 = arith.constant 0 : i32
    %c0_i32_1 = arith.constant 0 : i32
    return %arg0, %c0_i32, %c0_i32_0 : i32, i32, i32
  }
  func.func @transform_7(%arg0: i32, %arg1: i32) -> (i32, i32, i32) {
    %c0_i32 = arith.constant 0 : i32
    %c0_i32_0 = arith.constant 0 : i32
    %c0_i32_1 = arith.constant 0 : i32
    return %arg0, %c0_i32, %c0_i32_0 : i32, i32, i32
  }
  func.func @transform_8(%arg0: i32, %arg1: i32) -> (i32, i32) {
    %c0_i32 = arith.constant 0 : i32
    %c0_i32_0 = arith.constant 0 : i32
    %c0_i32_1 = arith.constant 0 : i32
    return %c0_i32, %c0_i32_0 : i32, i32
  }
  func.func @transform_9(%arg0: i32, %arg1: i32) -> (i32, i32) {
    %c0_i32 = arith.constant 0 : i32
    %c0_i32_0 = arith.constant 0 : i32
    %c0_i32_1 = arith.constant 0 : i32
    return %c0_i32, %c0_i32_0 : i32, i32
  }
  func.func @transform_10(%arg0: i32, %arg1: i32) -> (i32, i32, i32, i32) {
    %c0_i32 = arith.constant 0 : i32
    %c0_i32_0 = arith.constant 0 : i32
    %c0_i32_1 = arith.constant 0 : i32
    return %arg0, %arg1, %c0_i32, %c0_i32_0 : i32, i32, i32, i32
  }
}

</mosaic_0001>

<bundles_post_ra>
// kernel: tpu_custom_call.1
= control target key start
LH: loop header
LB: loop body
LE: loop exit
PB: predicated region body
PF: predicated region fallthrough
CT: control target
= control target key end

     0   :  { %s6087_s0 = inlined_call_operand.hbm [shape: bf16[2,2,128,512], index: 0, kind: input, shape index: {}]   ;;  %s6088_s1 = inlined_call_operand.hbm [shape: bf16[2,1,16,512], index: 1, kind: input, shape index: {}]   ;;  %s6089_s2 = inlined_call_operand.hbm [shape: bf16[2,512,256], index: 2, kind: input, shape index: {}]   ;;  %s6090_s3 = inlined_call_operand.vmem [shape: bf16[2,1,256], index: 3, kind: input, shape index: {}]   ;;  %s6091_s4 = inlined_call_operand.hbm [shape: bf16[2,512,256], index: 4, kind: input, shape index: {}]   ;;  %s6092_s5 = inlined_call_operand.vmem [shape: bf16[2,1,256], index: 5, kind: input, shape index: {}]   ;;  %s6093_s6 = inlined_call_operand.hbm [shape: bf16[2,256,512], index: 6, kind: input, shape index: {}]   ;;  %s6094_s7 = inlined_call_operand.vmem [shape: bf16[2,1,512], index: 7, kind: input, shape index: {}]   ;;  %s6095_s8 = inlined_call_operand.hbm [shape: f32[128,128], index: 8, kind: input, shape index: {}]   ;;  %s6096_s9 = inlined_call_operand.hbm [shape: f32[128,128], index: 9, kind: input, shape index: {}]   ;;  %s6097_s10 = inlined_call_operand.hbm [shape: bf16[2,2,16,512], index: 10, kind: output, shape index: {}]  }
   0x1   :  { %6171 = sst [smem:[#allocation65_spill]] %s6088_s1 }
   0x2   :  { %6172 = sst [smem:[#allocation66_spill]] %s6090_s3 }
   0x3   :  { %6173 = sst [smem:[#allocation67_spill]] %s6091_s4 }
   0x4   :  { %6174 = sst [smem:[#allocation68_spill]] %s6092_s5 }
   0x5   :  { %6175 = sst [smem:[#allocation69_spill]] %s6093_s6 }
   0x6   :  { %6176 = sst [smem:[#allocation70_spill]] %s6094_s7 }
   0x7   :  { %6177 = sst [smem:[#allocation71_spill]] %s6095_s8 }
   0x8   :  { %6178 = sst [smem:[#allocation72_spill]] %s6096_s9 }
   0x9   :  { %6179 = sst [smem:[#allocation73_spill]] %s6097_s10 }
   0xa   :  { %15 = vsyncpa [#allocation3], 0 }
   0xb   :  { %17 = vsyncpa [#allocation3 + $0x1], 0 }
   0xc   :  { %18 = vsyncpa [#allocation6], 0 }
   0xd   :  { %20 = vsyncpa [#allocation6 + $0x1], 0 }
   0xe   :  { %21 = vsyncpa [#allocation9], 0 }
   0xf   :  { %23 = vsyncpa [#allocation9 + $0x1], 0 }
  0x10   :  { %24 = vsyncpa [#allocation12], 0 }
  0x11   :  { %25 = vsyncpa [#allocation4], 0 }
  0x12   :  { %27 = vsyncpa [#allocation4 + $0x1], 0  ;;  %s4612_s13 = smov 0   ;;  %s4614_s14 = smov 0  }
  0x13   :  { %s4616_s15 = smov 0   ;;  %s4618_s16 = smov 0  }
  0x14   :  { %s4620_s17 = smov 0   ;;  %s4622_s18 = smov 0  }
  0x15   :  { %s4624_s19 = smov 0   ;;  %s4626_s20 = smov 0  }
  0x16   :  { %s4628_s21 = smov 0   ;;  %s4630_s22 = smov 0  }
  0x17   :  { %s4632_s23 = smov 0  }
  0x18 LB: > { %6180 = sst [smem:[#allocation20_spill]] %s4502_s14  ;;  %s4666_s24 = sadd.s32 4294967295, %s4538_s23   ;;  %s4538_s23 = sphi %s4632_s23, %s33_s23   ;;  %s4534_s22 = sphi %s4630_s22, %s6338_s22   ;;  %s4530_s21 = sphi %s4628_s21, %s6337_s21   ;;  %s4526_s20 = sphi %s4626_s20, %s6336_s20   ;;  %s4522_s19 = sphi %s4624_s19, %s6329_s19   ;;  %s4518_s18 = sphi %s4622_s18, %s6335_s18   ;;  %s4514_s17 = sphi %s4620_s17, %s6334_s17   ;;  %s4510_s16 = sphi %s4618_s16, %s6327_s16   ;;  %s4506_s15 = sphi %s4616_s15, %s6333_s15   ;;  %s4502_s14 = sphi %s4614_s14, %s6332_s14   ;;  %s4498_s13 = sphi %s4612_s13, %s6326_s13  }
  0x19   : > { %6181 = sst [smem:[#allocation21_spill]] %s4510_s16  ;;  %s3331_s25 = sadd.s32 4294967294, %s4538_s23  }
  0x1a   : > { %6182 = sst [smem:[#allocation22_spill]] %s4514_s17  ;;  %p67_p0 = scmp.ne.s32.totalorder %s4514_s17, %s4510_s16 }
  0x1b   : > { %6183 = sst [smem:[#allocation23_spill]] %s4522_s19  ;;  %p6101_p1 = scmp.eq.s32.totalorder %s4666_s24, 0 }
  0x1c   : > { %6184 = sst [smem:[#allocation24_spill]] %s4526_s20  ;;  %p93_p2 = scmp.ne.s32.totalorder %s4502_s14, %s4498_s13 }
  0x1d   : > { %6185 = sst [smem:[#allocation25_spill]] %s4530_s21  ;;  %p4676_p4 = por %p6101_p1, %p67_p0 }
  0x1e   : > { %6186 = sst [smem:[#allocation26_spill]] %s4666_s24  ;;  %p323_p5 = scmp.eq.s32.totalorder %s3331_s25, 3 }
  0x1f   : > { %s6187_s26 = scalar_select %p4676_p4, 1, 0 }
  0x20   : > { %p4682_p6 = por %p93_p2, %p6101_p1  ;;  %p3332_p7 = scmp.ge.s32.totalorder %s4538_s23, 1 }
  0x21   : > { %6188 = sst [smem:[#allocation27_spill]] %s6187_s26  ;;  %p4687_p8 = por %p323_p5, %p67_p0 }
  0x22   : > { %s6189_s27 = scalar_select %p4682_p6, 1, 0 }
  0x23   : > { %s6191_s28 = scalar_select %p4687_p8, 1, 0 }
  0x24   : > { %6190 = sst [smem:[#allocation28_spill]] %s6189_s27  ;;  %p330_p9 = scmp.lt.s32.totalorder %s4538_s23, 5 }
  0x25   : > { %6192 = sst [smem:[#allocation29_spill]] %s6191_s28  ;;  %s4540_s30 = smov [#allocation11]  }
  0x26   : > { %p4692_p10 = pnand %p3332_p7, %p330_p9  ;;  %s342_s11 = sshll.u32 %s4540_s30, 4  ;;  %s343_s11 = int_to_ptr.vmem [resolvable:$true] %s342_s11 }
  0x27   : > { %s6196_s8 = sld [smem:[#allocation71_spill]] }
  0x28   : > { %s6193_s29 = scalar_select %p4692_p10, 1, 0 }
  0x29   : > { %p3726_p11 = pneg %p4692_p10 }
  0x2a   : > { %6194 = sst [smem:[#allocation30_spill]] %s6193_s29 }
  0x2b   : > { %p4700_p12 = pnand %p3726_p11, %p6101_p1 }
  0x2d   : > { %s6195_s12 = scalar_select %p4700_p12, 1, 0 }
  0x2e   : > { %s4198_s28 = scalar_lea.hbm %s6196_s8, 2048  ;;  %p6114_p2 = pneg %p4700_p12 }
  0x2f   : > { %p4199_p0 = scmp.ne.s32.totalorder %s6196_s8, %s4198_s28  ;;  %p4205_p9 = scmp.lt.u32.totalorder %s4198_s28, %s6196_s8 }
  0x31   : > { %p4201_p5 = pnand %p6114_p2, %p4199_p0 }
  0x33   : > { %p4202_p7 = pneg %p4201_p5 }
  0x35   : > { %p4207_p11 = pnand %p4205_p9, %p4202_p7 }
  0x37   : > { %4210 = shalt.err (!%p4207_p11)
}
  0x38   : > { %s4211_s19 = scalar_lea.vmem %s343_s11, 2048  ;;  %p4219_p8 = scmp.lt.s32.totalorder %s343_s11, %s343_s11 }
  0x39   : > { %p4212_p1 = scmp.ne.s32.totalorder %s343_s11, %s4211_s19  ;;  %p4220_p6 = scmp.lt.s32.totalorder %s4211_s19, %s4211_s19 }
  0x3b   : > { %p4214_p3 = pnand %p4212_p1, %p6114_p2  ;;  %p4221_p4 = por %p4220_p6, %p4219_p8 }
  0x3d   : > { %p4215_p13 = pneg %p4214_p3 }
  0x3f   : > { %p4222_p10 = pnand %p4221_p4, %p4215_p13 }
  0x41   : > { %4225 = shalt.err (!%p4222_p10)
}
  0x42   : > { %s6108_s10 = smov 128   ;;  %s6110_s7 = smov 8  }
  0x43   : > { %3729 = dma.hbm_to_vmem [thread:$0]  (!%p4700_p12), %s6196_s8, 2048, %s343_s11, [#allocation12], %s6108_s10, %s6108_s10, %s6110_s7  }
  0x44   : > { %p87_p1 = scmp.ne.s32.totalorder %s4506_s15, %s4502_s14  ;;  %p6113_p3 = scmp.lt.s32.totalorder %s4538_s23, 4 }
  0x45   : > { %p6197_p4 = scmp.eq.s32.totalorder %s4538_s23, 0  ;;  %s6112_s13 = sand.u32 1, %s4538_s23  }
  0x46   : > { %s394_s25 = sand.u32 1, %s4506_s15   ;;  %s3566_s3 = sshll.u32 %s4534_s22, 9 }
  0x47   : > { %p89_p6 = por %p87_p1, %p6197_p4  ;;  %s3340_s30 = sshll.u32 %s394_s25, 5 }
  0x48   : > { %s6198_s1 = sld [smem:[#allocation65_spill]]  ;;  %s396_s16 = scalar_lea.vmem [#allocation5], %s3340_s30 }
  0x49   : > { %s403_s11 = sshll.u32 %s396_s16, 4  ;;  %p4748_p8 = pnand %p6113_p3, %p89_p6  ;;  %s4744_s11 = int_to_ptr.vmem [resolvable:$true] %s403_s11 }
  0x4a   : > { %s4752_s28 = sshll.u32 %s394_s25, 9  ;;  %s4755_s10 = sshll.u32 %s4534_s22, 13 }
  0x4b   : > { %s6199_s19 = scalar_select %p4748_p8, 1, 0 }
  0x4c   : > { %p4765_p13 = pneg %p4748_p8 }
  0x4e   : > { %s4742_s27 = scalar_lea.hbm %s6198_s1, %s3566_s3  ;;  %s4759_s3 = scalar_lea.sflag [#allocation6], %s6112_s13 }
  0x4f   : > { %6200 = sst [smem:[#allocation31_spill]] %s4759_s3  ;;  %s4226_s5 = scalar_lea.hbm %s4742_s27, 512 }
  0x50   : > { %p4227_p10 = scmp.ne.s32.totalorder %s4742_s27, %s4226_s5  ;;  %s4231_s25 = scalar_lea.hbm %s6198_s1, 1024 }
  0x51   : > { %s6201_s20 = scalar_select %p4765_p13, 1, 0 }
  0x52   : > { %p4229_p0 = pnand %p4765_p13, %p4227_p10  ;;  %p4232_p7 = scmp.lt.u32.totalorder %s4742_s27, %s6198_s1 }
  0x53   : > { %p4233_p9 = scmp.lt.u32.totalorder %s4231_s25, %s4226_s5  ;;  %p4235_p1 = scmp.lt.u32.totalorder %s4226_s5, %s4742_s27 }
  0x54   : > { %p4230_p5 = pneg %p4229_p0 }
  0x55   : > { %p4234_p11 = por %p4233_p9, %p4232_p7 }
  0x57   : > { %p4236_p4 = por %p4235_p1, %p4234_p11 }
  0x59   : > { %p4237_p6 = pnand %p4236_p4, %p4230_p5 }
  0x5b   : > { %4240 = shalt.err (!%p4237_p6)
}
  0x5c   : > { %s4241_s13 = scalar_lea.vmem %s4744_s11, 512  ;;  %s4543_s30 = smov [#allocation5]  }
  0x5d   : > { %p4242_p10 = scmp.ne.s32.totalorder %s4744_s11, %s4241_s13  ;;  %s4246_s16 = sshll.u32 %s4543_s30, 4  ;;  %s4247_s16 = int_to_ptr.vmem [resolvable:$false] %s4246_s16 }
  0x5e   : > { %s4248_s8 = scalar_lea.vmem %s4247_s16, 1024  ;;  %p4249_p2 = scmp.lt.s32.totalorder %s4744_s11, %s4247_s16 }
  0x5f   : > { %p4244_p0 = pnand %p4242_p10, %p4765_p13  ;;  %p4250_p12 = scmp.lt.s32.totalorder %s4248_s8, %s4241_s13 }
  0x61   : > { %p4245_p3 = pneg %p4244_p0  ;;  %p4251_p7 = por %p4250_p12, %p4249_p2 }
  0x63   : > { %p4252_p9 = pnand %p4251_p7, %p4245_p3 }
  0x65   : > { %4255 = shalt.err (!%p4252_p9)
}
  0x66   : > { %s6121_s7 = smov 256   ;;  %s6123_s5 = smov 16  }
  0x67   : > { %3739 = dma.hbm_to_vmem [thread:$0]  (!%p4748_p8), %s4742_s27, 512, %s4744_s11, %s4759_s3, %s6121_s7, %s6121_s7, %s6123_s5  }
  0x68   : > { %s6202_s4 = sld [smem:[#allocation67_spill]]  ;;  %s445_s16 = scalar_lea.vmem [#allocation8], %s4752_s28 }
  0x69   : > { %s452_s8 = sshll.u32 %s445_s16, 4  ;;  %s4546_s1 = smov [#allocation13]   ;;  %s4799_s8 = int_to_ptr.vmem [resolvable:$true] %s452_s8 }
  0x6a   : > { %s4801_s14 = sshll.u32 %s4546_s1, 4  ;;  %s6203_s26 = sand.u32 1, %s4538_s23   ;;  %s356_s14 = int_to_ptr.vmem [resolvable:$true] %s4801_s14 }
  0x6b   : > { %s4805_s29 = scalar_lea.sflag [#allocation9], %s6203_s26 }
  0x6c   : > { %6204 = sst [smem:[#allocation32_spill]] %s4805_s29 }
  0x6e   : > { %s4796_s30 = scalar_lea.hbm %s6202_s4, %s4755_s10  ;;  %s4261_s13 = scalar_lea.hbm %s6202_s4, 16384 }
  0x6f   : > { %s4256_s27 = scalar_lea.hbm %s4796_s30, 8192  ;;  %p4262_p5 = scmp.lt.u32.totalorder %s4796_s30, %s6202_s4 }
  0x70   : > { %p4257_p12 = scmp.ne.s32.totalorder %s4796_s30, %s4256_s27  ;;  %p4263_p11 = scmp.lt.u32.totalorder %s4261_s13, %s4256_s27 }
  0x71   : > { %p4265_p4 = scmp.lt.u32.totalorder %s4256_s27, %s4796_s30 }
  0x72   : > { %p4259_p2 = pnand %p4257_p12, %p4765_p13  ;;  %p4264_p1 = por %p4263_p11, %p4262_p5 }
  0x74   : > { %p4260_p3 = pneg %p4259_p2  ;;  %p4266_p6 = por %p4265_p4, %p4264_p1 }
  0x76   : > { %p4267_p10 = pnand %p4266_p6, %p4260_p3 }
  0x78   : > { %4270 = shalt.err (!%p4267_p10)
}
  0x79   : > { %s4271_s1 = scalar_lea.vmem %s4799_s8, 8192  ;;  %s4547_s26 = smov [#allocation8]  }
  0x7a   : > { %p4272_p0 = scmp.ne.s32.totalorder %s4799_s8, %s4271_s1  ;;  %s4276_s16 = sshll.u32 %s4547_s26, 4  ;;  %s4277_s16 = int_to_ptr.vmem [resolvable:$false] %s4276_s16 }
  0x7b   : > { %s4278_s7 = scalar_lea.vmem %s4277_s16, 16384  ;;  %p4279_p12 = scmp.lt.s32.totalorder %s4799_s8, %s4277_s16 }
  0x7c   : > { %p4274_p7 = pnand %p4272_p0, %p4765_p13  ;;  %p4280_p2 = scmp.lt.s32.totalorder %s4278_s7, %s4271_s1 }
  0x7e   : > { %p4275_p9 = pneg %p4274_p7  ;;  %p4281_p5 = por %p4280_p2, %p4279_p12 }
  0x80   : > { %p4282_p11 = pnand %p4281_p5, %p4275_p9 }
  0x82   : > { %4285 = shalt.err (!%p4282_p11)
}
  0x83   : > { %s6205_s5 = smov 8   ;;  %s6206_s27 = smov 128  }
  0x84   : > { %3745 = dma.hbm_to_vmem [thread:$0]  (!%p4748_p8), %s4796_s30, 8192, %s4799_s8, %s4805_s29, %s6206_s27, %s6206_s27, %s6205_s5  }
  0x85   : > { %s6207_s9 = sld [smem:[#allocation72_spill]]  ;;  %p6208_p1 = scmp.ne.s32.totalorder %s6195_s12, 0 }
  0x87   : > { %p6209_p4 = pneg %p6208_p1 }
  0x8b   : > { %s4286_s13 = scalar_lea.hbm %s6207_s9, 2048 }
  0x8c   : > { %p4287_p3 = scmp.ne.s32.totalorder %s6207_s9, %s4286_s13  ;;  %p4293_p0 = scmp.lt.u32.totalorder %s4286_s13, %s6207_s9 }
  0x8e   : > { %p4289_p6 = pnand %p4287_p3, %p6209_p4 }
  0x90   : > { %p4290_p10 = pneg %p4289_p6 }
  0x92   : > { %p4295_p7 = pnand %p4293_p0, %p4290_p10 }
  0x94   : > { %4298 = shalt.err (!%p4295_p7)
}
  0x95   : > { %s4299_s30 = scalar_lea.vmem %s356_s14, 2048  ;;  %p6210_p12 = pmov %p6209_p4 }
  0x96   : > { %p4300_p9 = scmp.ne.s32.totalorder %s356_s14, %s4299_s30  ;;  %p4307_p11 = scmp.lt.s32.totalorder %s356_s14, %s356_s14 }
  0x97   : > { %p4308_p8 = scmp.lt.s32.totalorder %s4299_s30, %s4299_s30 }
  0x98   : > { %p4302_p2 = pnand %p4300_p9, %p6210_p12 }
  0x99   : > { %p4309_p13 = por %p4308_p8, %p4307_p11 }
  0x9a   : > { %p4303_p5 = pneg %p4302_p2 }
  0x9c   : > { %p4310_p3 = pnand %p4309_p13, %p4303_p5 }
  0x9e   : > { %4313 = shalt.err (!%p4310_p3)
}
  0x9f   : > { %3732 = dma.hbm_to_vmem [thread:$0]  (!%p6208_p1), %s6207_s9, 2048, %s356_s14, [#allocation12], %s6206_s27, %s6206_s27, %s6205_s5  }
  0xa0   : > { %s45_s12 = sadd.s32 1, %s4534_s22  ;;  %s42_s25 = sadd.s32 1, %s4530_s21 }
  0xa1   : > { %s54_s13 = sadd.s32 1, %s4518_s18  ;;  %p43_p8 = scmp.ge.s32.totalorder %s42_s25, 2 }
  0xa2   : > { %p61_p13 = scmp.ne.s32.totalorder %s4518_s18, %s4514_s17  ;;  %s369_s1 = sand.u32 1, %s4518_s18  }
  0xa3   : > { %s3337_s26 = sshll.u32 %s4530_s21, 6  ;;  %s6340_s25 = smov (%p43_p8, %s42_s25), 0 }
  0xa4   : > { %6211 = sst [smem:[#allocation33_spill]] %s6340_s25  ;;  %s6342_s12 = smov (!%p43_p8, %s45_s12), %s4534_s22 }
  0xa5   : > { %s50_s16 = ssub.s32 %s4530_s21, %s6340_s25  ;;  %p6212_p4 = scmp.eq.s32.totalorder %s4538_s23, 0 }
  0xa6   : > { %p47_p1 = scmp.ge.s32.totalorder %s6342_s12, 2  ;;  %p6214_p10 = scmp.eq.s32.totalorder %s4666_s24, 3 }
  0xa7   : > { %p4870_p6 = por %p6212_p4, %p61_p13  ;;  %s3336_s30 = sshll.u32 %s369_s1, 8 }
  0xa8   : > { %p4876_p0 = por %p6214_p10, %p61_p13  ;;  %s6344_s12 = smov (%p47_p1, %s6342_s12), 0 }
  0xa9   : > { %6217 = sst [smem:[#allocation35_spill]] %s6344_s12  ;;  %s3338_s8 = sshll.u32 %s4534_s22, 7 }
  0xaa   : > { %s6215_s7 = scalar_select %p4876_p0, 1, 0 }
  0xab   : > { %s49_s11 = ssub.s32 %s4534_s22, %s6344_s12  ;;  %s379_s4 = sadd.s32 %s3338_s8, %s3337_s26 }
  0xac   : > { %6216 = sst [smem:[#allocation34_spill]] %s6215_s7  ;;  %s51_s9 = sor.u32 %s50_s16, %s49_s11 }
  0xad   : > { %p78_p7 = scmp.eq.s32.totalorder %s49_s11, 0  ;;  %p52_p9 = scmp.eq.s32.totalorder %s51_s9, 0 }
  0xae   : > { %s3339_s25 = sshll.u32 %s379_s4, 6  ;;  %s6218_s21 = sadd.s32 1, %s4506_s15 }
  0xaf   : > { %s4888_s24 = scalar_select %p78_p7, %s4506_s15, %s6218_s21  }
  0xb0   : > { %s4891_s17 = scalar_select %p52_p9, %s4518_s18, %s54_s13  }
  0xb1   : > { %s4896_s6 = scalar_lea.hbm %s6087_s0, %s3339_s25  ;;  %s373_s3 = scalar_lea.vmem [#allocation2], %s3336_s30 }
  0xb2   : > { %s382_s12 = sshll.u32 %s373_s3, 4  ;;  %p6219_p12 = scmp.lt.s32.totalorder %s4538_s23, 4  ;;  %s4898_s12 = int_to_ptr.vmem [resolvable:$true] %s382_s12 }
  0xb3   : > { %s4912_s29 = scalar_lea.hbm %s6089_s2, %s4755_s10  ;;  %s417_s25 = scalar_lea.vmem [#allocation7], %s4752_s28 }
  0xb4   : > { %p4904_p2 = pnand %p6219_p12, %p4870_p6  ;;  %s4915_s13 = sshll.u32 %s417_s25, 4  ;;  %s4949_s13 = int_to_ptr.vmem [resolvable:$true] %s4915_s13 }
  0xb5   : > { %s4917_s3 = scalar_lea.sflag [#allocation3], %s369_s1  ;;  %s4314_s26 = scalar_lea.hbm %s4896_s6, 4096 }
  0xb6   : > { %p4315_p5 = scmp.ne.s32.totalorder %s4896_s6, %s4314_s26  ;;  %p4316_p11 = pneg %p4904_p2 }
  0xb7   : > { %s4319_s7 = scalar_lea.hbm %s6087_s0, 16384  ;;  %p4320_p13 = scmp.lt.u32.totalorder %s4896_s6, %s6087_s0 }
  0xb8   : > { %p4317_p3 = pnand %p4316_p11, %p4315_p5  ;;  %p4321_p4 = scmp.lt.u32.totalorder %s4319_s7, %s4314_s26 }
  0xb9   : > { %p4323_p1 = scmp.lt.u32.totalorder %s4314_s26, %s4896_s6 }
  0xba   : > { %p4318_p8 = pneg %p4317_p3  ;;  %p4322_p6 = por %p4321_p4, %p4320_p13 }
  0xbc   : > { %p4324_p10 = por %p4323_p1, %p4322_p6 }
  0xbe   : > { %p4325_p7 = pnand %p4324_p10, %p4318_p8 }
  0xc0   : > { %4328 = shalt.err (!%p4325_p7)
}
  0xc1   : > { %s4329_s1 = scalar_lea.vmem %s4898_s12, 4096  ;;  %s4548_s11 = smov [#allocation2]  }
  0xc2   : > { %p4330_p9 = scmp.ne.s32.totalorder %s4898_s12, %s4329_s1  ;;  %s4334_s9 = sshll.u32 %s4548_s11, 4  ;;  %s4335_s9 = int_to_ptr.vmem [resolvable:$false] %s4334_s9 }
  0xc3   : > { %s4336_s21 = scalar_lea.vmem %s4335_s9, 8192  ;;  %p4337_p3 = scmp.lt.s32.totalorder %s4898_s12, %s4335_s9 }
  0xc4   : > { %p4332_p12 = pnand %p4330_p9, %p4316_p11  ;;  %p4338_p13 = scmp.lt.s32.totalorder %s4336_s21, %s4329_s1 }
  0xc6   : > { %p4333_p5 = pneg %p4332_p12  ;;  %p4339_p4 = por %p4338_p13, %p4337_p3 }
  0xc8   : > { %p4340_p6 = pnand %p4339_p4, %p4333_p5 }
  0xca   : > { %4343 = shalt.err (!%p4340_p6)
}
  0xcb   : > { %s6221_s25 = smov 16   ;;  %s6222_s26 = smov 256  }
  0xcc   : > { %3736 = dma.hbm_to_vmem [thread:$0]  (!%p4904_p2), %s4896_s6, 4096, %s4898_s12, %s4917_s3, %s6222_s26, %s6222_s26, %s6221_s25  }
  0xcd   : > { %s4344_s16 = scalar_lea.hbm %s4912_s29, 8192  ;;  %p6223_p8 = scmp.ne.s32.totalorder %s6201_s20, 0 }
  0xce   : > { %p4345_p11 = scmp.ne.s32.totalorder %s4912_s29, %s4344_s16  ;;  %s4349_s7 = scalar_lea.hbm %s6089_s2, 16384 }
  0xcf   : > { %p4350_p7 = scmp.lt.u32.totalorder %s4912_s29, %s6089_s2  ;;  %p4351_p9 = scmp.lt.u32.totalorder %s4349_s7, %s4344_s16 }
  0xd0   : > { %p4347_p1 = pnand %p4345_p11, %p6223_p8  ;;  %p4353_p5 = scmp.lt.u32.totalorder %s4344_s16, %s4912_s29 }
  0xd1   : > { %p4352_p12 = por %p4351_p9, %p4350_p7 }
  0xd2   : > { %p4348_p10 = pneg %p4347_p1 }
  0xd3   : > { %p4354_p3 = por %p4353_p5, %p4352_p12 }
  0xd5   : > { %p4355_p2 = pnand %p4354_p3, %p4348_p10 }
  0xd7   : > { %4358 = shalt.err (!%p4355_p2)
}
  0xd8   : > { %s4359_s6 = scalar_lea.vmem %s4949_s13, 8192  ;;  %s4549_s12 = smov [#allocation7]  }
  0xd9   : > { %p4360_p13 = scmp.ne.s32.totalorder %s4949_s13, %s4359_s6  ;;  %s4364_s3 = sshll.u32 %s4549_s12, 4  ;;  %s4365_s3 = int_to_ptr.vmem [resolvable:$false] %s4364_s3 }
  0xda   : > { %s4366_s1 = scalar_lea.vmem %s4365_s3, 16384  ;;  %p4367_p11 = scmp.lt.s32.totalorder %s4949_s13, %s4365_s3 }
  0xdb   : > { %p4362_p4 = pnand %p4360_p13, %p6223_p8  ;;  %p4368_p1 = scmp.lt.s32.totalorder %s4366_s1, %s4359_s6 }
  0xdd   : > { %p4363_p6 = pneg %p4362_p4  ;;  %p4369_p7 = por %p4368_p1, %p4367_p11 }
  0xdf   : > { %p4370_p9 = pnand %p4369_p7, %p4363_p6 }
  0xe1   : > { %4373 = shalt.err (!%p4370_p9)
}
  0xe2   : > { %p6224_p10 = scmp.ne.s32.totalorder %s6199_s19, 0  ;;  %s6225_s11 = sld [smem:[#allocation31_spill]] }
  0xe3   : > { %s6226_s16 = sld [smem:[#allocation69_spill]]  ;;  %s473_s7 = scalar_lea.vmem [#allocation10], %s4752_s28 }
  0xe4   : > { %s480_s30 = sshll.u32 %s473_s7, 4  ;;  %s4983_s30 = int_to_ptr.vmem [resolvable:$true] %s480_s30 }
  0xe8   : > { %3742 = dma.hbm_to_vmem [thread:$0]  (!%p6224_p10), %s4912_s29, 8192, %s4949_s13, %s6225_s11, %s6206_s27, %s6206_s27, %s6205_s5  }
  0xe9   : > { %s6227_s4 = smov %s6226_s16  ;;  %s4980_s14 = scalar_lea.hbm %s6226_s16, %s4755_s10 }
  0xea   : > { %s4374_s8 = scalar_lea.hbm %s4980_s14, 8192  ;;  %s4379_s27 = scalar_lea.hbm %s6227_s4, 16384 }
  0xeb   : > { %p4375_p12 = scmp.ne.s32.totalorder %s4980_s14, %s4374_s8  ;;  %p4380_p2 = scmp.lt.u32.totalorder %s4980_s14, %s6227_s4 }
  0xec   : > { %p4381_p13 = scmp.lt.u32.totalorder %s4379_s27, %s4374_s8  ;;  %p4383_p6 = scmp.lt.u32.totalorder %s4374_s8, %s4980_s14 }
  0xed   : > { %p4377_p5 = pnand %p4375_p12, %p6223_p8 }
  0xee   : > { %p4382_p4 = por %p4381_p13, %p4380_p2 }
  0xef   : > { %p4378_p3 = pneg %p4377_p5 }
  0xf0   : > { %p4384_p11 = por %p4383_p6, %p4382_p4 }
  0xf2   : > { %p4385_p1 = pnand %p4384_p11, %p4378_p3 }
  0xf4   : > { %4388 = shalt.err (!%p4385_p1)
}
  0xf5   : > { %s4389_s28 = scalar_lea.vmem %s4983_s30, 8192  ;;  %s4550_s13 = smov [#allocation10]  }
  0xf6   : > { %p4390_p7 = scmp.ne.s32.totalorder %s4983_s30, %s4389_s28  ;;  %s4394_s12 = sshll.u32 %s4550_s13, 4  ;;  %s4395_s12 = int_to_ptr.vmem [resolvable:$false] %s4394_s12 }
  0xf7   : > { %s4396_s3 = scalar_lea.vmem %s4395_s12, 16384  ;;  %p4397_p5 = scmp.lt.s32.totalorder %s4983_s30, %s4395_s12 }
  0xf8   : > { %p4392_p9 = pnand %p4390_p7, %p6223_p8  ;;  %p4398_p0 = scmp.lt.s32.totalorder %s4396_s3, %s4389_s28 }
  0xfa   : > { %p4393_p12 = pneg %p4392_p9  ;;  %p4399_p2 = por %p4398_p0, %p4397_p5 }
  0xfc   : > { %p4400_p13 = pnand %p4399_p2, %p4393_p12 }
  0xfe   : > { %4403 = shalt.err (!%p4400_p13)
}
  0xff   : > { %s6228_s1 = sld [smem:[#allocation32_spill]]  ;;  %s6229_s20 = sld [smem:[#allocation30_spill]] }
 0x105   : > { %3748 = dma.hbm_to_vmem [thread:$0]  (!%p6224_p10), %s4980_s14, 8192, %s4983_s30, %s6228_s1, %s6222_s26, %s6222_s26, %s6221_s25  }
 0x106   : > { %p6230_p8 = scmp.ne.s32.totalorder %s6229_s20, 0 }
 0x108   : > { %499 = sbr.rel (%p6230_p8) target bundleno = 1936 (0x790), region = 60 }
 0x10f   : > { %s6231_s11 = sld [smem:[#allocation22_spill]] }
 0x110   : > { %s6232_s9 = sld [smem:[#allocation27_spill]] }
 0x115   : > { %s5013_s21 = sand.u32 1, %s6231_s11  }
 0x116   : > { %s3353_s16 = sshll.u32 %s5013_s21, 8  ;;  %s502_s7 = scalar_lea.sflag [#allocation3], %s5013_s21 }
 0x117   : > { %s5017_s8 = scalar_lea.vmem [#allocation2], %s3353_s16  ;;  %p6233_p0 = scmp.ne.s32.totalorder %s6232_s9, 0 }
 0x119   : > { %4477 = dma.done.wait (%p6233_p0), %s502_s7, 4096  }
 0x11a   : > { %4479 = vsyncadd (%p6233_p0), %s502_s7, 4294963200  ;;  %s6234_s19 = sld [smem:[#allocation26_spill]]  ;;  %s6236_s26 = sld [smem:[#allocation28_spill]] }
 0x11b   : > { %s6235_s25 = sld [smem:[#allocation20_spill]] }
 0x120   : > { %s510_s14 = sand.u32 1, %s6234_s19   ;;  %p6237_p10 = scmp.ne.s32.totalorder %s6236_s26, 0 }
 0x121   : > { %s512_s30 = sand.u32 1, %s6235_s25   ;;  %s511_s5 = scalar_lea.sflag [#allocation6], %s510_s14 }
 0x122   : > { %s3354_s6 = sshll.u32 %s512_s30, 5 }
 0x123   : > { %s5025_s27 = scalar_lea.vmem [#allocation5], %s3354_s6 }
 0x124   : > { %4481 = dma.done.wait (%p6237_p10), %s511_s5, 8704  }
 0x125   : > { %4483 = vsyncadd (%p6237_p10), %s511_s5, 4294958592  ;;  %s3355_s29 = sshll.u32 %s512_s30, 9  ;;  %s529_s28 = scalar_lea.sflag [#allocation9], %s510_s14 }
 0x126   : > { %s5031_s10 = scalar_lea.vmem [#allocation7], %s3355_s29  ;;  %s5033_s13 = scalar_lea.vmem [#allocation8], %s3355_s29 }
 0x127   : > { %4485 = dma.done.wait (%p6237_p10), %s529_s28, 16384  }
 0x128   : > { %4487 = vsyncadd (%p6237_p10), %s529_s28, 4294950912  ;;  %s5039_s12 = scalar_lea.vmem [#allocation10], %s3355_s29  ;;  %p6238_p3 = scmp.eq.s32.totalorder %s6234_s19, 0 }
 0x12a   : > { %4489 = dma.done.wait (%p6238_p3), [#allocation12], 4096   ;;  %p6239_p4 = pmov %p6238_p3 }
 0x12b   : > { %v631_v0 = vld [vmem:[%s5017_s8] sm:$0xff]  ;;  %v632_v1 = vld [vmem:[%s5017_s8 + $0x8] sm:$0xff]  ;;  %v633_v12 = vld [vmem:[%s5017_s8 + $0x10] sm:$0xff]  ;;  %s6304_s3 = sld [smem:[#allocation24_spill]]  ;;  %s6312_s16 = sld [smem:[#allocation68_spill]] }
 0x12c   : > { %4491 = vsyncadd (%p6239_p4), [#allocation12], 4294963200  ;;  %v635_v2 = vld [vmem:[%s5017_s8 + $0x20] sm:$0xff]  ;;  %v5048_v3 = vunpack.c.l.bf16 %v631_v0  ;;  %v5050_v4 = vunpack.c.h.bf16 %v631_v0  ;;  %v5052_v5 = vunpack.c.l.bf16 %v632_v1  ;;  %v5054_v6 = vunpack.c.h.bf16 %v632_v1  ;;  %v636_v7 = vld [vmem:[%s5017_s8 + $0x28] sm:$0xff]  ;;  %s6313_s26 = sld [smem:[#allocation66_spill]]  ;;  %s6314_s30 = sld [smem:[#allocation23_spill]] }
 0x12d   : > { %v5057_v8 = vunpack.c.l.bf16 %v635_v2  ;;  %v5059_v9 = vunpack.c.h.bf16 %v635_v2  ;;  %v5061_v10 = vunpack.c.l.bf16 %v636_v7  ;;  %v5063_v11 = vunpack.c.h.bf16 %v636_v7  ;;  %v634_v13 = vld [vmem:[%s5017_s8 + $0x18] sm:$0xff]  ;;  %v637_v18 = vld [vmem:[%s5017_s8 + $0x30] sm:$0xff]  ;;  %v639_v46 = vld [vmem:[%s5017_s8 + $0x40] sm:$0xff]  ;;  %s6315_s29 = sld [smem:[#allocation70_spill]]  ;;  %s3360_s28 = sshll.u32 %s5013_s21, 5 }
 0x12e   : > { %v727_v14 = vmul.f32 %v5048_v3, %v5048_v3  ;;  %v728_v15 = vmul.f32 %v5050_v4, %v5050_v4  ;;  %v729_v16 = vmul.f32 %v5052_v5, %v5052_v5  ;;  %v730_v17 = vmul.f32 %v5054_v6, %v5054_v6  ;;  %v638_v27 = vld [vmem:[%s5017_s8 + $0x38] sm:$0xff]  ;;  %v641_v36 = vld [vmem:[%s5017_s8 + $0x50] sm:$0xff]  ;;  %v640_v51 = vld [vmem:[%s5017_s8 + $0x48] sm:$0xff]  ;;  %s6318_s9 = sld [smem:[#allocation34_spill]]  ;;  %s3084_s25 = scalar_lea.sflag [#allocation4], %s5013_s21 }
 0x12f   : > { %v735_v19 = vmul.f32 %v5057_v8, %v5057_v8  ;;  %v736_v20 = vmul.f32 %v5059_v9, %v5059_v9  ;;  %v737_v21 = vmul.f32 %v5061_v10, %v5061_v10  ;;  %v738_v22 = vmul.f32 %v5063_v11, %v5063_v11  ;;  %v642_v41 = vld [vmem:[%s5017_s8 + $0x58] sm:$0xff]  ;;  %v645_v52 = vld [vmem:[%s5017_s8 + $0x70] sm:$0xff]  ;;  %v3858_v57 = vld [vmem:[%s5033_s13 + $0x4] ss:$8 sps:$4 sm:$0xff]  }
 0x130   : > { %v791_v23 = vadd.f32 %v728_v15, %v727_v14  ;;  %v5084_v24 = vunpack.c.l.bf16 %v633_v12  ;;  %v5086_v25 = vunpack.c.h.bf16 %v633_v12  ;;  %v5088_v26 = vunpack.c.l.bf16 %v634_v13  ;;  %v3860_v58 = vld [vmem:[%s5033_s13] ss:$8 sps:$4 sm:$0xff]   ;;  %v3861_v63 = vld [vmem:[%s5033_s13 + $0x14] ss:$8 sps:$4 sm:$0xff]   ;;  %2006 = vmatprep.subr.bf16.mxu1 %v3858_v57 }
 0x131   : > { %v801_v28 = vadd.f32 %v736_v20, %v735_v19  ;;  %v5091_v29 = vunpack.c.h.bf16 %v634_v13  ;;  %v5093_v30 = vunpack.c.l.bf16 %v637_v18  ;;  %v5095_v31 = vunpack.c.h.bf16 %v637_v18  ;;  %v646_v12 = vld [vmem:[%s5017_s8 + $0x78] sm:$0xff]  ;;  %2007 = vmatpush1.bf16.msra.mxu1 %v3860_v58  ;;  %p618_p6 = scmp.lt.s32.totalorder %s6304_s3, 1 }
 0x132   : > { %v792_v32 = vadd.f32 %v791_v23, %v729_v16  ;;  %v731_v33 = vmul.f32 %v5084_v24, %v5084_v24  ;;  %v732_v34 = vmul.f32 %v5086_v25, %v5086_v25  ;;  %v733_v35 = vmul.f32 %v5088_v26, %v5088_v26  ;;  %2008 = vmatprep.subr.bf16.mxu1 %v3861_v63  ;;  %v3864_v23 = vld [vmem:[%s5033_s13 + $0x24] ss:$8 sps:$4 sm:$0xff]  }
 0x133   : > { %v802_v37 = vadd.f32 %v801_v28, %v737_v21  ;;  %v734_v38 = vmul.f32 %v5091_v29, %v5091_v29  ;;  %v5106_v39 = vunpack.c.l.bf16 %v638_v27  ;;  %v5108_v40 = vunpack.c.h.bf16 %v638_v27  ;;  %v647_v63 = vld [vmem:[%s5017_s8 + $0x80] sm:$0xff]  ;;  %s5760_s1 = scalar_select %p618_p6, %s6304_s3, 1 }
 0x134   : > { %v793_v42 = vadd.f32 %v792_v32, %v730_v17  ;;  %v796_v43 = vadd.f32 %v732_v34, %v731_v33  ;;  %v739_v44 = vmul.f32 %v5093_v30, %v5093_v30  ;;  %v740_v45 = vmul.f32 %v5095_v31, %v5095_v31  ;;  %v3863_v17 = vld [vmem:[%s5033_s13 + $0x10] ss:$8 sps:$4 sm:$0xff]   ;;  %v644_v34 = vld [vmem:[%s5017_s8 + $0x68] sm:$0xff]  ;;  %p6322_p1 = scmp.ne.s32.totalorder %s6318_s9, 0 }
 0x135   : > { %v803_v47 = vadd.f32 %v802_v37, %v738_v22  ;;  %v741_v48 = vmul.f32 %v5106_v39, %v5106_v39  ;;  %v742_v49 = vmul.f32 %v5108_v40, %v5108_v40  ;;  %v5120_v50 = vunpack.c.l.bf16 %v641_v36  ;;  %v643_v22 = vld [vmem:[%s5017_s8 + $0x60] sm:$0xff]  ;;  %2009 = vmatpush1.bf16.msra.mxu1 %v3863_v17  ;;  %s3361_s20 = sshll.u32 %s5760_s1, 1  ;;  %s3363_s6 = sshll.u32 %s5760_s1, 2 }
 0x136   : > { %794 = vadd.xlane.f32.xlu0 %v793_v42  ;;  %v797_v53 = vadd.f32 %v796_v43, %v733_v35  ;;  %v806_v54 = vadd.f32 %v740_v45, %v739_v44  ;;  %v5124_v55 = vunpack.c.h.bf16 %v641_v36  ;;  %v5126_v56 = vunpack.c.l.bf16 %v642_v41  ;;  %v649_v45 = vld [vmem:[%s5017_s8 + $0x90] sm:$0xff]  ;;  %2010 = vmatprep.subr.bf16.mxu1 %v3864_v23  ;;  %s625_s7 = scalar_lea.vmem %s6312_s16, %s3361_s20  ;;  %s621_s14 = scalar_lea.vmem %s6313_s26, %s3361_s20 }
 0x137   : > { %804 = vadd.xlane.f32.xlu1 %v803_v47  ;;  %v5130_v59 = vunpack.c.h.bf16 %v642_v41  ;;  %v747_v60 = vmul.f32 %v5120_v50, %v5120_v50  ;;  %v5134_v61 = vunpack.c.l.bf16 %v639_v46  ;;  %v5136_v62 = vunpack.c.h.bf16 %v639_v46  ;;  %v3866_v46 = vld [vmem:[%s5033_s13 + $0x20] ss:$8 sps:$4 sm:$0xff]   ;;  %s617_s20 = scalar_lea.vmem [#allocation14], %s3360_s28 }
 0x138   : > { %v798_v0 = vadd.f32 %v797_v53, %v734_v38  ;;  %v807_v1 = vadd.f32 %v806_v54, %v741_v48  ;;  %v748_v2 = vmul.f32 %v5124_v55, %v5124_v55  ;;  %v749_v7 = vmul.f32 %v5126_v56, %v5126_v56  ;;  %v3867_v53 = vld [vmem:[%s5033_s13 + $0x34] ss:$8 sps:$4 sm:$0xff]   ;;  %s3099_s11 = sshll.u32 %s617_s20, 4  ;;  %s6017_s11 = int_to_ptr.vmem [resolvable:$true] %s3099_s11 }
 0x139   : > { %v750_v13 = vmul.f32 %v5130_v59, %v5130_v59  ;;  %v5146_v14 = vunpack.c.l.bf16 %v640_v51  ;;  %v5148_v15 = vunpack.c.h.bf16 %v640_v51  ;;  %v743_v16 = vmul.f32 %v5134_v61, %v5134_v61  ;;  %2011 = vmatpush1.bf16.msra.mxu1 %v3866_v46  ;;  %s4404_s26 = scalar_lea.vmem %s6017_s11, 512 }
 0x13a   : > { %799 = vadd.xlane.f32.xlu0 %v798_v0  ;;  %v808_v18 = vadd.f32 %v807_v1, %v742_v49  ;;  %v816_v19 = vadd.f32 %v748_v2, %v747_v60  ;;  %v744_v20 = vmul.f32 %v5136_v62, %v5136_v62  ;;  %v5155_v21 = vunpack.c.l.bf16 %v645_v52  ;;  %2012 = vmatprep.subr.bf16.mxu1 %v3867_v53  ;;  %p4405_p11 = scmp.ne.s32.totalorder %s6017_s11, %s4404_s26 }
 0x13b   : > { %v745_v27 = vmul.f32 %v5146_v14, %v5146_v14  ;;  %v746_v28 = vmul.f32 %v5148_v15, %v5148_v15  ;;  %v5163_v32 = vunpack.c.h.bf16 %v645_v52  ;;  %v5165_v33 = vunpack.c.l.bf16 %v646_v12  ;;  %v650_v52 = vld [vmem:[%s5017_s8 + $0x98] sm:$0xff] }
 0x13c   : > { %809 = vadd.xlane.f32.xlu1 %v808_v18  ;;  %v817_v35 = vadd.f32 %v816_v19, %v749_v7  ;;  %v811_v36 = vadd.f32 %v744_v20, %v743_v16  ;;  %v5168_v37 = vunpack.c.h.bf16 %v646_v12  ;;  %v755_v38 = vmul.f32 %v5155_v21, %v5155_v21  ;;  %v648_v18 = vld [vmem:[%s5017_s8 + $0x88] sm:$0xff]  ;;  %v3869_v19 = vld [vmem:[%s5033_s13 + $0x30] ss:$8 sps:$4 sm:$0xff]   ;;  %p4406_p7 = pnand %p4405_p11, %p6322_p1 }
 0x13d   : > { %v756_v41 = vmul.f32 %v5163_v32, %v5163_v32  ;;  %v757_v42 = vmul.f32 %v5165_v33, %v5165_v33  ;;  %v5176_v43 = vunpack.c.l.bf16 %v643_v22  ;;  %v5178_v44 = vunpack.c.h.bf16 %v643_v22  ;;  %2013 = vmatpush1.bf16.msra.mxu1 %v3869_v19 }
 0x13e   : > { %v818_v47 = vadd.f32 %v817_v35, %v750_v13  ;;  %v812_v48 = vadd.f32 %v811_v36, %v745_v27  ;;  %v758_v49 = vmul.f32 %v5168_v37, %v5168_v37  ;;  %v5184_v51 = vunpack.c.l.bf16 %v644_v34  ;;  %p4407_p9 = pneg %p4406_p7 }
 0x13f   : > { %v826_v54 = vadd.f32 %v756_v41, %v755_v38  ;;  %v5188_v57 = vunpack.c.h.bf16 %v644_v34  ;;  %v751_v58 = vmul.f32 %v5176_v43, %v5176_v43  ;;  %v752_v60 = vmul.f32 %v5178_v44, %v5178_v44  ;;  %v3870_v34 = vld [vmem:[%s5033_s13 + $0x44] ss:$8 sps:$4 sm:$0xff]  }
 0x140   : > { %819 = vadd.xlane.f32.xlu1 %v818_v47  ;;  %v813_v0 = vadd.f32 %v812_v48, %v746_v28  ;;  %v753_v1 = vmul.f32 %v5184_v51, %v5184_v51  ;;  %v5197_v2 = vunpack.c.l.bf16 %v649_v45  ;;  %v5199_v7 = vunpack.c.h.bf16 %v649_v45  ;;  %v653_v28 = vld [vmem:[%s5017_s8 + $0xb0] sm:$0xff]  ;;  %2014 = vmatprep.subr.bf16.mxu1 %v3870_v34 }
 0x141   : > { %v827_v12 = vadd.f32 %v826_v54, %v757_v42  ;;  %v754_v13 = vmul.f32 %v5188_v57, %v5188_v57  ;;  %v821_v16 = vadd.f32 %v752_v60, %v751_v58  ;;  %v5203_v17 = vunpack.c.l.bf16 %v650_v52  ;;  %v654_v42 = vld [vmem:[%s5017_s8 + $0xb8] sm:$0xff]  ;;  %v652_v60 = vld [vmem:[%s5017_s8 + $0xa8] sm:$0xff] }
 0x142   : > { %6240 = vst [vmem:[#allocation36_spill] sm:$0xff] %v5197_v2  ;;  %6241 = vst [vmem:[#allocation37_spill] sm:$0xff] %v5199_v7  ;;  %814 = vadd.xlane.f32.xlu0 %v813_v0  ;;  %v5207_v20 = vunpack.c.h.bf16 %v650_v52  ;;  %v763_v22 = vmul.f32 %v5197_v2, %v5197_v2  ;;  %v764_v23 = vmul.f32 %v5199_v7, %v5199_v7  ;;  %v5213_v27 = vunpack.c.l.bf16 %v647_v63  ;;  %v651_v52 = vld [vmem:[%s5017_s8 + $0xa0] sm:$0xff] }
 0x143   : > { %v828_v35 = vadd.f32 %v827_v12, %v758_v49  ;;  %v822_v36 = vadd.f32 %v821_v16, %v753_v1  ;;  %v765_v38 = vmul.f32 %v5203_v17, %v5203_v17  ;;  %v5219_v41 = vunpack.c.h.bf16 %v647_v63  ;;  %v3872_v63 = vld [vmem:[%s5033_s13 + $0x40] ss:$8 sps:$4 sm:$0xff]   ;;  %v657_v16 = vld [vmem:[%s5017_s8 + $0xd0] sm:$0xff] }
 0x144   : > { %6242 = vst [vmem:[#allocation38_spill] sm:$0xff] %v5213_v27  ;;  %v766_v45 = vmul.f32 %v5207_v20, %v5207_v20  ;;  %v836_v46 = vadd.f32 %v764_v23, %v763_v22  ;;  %v5224_v47 = vunpack.c.l.bf16 %v648_v18  ;;  %v5226_v48 = vunpack.c.h.bf16 %v648_v18  ;;  %v3873_v18 = vld [vmem:[%s5033_s13 + $0x54] ss:$8 sps:$4 sm:$0xff]   ;;  %2015 = vmatpush1.bf16.msra.mxu1 %v3872_v63 }
 0x145   : > { %829 = vadd.xlane.f32.xlu1 %v828_v35  ;;  %v823_v49 = vadd.f32 %v822_v36, %v754_v13  ;;  %v759_v53 = vmul.f32 %v5213_v27, %v5213_v27  ;;  %v760_v54 = vmul.f32 %v5219_v41, %v5219_v41  ;;  %v5233_v58 = vunpack.c.l.bf16 %v653_v28  ;;  %v658_v36 = vld [vmem:[%s5017_s8 + $0xd8] sm:$0xff]  ;;  %2016 = vmatprep.subr.bf16.mxu1 %v3873_v18 }
 0x146   : > { %v837_v0 = vadd.f32 %v836_v46, %v765_v38  ;;  %v761_v1 = vmul.f32 %v5224_v47, %v5224_v47  ;;  %v762_v12 = vmul.f32 %v5226_v48, %v5226_v48  ;;  %v5241_v13 = vunpack.c.h.bf16 %v653_v28  ;;  %v3875_v38 = vld [vmem:[%s5033_s13 + $0x50] ss:$8 sps:$4 sm:$0xff]  }
 0x147   : > { %6243 = vst [vmem:[#allocation39_spill] sm:$0xff] %v5233_v58  ;;  %824 = vadd.xlane.f32.xlu0 %v823_v49  ;;  %v831_v22 = vadd.f32 %v760_v54, %v759_v53  ;;  %v5245_v23 = vunpack.c.l.bf16 %v654_v42  ;;  %v5247_v35 = vunpack.c.h.bf16 %v654_v42  ;;  %v771_v19 = vmul.f32 %v5233_v58, %v5233_v58  ;;  %v655_v49 = vld [vmem:[%s5017_s8 + $0xc0] sm:$0xff] }
 0x148   : > { %6244 = vst [vmem:[#allocation40_spill] sm:$0xff] %v5241_v13  ;;  %v838_v46 = vadd.f32 %v837_v0, %v766_v45  ;;  %v772_v28 = vmul.f32 %v5241_v13, %v5241_v13  ;;  %v5255_v2 = vunpack.c.l.bf16 %v651_v52  ;;  %v5257_v34 = vunpack.c.h.bf16 %v651_v52  ;;  %v3876_v13 = vld [vmem:[%s5033_s13 + $0x64] ss:$8 sps:$4 sm:$0xff]   ;;  %2017 = vmatpush1.bf16.msra.mxu1 %v3875_v38 }
 0x149   : > { %6245 = vst [vmem:[#allocation41_spill] sm:$0xff] %v5245_v23  ;;  %6246 = vst [vmem:[#allocation42_spill] sm:$0xff] %v5247_v35  ;;  %v832_v53 = vadd.f32 %v831_v22, %v761_v1  ;;  %v773_v42 = vmul.f32 %v5245_v23, %v5245_v23  ;;  %v774_v54 = vmul.f32 %v5247_v35, %v5247_v35  ;;  %v5264_v58 = vunpack.c.l.bf16 %v652_v60  ;;  %v656_v22 = vld [vmem:[%s5017_s8 + $0xc8] sm:$0xff] }
 0x14a   : > { %6247 = vst [vmem:[#allocation43_spill] sm:$0xff] %v5255_v2  ;;  %6248 = vst [vmem:[#allocation44_spill] sm:$0xff] %v5257_v34  ;;  %839 = vadd.xlane.f32.xlu1 %v838_v46  ;;  %v846_v45 = vadd.f32 %v772_v28, %v771_v19  ;;  %v5266_v0 = vunpack.c.h.bf16 %v652_v60  ;;  %v767_v52 = vmul.f32 %v5255_v2, %v5255_v2  ;;  %v5276_v35 = vunpack.c.l.bf16 %v657_v16  ;;  %v661_v19 = vld [vmem:[%s5017_s8 + $0xf0] sm:$0xff]  ;;  %v3878_v60 = vld [vmem:[%s5033_s13 + $0x60] ss:$8 sps:$4 sm:$0xff]  }
 0x14b   : > { %6249 = vst [vmem:[#allocation45_spill] sm:$0xff] %v5264_v58  ;;  %v768_v1 = vmul.f32 %v5257_v34, %v5257_v34  ;;  %v833_v27 = vadd.f32 %v832_v53, %v762_v12  ;;  %v769_v23 = vmul.f32 %v5264_v58, %v5264_v58  ;;  %v5278_v63 = vunpack.c.h.bf16 %v657_v16  ;;  %2018 = vmatprep.subr.bf16.mxu1 %v3876_v13 }
 0x14c   : > { %6250 = vst [vmem:[#allocation46_spill] sm:$0xff] %v5266_v0  ;;  %6251 = vst [vmem:[#allocation47_spill] sm:$0xff] %v5276_v35  ;;  %v847_v46 = vadd.f32 %v846_v45, %v773_v42  ;;  %v770_v28 = vmul.f32 %v5266_v0, %v5266_v0  ;;  %v5284_v18 = vunpack.c.l.bf16 %v658_v36  ;;  %v5286_v12 = vunpack.c.h.bf16 %v658_v36  ;;  %v659_v36 = vld [vmem:[%s5017_s8 + $0xe0] sm:$0xff]  ;;  %2019 = vmatpush1.bf16.msra.mxu1 %v3878_v60 }
 0x14d   : > { %6252 = vst [vmem:[#allocation48_spill] sm:$0xff] %v5278_v63  ;;  %v841_v2 = vadd.f32 %v768_v1, %v767_v52  ;;  %834 = vadd.xlane.f32.xlu0 %v833_v27  ;;  %v779_v53 = vmul.f32 %v5276_v35, %v5276_v35  ;;  %v780_v16 = vmul.f32 %v5278_v63, %v5278_v63  ;;  %v5292_v34 = vunpack.c.l.bf16 %v655_v49  ;;  %v662_v27 = vld [vmem:[%s5017_s8 + $0xf8] sm:$0xff] }
 0x14e   : > { %6253 = vst [vmem:[#allocation49_spill] sm:$0xff] %v5284_v18  ;;  %6254 = vst [vmem:[#allocation50_spill] sm:$0xff] %v5286_v12  ;;  %v848_v42 = vadd.f32 %v847_v46, %v774_v54  ;;  %v781_v52 = vmul.f32 %v5284_v18, %v5284_v18  ;;  %v5296_v1 = vunpack.c.h.bf16 %v655_v49  ;;  %v3879_v35 = vld [vmem:[%s5033_s13 + $0x74] ss:$8 sps:$4 sm:$0xff]   ;;  %v782_v58 = vmul.f32 %v5286_v12, %v5286_v12  ;;  %v3882_v18 = vld [vmem:[%s5033_s13 + $0x84] ss:$8 sps:$4 sm:$0xff]  }
 0x14f   : > { %6255 = vst [vmem:[#allocation51_spill] sm:$0xff] %v5292_v34  ;;  %v842_v45 = vadd.f32 %v841_v2, %v769_v23  ;;  %v856_v63 = vadd.f32 %v780_v16, %v779_v53  ;;  %v5303_v0 = vunpack.c.l.bf16 %v656_v22  ;;  %v5305_v38 = vunpack.c.h.bf16 %v656_v22  ;;  %v660_v2 = vld [vmem:[%s5017_s8 + $0xe8] sm:$0xff]  ;;  %v3881_v23 = vld [vmem:[%s5033_s13 + $0x70] ss:$8 sps:$4 sm:$0xff]   ;;  %2020 = vmatprep.subr.bf16.mxu1 %v3879_v35  ;;  %s4551_s8 = smov 64  }
 0x150   : > { %6256 = vst [vmem:[#allocation52_spill] sm:$0xff] %v5296_v1  ;;  %849 = vadd.xlane.f32.xlu1 %v848_v42  ;;  %v775_v49 = vmul.f32 %v5292_v34, %v5292_v34  ;;  %v776_v13 = vmul.f32 %v5296_v1, %v5296_v1  ;;  %v5313_v46 = vunpack.c.l.bf16 %v661_v19  ;;  %v1018_v16 = vld [vmem:[%s5025_s27 + $0x10] sm:$0xff]  ;;  %v5325_v34 = vunpack.c.h.bf16 %v662_v27  ;;  %2021 = vmatpush1.bf16.msra.mxu1 %v3881_v23 }
 0x151   : > { %6257 = vst [vmem:[#allocation53_spill] sm:$0xff] %v5303_v0  ;;  %6258 = vst [vmem:[#allocation54_spill] sm:$0xff] %v5305_v38  ;;  %v843_v54 = vadd.f32 %v842_v45, %v770_v28  ;;  %v857_v12 = vadd.f32 %v856_v63, %v781_v52  ;;  %v777_v53 = vmul.f32 %v5303_v0, %v5303_v0  ;;  %v5320_v28 = vunpack.c.h.bf16 %v661_v19  ;;  %v1019_v52 = vld [vmem:[%s5025_s27 + $0x18] sm:$0xff] }
 0x152   : > { %6259 = vst [vmem:[#allocation55_spill] sm:$0xff] %v5313_v46  ;;  %v778_v22 = vmul.f32 %v5305_v38, %v5305_v38  ;;  %v851_v42 = vadd.f32 %v776_v13, %v775_v49  ;;  %v5323_v45 = vunpack.c.l.bf16 %v662_v27  ;;  %6262 = vst [vmem:[#allocation58_spill] sm:$0xff] %v5325_v34  ;;  %v787_v63 = vmul.f32 %v5313_v46, %v5313_v46  ;;  %v3884_v49 = vld [vmem:[%s5033_s13 + $0x80] ss:$8 sps:$4 sm:$0xff]  }
 0x153   : > { %6260 = vst [vmem:[#allocation56_spill] sm:$0xff] %v5320_v28  ;;  %844 = vadd.xlane.f32.xlu0 %v843_v54  ;;  %v858_v1 = vadd.f32 %v857_v12, %v782_v58  ;;  %v788_v19 = vmul.f32 %v5320_v28, %v5320_v28  ;;  %v5332_v0 = vunpack.c.l.bf16 %v659_v36  ;;  %v5334_v60 = vunpack.c.h.bf16 %v659_v36  ;;  %v1016_v54 = vld [vmem:[%s5025_s27] sm:$0xff]  ;;  %v3885_v58 = vld [vmem:[%s5033_s13 + $0x94] ss:$8 sps:$4 sm:$0xff]   ;;  %2022 = vmatprep.subr.bf16.mxu1 %v3882_v18 }
 0x154   : > { %6261 = vst [vmem:[#allocation57_spill] sm:$0xff] %v5323_v45  ;;  %v852_v13 = vadd.f32 %v851_v42, %v777_v53  ;;  %v789_v27 = vmul.f32 %v5323_v45, %v5323_v45  ;;  %v790_v46 = vmul.f32 %v5325_v34, %v5325_v34  ;;  %v5342_v38 = vunpack.c.l.bf16 %v660_v2  ;;  %v1017_v42 = vld [vmem:[%s5025_s27 + $0x8] sm:$0xff]  ;;  %2023 = vmatpush1.bf16.msra.mxu1 %v3884_v49 }
 0x155   : > { %6263 = vst [vmem:[#allocation59_spill] sm:$0xff] %v5332_v0  ;;  %6264 = vst [vmem:[#allocation60_spill] sm:$0xff] %v5334_v60  ;;  %859 = vadd.xlane.f32.xlu1 %v858_v1  ;;  %v866_v35 = vadd.f32 %v788_v19, %v787_v63  ;;  %v5345_v12 = vunpack.c.h.bf16 %v660_v2  ;;  %v783_v36 = vmul.f32 %v5332_v0, %v5332_v0  ;;  %v5354_v34 = vunpack.c.l.bf16 %v1018_v16  ;;  %v3887_v0 = vld [vmem:[%s5033_s13 + $0x90] ss:$8 sps:$4 sm:$0xff]  }
 0x156   : > { %v784_v53 = vmul.f32 %v5334_v60, %v5334_v60  ;;  %v853_v28 = vadd.f32 %v852_v13, %v778_v22  ;;  %v785_v45 = vmul.f32 %v5342_v38, %v5342_v38  ;;  %v5356_v7 = vunpack.c.h.bf16 %v1018_v16  ;;  %2024 = vmatprep.subr.bf16.mxu1 %v3885_v58 }
 0x157   : > { %6265 = vst [vmem:[#allocation61_spill] sm:$0xff] %v5354_v34  ;;  %v867_v1 = vadd.f32 %v866_v35, %v789_v27  ;;  %v786_v2 = vmul.f32 %v5345_v12, %v5345_v12  ;;  %v5360_v19 = vunpack.c.l.bf16 %v1019_v52  ;;  %v5363_v23 = vunpack.c.h.bf16 %v1019_v52 }
 0x158   : > { %6266 = vst [vmem:[#allocation62_spill] sm:$0xff] %v5356_v7  ;;  %v861_v63 = vadd.f32 %v784_v53, %v783_v36  ;;  %854 = vadd.xlane.f32.xlu0 %v853_v28  ;;  %v1032_v22 = vmul.f32 %v5354_v34, %v5354_v34  ;;  %v1033_v16 = vmul.f32 %v5356_v7, %v5356_v7  ;;  %v5369_v13 = vunpack.c.l.bf16 %v1016_v54  ;;  %v3888_v34 = vld [vmem:[%s5033_s13 + $0xa4] ss:$8 sps:$4 sm:$0xff]  }
 0x159   : > { %6267 = vst [vmem:[#allocation63_spill] sm:$0xff] %v5360_v19  ;;  %6268 = vst [vmem:[#allocation64_spill] sm:$0xff] %v5363_v23  ;;  %v868_v18 = vadd.f32 %v867_v1, %v790_v46  ;;  %v1034_v35 = vmul.f32 %v5360_v19, %v5360_v19  ;;  %v5373_v36 = vunpack.c.h.bf16 %v1016_v54  ;;  %v1035_v28 = vmul.f32 %v5363_v23, %v5363_v23 }
 0x15a   : > { %v862_v27 = vadd.f32 %v861_v63, %v785_v45  ;;  %v1041_v52 = vadd.f32 %v1033_v16, %v1032_v22  ;;  %v5377_v53 = vunpack.c.l.bf16 %v1017_v42  ;;  %v5379_v60 = vunpack.c.h.bf16 %v1017_v42  ;;  %2025 = vmatpush1.bf16.msra.mxu1 %v3887_v0  ;;  %v3891_v63 = vld [vmem:[%s5033_s13 + $0xb4] ss:$8 sps:$4 sm:$0xff]   ;;  %v3896_v0 = vld [vmem:[%s5033_s13 + $0xc0] ss:$8 sps:$4 sm:$0xff]  }
 0x15b   : > { %869 = vadd.xlane.f32.xlu1 %v868_v18  ;;  %v1028_v45 = vmul.f32 %v5369_v13, %v5369_v13  ;;  %v1029_v54 = vmul.f32 %v5373_v36, %v5373_v36  ;;  %2026 = vmatprep.subr.bf16.mxu1 %v3888_v34  ;;  %v3899_v34 = vld [vmem:[%s5033_s13 + $0xd0] ss:$8 sps:$4 sm:$0xff]  }
 0x15c   : > { %v863_v46 = vadd.f32 %v862_v27, %v786_v2  ;;  %v1042_v49 = vadd.f32 %v1041_v52, %v1034_v35  ;;  %v1030_v1 = vmul.f32 %v5377_v53, %v5377_v53  ;;  %v1031_v42 = vmul.f32 %v5379_v60, %v5379_v60  ;;  %v3890_v2 = vld [vmem:[%s5033_s13 + $0xa0] ss:$8 sps:$4 sm:$0xff]   ;;  %v3893_v27 = vld [vmem:[%s5033_s13 + $0xb0] ss:$8 sps:$4 sm:$0xff]   ;;  %v3894_v35 = vld [vmem:[%s5033_s13 + $0xc4] ss:$8 sps:$4 sm:$0xff]  }
 0x15d   : > { %v1036_v58 = vadd.f32 %v1029_v54, %v1028_v45  ;;  %v3897_v52 = vld [vmem:[%s5033_s13 + $0xd4] ss:$8 sps:$4 sm:$0xff]   ;;  %v3905_v54 = vld [vmem:[%s5033_s13 + $0xf0] ss:$8 sps:$4 sm:$0xff]  }
 0x15e   : > { %864 = vadd.xlane.f32.xlu0 %v863_v46  ;;  %v1043_v22 = vadd.f32 %v1042_v49, %v1035_v28  ;;  %2027 = vmatpush1.bf16.msra.mxu1 %v3890_v2  ;;  %v3900_v28 = vld [vmem:[%s5033_s13 + $0xe4] ss:$8 sps:$4 sm:$0xff]   ;;  %v3902_v46 = vld [vmem:[%s5033_s13 + $0xe0] ss:$8 sps:$4 sm:$0xff]   ;;  %v3903_v45 = vld [vmem:[%s5033_s13 + $0xf4] ss:$8 sps:$4 sm:$0xff]  }
 0x15f   : > { %v1037_v16 = vadd.f32 %v1036_v58, %v1030_v1  ;;  %2028 = vmatprep.subr.bf16.mxu1 %v3891_v63  ;;  %v3908_v49 = vld [vmem:[%s5033_s13 + $0x104] ss:$8 sps:$4 sm:$0xff]   ;;  %v3948_v58 = vld [vmem:[%s5031_s10 + $0x14] ss:$8 sps:$4 sm:$0xff]   ;;  %v3953_v2 = vld [vmem:[%s5031_s10 + $0x10] ss:$8 sps:$4 sm:$0xff]  }
 0x160   : > { %1044 = vadd.xlane.f32.xlu1 %v1043_v22  ;;  %v3942_v1 = vld [vmem:[%s5031_s10 + $0x4] ss:$8 sps:$4 sm:$0xff]   ;;  %v3959_v22 = vld [vmem:[%s5031_s10 + $0x20] ss:$8 sps:$4 sm:$0xff]  }
 0x161   : > { %v1038_v18 = vadd.f32 %v1037_v16, %v1031_v42  ;;  %v3947_v42 = vld [vmem:[%s5031_s10] ss:$8 sps:$4 sm:$0xff]   ;;  %1469 = vmatprep.subr.bf16.mxu0 %v3942_v1  ;;  %v3954_v63 = vld [vmem:[%s5031_s10 + $0x24] ss:$8 sps:$4 sm:$0xff]   ;;  %v3960_v16 = vld [vmem:[%s5031_s10 + $0x34] ss:$8 sps:$4 sm:$0xff]  }
 0x162   : > { %2029 = vmatpush1.bf16.msra.mxu1 %v3893_v27  ;;  %1470 = vmatpush1.bf16.msra.mxu0 %v3947_v42  ;;  %v3966_v27 = vld [vmem:[%s5031_s10 + $0x44] ss:$8 sps:$4 sm:$0xff]   ;;  %v3981_v1 = vld [vmem:[%s5031_s10 + $0x94] ss:$8 sps:$4 sm:$0xff]   ;;  %v3983_v42 = vld [vmem:[%s5031_s10 + $0x90] ss:$8 sps:$4 sm:$0xff]  }
 0x163   : > { %1039 = vadd.xlane.f32.xlu0 %v1038_v18  ;;  %2030 = vmatprep.subr.bf16.mxu1 %v3894_v35  ;;  %v3965_v18 = vld [vmem:[%s5031_s10 + $0x30] ss:$8 sps:$4 sm:$0xff]   ;;  %v3968_v35 = vld [vmem:[%s5031_s10 + $0x40] ss:$8 sps:$4 sm:$0xff]  }
 0x164   : > { %1471 = vmatprep.subr.bf16.mxu0 %v3948_v58  ;;  %v3984_v58 = vld [vmem:[%s5031_s10 + $0xa4] ss:$8 sps:$4 sm:$0xff]  }
 0x166   : > { %2031 = vmatpush1.bf16.msra.mxu1 %v3896_v0  ;;  %1472 = vmatpush1.bf16.msra.mxu0 %v3953_v2  ;;  %v3969_v0 = vld [vmem:[%s5031_s10 + $0x54] ss:$8 sps:$4 sm:$0xff]   ;;  %v3986_v2 = vld [vmem:[%s5031_s10 + $0xa0] ss:$8 sps:$4 sm:$0xff]  }
 0x167   : > { %2032 = vmatprep.subr.bf16.mxu1 %v3897_v52  ;;  %1473 = vmatprep.subr.bf16.mxu0 %v3954_v63  ;;  %v3971_v52 = vld [vmem:[%s5031_s10 + $0x50] ss:$8 sps:$4 sm:$0xff]   ;;  %v3987_v63 = vld [vmem:[%s5031_s10 + $0xb4] ss:$8 sps:$4 sm:$0xff]  }
 0x16a   : > { %2033 = vmatpush1.bf16.msra.mxu1 %v3899_v34  ;;  %1474 = vmatpush1.bf16.msra.mxu0 %v3959_v22  ;;  %v3972_v34 = vld [vmem:[%s5031_s10 + $0x64] ss:$8 sps:$4 sm:$0xff]   ;;  %v3989_v22 = vld [vmem:[%s5031_s10 + $0xb0] ss:$8 sps:$4 sm:$0xff]  }
 0x16b   : > { %2034 = vmatprep.subr.bf16.mxu1 %v3900_v28  ;;  %1475 = vmatprep.subr.bf16.mxu0 %v3960_v16  ;;  %v3974_v28 = vld [vmem:[%s5031_s10 + $0x60] ss:$8 sps:$4 sm:$0xff]   ;;  %v3990_v16 = vld [vmem:[%s5031_s10 + $0xc4] ss:$8 sps:$4 sm:$0xff]  }
 0x16e   : > { %2035 = vmatpush1.bf16.msra.mxu1 %v3902_v46  ;;  %1476 = vmatpush1.bf16.msra.mxu0 %v3965_v18  ;;  %v3975_v46 = vld [vmem:[%s5031_s10 + $0x74] ss:$8 sps:$4 sm:$0xff]   ;;  %v3992_v18 = vld [vmem:[%s5031_s10 + $0xc0] ss:$8 sps:$4 sm:$0xff]  }
 0x16f   : > { %2036 = vmatprep.subr.bf16.mxu1 %v3903_v45  ;;  %1477 = vmatprep.subr.bf16.mxu0 %v3966_v27  ;;  %v3977_v45 = vld [vmem:[%s5031_s10 + $0x70] ss:$8 sps:$4 sm:$0xff]   ;;  %v3993_v27 = vld [vmem:[%s5031_s10 + $0xd4] ss:$8 sps:$4 sm:$0xff]  }
 0x172   : > { %2037 = vmatpush1.bf16.msra.mxu1 %v3905_v54  ;;  %1478 = vmatpush1.bf16.msra.mxu0 %v3968_v35  ;;  %v3978_v54 = vld [vmem:[%s5031_s10 + $0x84] ss:$8 sps:$4 sm:$0xff]   ;;  %v3995_v35 = vld [vmem:[%s5031_s10 + $0xd0] ss:$8 sps:$4 sm:$0xff]  }
 0x173   : > { %2119 = vmatprep.subr.bf16.mxu1 %v3908_v49  ;;  %1479 = vmatprep.subr.bf16.mxu0 %v3969_v0  ;;  %v3980_v49 = vld [vmem:[%s5031_s10 + $0x80] ss:$8 sps:$4 sm:$0xff]   ;;  %v3996_v0 = vld [vmem:[%s5031_s10 + $0xe4] ss:$8 sps:$4 sm:$0xff]  }
 0x176   : > { %1480 = vmatpush1.bf16.msra.mxu0 %v3971_v52  ;;  %v3998_v52 = vld [vmem:[%s5031_s10 + $0xe0] ss:$8 sps:$4 sm:$0xff]  }
 0x177   : > { %1481 = vmatprep.subr.bf16.mxu0 %v3972_v34 }
 0x17a   : > { %1482 = vmatpush1.bf16.msra.mxu0 %v3974_v28 }
 0x17b   : > { %1483 = vmatprep.subr.bf16.mxu0 %v3975_v46 }
 0x17e   : > { %1484 = vmatpush1.bf16.msra.mxu0 %v3977_v45 }
 0x17f   : > { %1485 = vmatprep.subr.bf16.mxu0 %v3978_v54  ;;  %v3999_v54 = vld [vmem:[%s5031_s10 + $0xf4] ss:$8 sps:$4 sm:$0xff]  }
 0x182   : > { %1486 = vmatpush1.bf16.msra.mxu0 %v3980_v49  ;;  %v4001_v49 = vld [vmem:[%s5031_s10 + $0xf0] ss:$8 sps:$4 sm:$0xff]  }
 0x183   : > { %1487 = vmatprep.subr.bf16.mxu0 %v3981_v1 }
 0x186   : > { %1488 = vmatpush1.bf16.msra.mxu0 %v3983_v42  ;;  %v4004_v42 = vld [vmem:[%s5031_s10 + $0x104] ss:$8 sps:$4 sm:$0xff]  }
 0x187   : > { %1489 = vmatprep.subr.bf16.mxu0 %v3984_v58 }
 0x18a   : > { %1490 = vmatpush1.bf16.msra.mxu0 %v3986_v2 }
 0x18b   : > { %1491 = vmatprep.subr.bf16.mxu0 %v3987_v63 }
 0x18e   : > { %1492 = vmatpush1.bf16.msra.mxu0 %v3989_v22 }
 0x18f   : > { %1493 = vmatprep.subr.bf16.mxu0 %v3990_v16 }
 0x192   : > { %1494 = vmatpush1.bf16.msra.mxu0 %v3992_v18 }
 0x193   : > { %1495 = vmatprep.subr.bf16.mxu0 %v3993_v27 }
 0x196   : > { %1496 = vmatpush1.bf16.msra.mxu0 %v3995_v35 }
 0x197   : > { %1497 = vmatprep.subr.bf16.mxu0 %v3996_v0 }
 0x19a   : > { %1498 = vmatpush1.bf16.msra.mxu0 %v3998_v52 }
 0x19b   : > { %1499 = vmatprep.subr.bf16.mxu0 %v3999_v54 }
 0x19e   : > { %1500 = vmatpush1.bf16.msra.mxu0 %v4001_v49 }
 0x19f   : > { %1512 = vmatprep.subr.bf16.mxu0 %v4004_v42 }
 0x1c3   : > { %v795_v34 = vpop.xlane.xlu0 %794 }
 0x1c4   : > { %v872_v28 = vmul.f32 0.001953125, %v795_v34  ;;  %v805_v46 = vpop.xlane.xlu1 %804 }
 0x1c5   : > { %v874_v45 = vmul.f32 0.001953125, %v805_v46 }
 0x1c6   : > { %v888_v1 = vadd.f32 1.1920929e-07, %v872_v28 }
 0x1c7   : > { %v890_v58 = vadd.f32 1.1920929e-07, %v874_v45  ;;  %v800_v2 = vpop.xlane.xlu0 %799 }
 0x1c8   : > { %4146 = vrsqrt.f32 %v888_v1  ;;  %v873_v63 = vmul.f32 0.001953125, %v800_v2 }
 0x1c9   : > { %4148 = vrsqrt.f32 %v890_v58  ;;  %v810_v22 = vpop.xlane.xlu1 %809 }
 0x1ca   : > { %v889_v16 = vadd.f32 1.1920929e-07, %v873_v63  ;;  %v875_v18 = vmul.f32 0.001953125, %v810_v22 }
 0x1cc   : > { %4150 = vrsqrt.f32 %v889_v16  ;;  %v891_v27 = vadd.f32 1.1920929e-07, %v875_v18 }
 0x1cd   : > { %v820_v35 = vpop.xlane.xlu1 %819 }
 0x1ce   : > { %4152 = vrsqrt.f32 %v891_v27  ;;  %v877_v0 = vmul.f32 0.001953125, %v820_v35 }
 0x1cf   : > { %v815_v52 = vpop.xlane.xlu0 %814 }
 0x1d0   : > { %v893_v34 = vadd.f32 1.1920929e-07, %v877_v0  ;;  %v876_v28 = vmul.f32 0.001953125, %v815_v52 }
 0x1d2   : > { %v4147_v46 = vpop.eup %4146  ;;  %4154 = vrsqrt.f32 %v893_v34  ;;  %v892_v45 = vadd.f32 1.1920929e-07, %v876_v28  ;;  %v830_v54 = vpop.xlane.xlu1 %829 }
 0x1d3   : > { %v4149_v1 = vpop.eup %4148  ;;  %v879_v2 = vmul.f32 0.001953125, %v830_v54  ;;  %v921_v42 = vmul.f32 %v4147_v46, %v5050_v4  ;;  %v920_v16 = vmul.f32 %v4147_v46, %v5048_v3  ;;  %v5439_v27 = vmul.f32 %v4147_v46, %v5054_v6 }
 0x1d4   : > { %4156 = vrsqrt.f32 %v892_v45  ;;  %v825_v49 = vpop.xlane.xlu0 %824  ;;  %v929_v18 = vmul.f32 %v4149_v1, %v5059_v9  ;;  %v5442_v35 = vmul.f32 %v4147_v46, %v5052_v5  ;;  %v5453_v6 = vmul.f32 %v4149_v1, %v5063_v11  ;;  %v3906_v46 = vld [vmem:[%s5033_s13 + $0x100] ss:$8 sps:$4 sm:$0xff]  }
 0x1d5   : > { %v895_v58 = vadd.f32 1.1920929e-07, %v879_v2  ;;  %v878_v63 = vmul.f32 0.001953125, %v825_v49 }
 0x1d6   : > { %v4151_v22 = vpop.eup %4150 }
 0x1d7   : > { %v925_v0 = vmul.f32 %v4151_v22, %v5086_v25  ;;  %v924_v52 = vmul.f32 %v4151_v22, %v5084_v24  ;;  %4158 = vrsqrt.f32 %v895_v58  ;;  %v894_v4 = vadd.f32 1.1920929e-07, %v878_v63  ;;  %v840_v34 = vpop.xlane.xlu1 %839  ;;  %v3911_v24 = vld [vmem:[%s5033_s13 + $0x114] ss:$8 sps:$4 sm:$0xff]  }
 0x1d8   : > { %v4153_v28 = vpop.eup %4152  ;;  %v881_v45 = vmul.f32 0.001953125, %v840_v34  ;;  %v5447_v3 = vmul.f32 %v4151_v22, %v5091_v29  ;;  %v5450_v9 = vmul.f32 %v4151_v22, %v5088_v26  ;;  %v5463_v58 = vmul.f32 %v4149_v1, %v5061_v10  ;;  %v3941_v29 = vld [vmem:[%s5033_s13 + $0x1b4] ss:$8 sps:$4 sm:$0xff]  }
 0x1d9   : > { %v985_v5 = vpack.c.bf16 %v925_v0, %v921_v42  ;;  %v984_v54 = vpack.c.bf16 %v924_v52, %v920_v16  ;;  %v933_v25 = vmul.f32 %v4153_v28, %v5095_v31  ;;  %4160 = vrsqrt.f32 %v894_v4  ;;  %v3909_v16 = vld [vmem:[%s5033_s13 + $0x110] ss:$8 sps:$4 sm:$0xff]   ;;  %v3936_v4 = vld [vmem:[%s5033_s13 + $0x1a0] ss:$8 sps:$4 sm:$0xff]  }
 0x1da   : > { %v897_v2 = vadd.f32 1.1920929e-07, %v881_v45  ;;  %v835_v49 = vpop.xlane.xlu0 %834  ;;  %v5466_v31 = vmul.f32 %v4153_v28, %v5108_v40  ;;  %v5469_v63 = vmul.f32 %v4153_v28, %v5106_v39  ;;  %v928_v0 = vmul.f32 %v4149_v1, %v5057_v8  ;;  %v3914_v39 = vld [vmem:[%s5033_s13 + $0x124] ss:$8 sps:$4 sm:$0xff]  }
 0x1db   : > { %2038 = vmatprep.mubr.bf16.mxu1 %v985_v5  ;;  %v989_v11 = vpack.c.bf16 %v933_v25, %v929_v18  ;;  %v880_v42 = vmul.f32 0.001953125, %v835_v49  ;;  %v932_v34 = vmul.f32 %v4153_v28, %v5093_v30  ;;  %v6287_v49 = vld [vmem:[#allocation48_spill] sm:$0xff] }
 0x1dc   : > { %v4155_v22 = vpop.eup %4154  ;;  %2039 = vmatmul.mubr.bf16.vlgmr.msra.gmra.mrb[0].mxu1 %v984_v54  ;;  %4162 = vrsqrt.f32 %v897_v2 }
 0x1dd   : > { %2120 = vmatpush1.bf16.msra.mxu1 %v3906_v46  ;;  %2048 = vmatprep.mubr.bf16.mxu1 %v989_v11  ;;  %v896_v10 = vadd.f32 1.1920929e-07, %v880_v42  ;;  %v941_v52 = vmul.f32 %v4155_v22, %v5124_v55  ;;  %v850_v18 = vpop.xlane.xlu1 %849  ;;  %v5481_v46 = vmul.f32 %v4155_v22, %v5130_v59  ;;  %v5488_v54 = vmul.f32 %v4155_v22, %v5126_v56  ;;  %v3912_v59 = vld [vmem:[%s5033_s13 + $0x120] ss:$8 sps:$4 sm:$0xff]  }
 0x1de   : > { %v4157_v40 = vpop.eup %4156  ;;  %2121 = vmatprep.subr.bf16.mxu1 %v3911_v24  ;;  %v883_v45 = vmul.f32 0.001953125, %v850_v18 }
 0x1df   : > { %4164 = vrsqrt.f32 %v896_v10  ;;  %v937_v8 = vmul.f32 %v4157_v40, %v5136_v62  ;;  %v5485_v1 = vmul.f32 %v4157_v40, %v5148_v15  ;;  %v5491_v28 = vmul.f32 %v4157_v40, %v5146_v14  ;;  %v3917_v15 = vld [vmem:[%s5033_s13 + $0x134] ss:$8 sps:$4 sm:$0xff]   ;;  %v6286_v14 = vld [vmem:[#allocation52_spill] sm:$0xff] }
 0x1e0   : > { %v845_v55 = vpop.xlane.xlu0 %844  ;;  %v899_v25 = vadd.f32 1.1920929e-07, %v883_v45  ;;  %v988_v62 = vpack.c.bf16 %v932_v34, %v928_v0  ;;  %v936_v0 = vmul.f32 %v4157_v40, %v5134_v61  ;;  %v3915_v34 = vld [vmem:[%s5033_s13 + $0x130] ss:$8 sps:$4 sm:$0xff]  }
 0x1e1   : > { %v882_v30 = vmul.f32 0.001953125, %v845_v55  ;;  %v4159_v24 = vpop.eup %4158  ;;  %2122 = vmatpush1.bf16.msra.mxu1 %v3909_v16  ;;  %v993_v2 = vpack.c.bf16 %v941_v52, %v937_v8  ;;  %v940_v52 = vmul.f32 %v4155_v22, %v5120_v50  ;;  %v3920_v50 = vld [vmem:[%s5033_s13 + $0x144] ss:$8 sps:$4 sm:$0xff]  }
 0x1e2   : > { %2123 = vmatprep.subr.bf16.mxu1 %v3914_v39  ;;  %4166 = vrsqrt.f32 %v899_v25  ;;  %v860_v56 = vpop.xlane.xlu1 %859  ;;  %v5500_v18 = vmul.f32 %v4159_v24, %v5168_v37  ;;  %v5503_v16 = vmul.f32 %v4159_v24, %v5165_v33  ;;  %v949_v37 = vmul.f32 %v4159_v24, %v5163_v32 }
 0x1e3   : > { %v898_v11 = vadd.f32 1.1920929e-07, %v882_v30  ;;  %v4161_v42 = vpop.eup %4160  ;;  %v885_v10 = vmul.f32 0.001953125, %v860_v56  ;;  %v992_v32 = vpack.c.bf16 %v940_v52, %v936_v0 }
 0x1e4   : > { %2049 = vmatmul.mubr.bf16.gmra.mrb[4].mxu1 %v988_v62  ;;  %v5508_v39 = vmul.f32 %v4161_v42, %v5188_v57  ;;  %v945_v45 = vmul.f32 %v4161_v42, %v5178_v44  ;;  %v5514_v55 = vmul.f32 %v4161_v42, %v5184_v51  ;;  %v6283_v44 = vld [vmem:[#allocation57_spill] sm:$0xff] }
 0x1e5   : > { %4168 = vrsqrt.f32 %v898_v11  ;;  %2124 = vmatpush1.bf16.msra.mxu1 %v3912_v59  ;;  %2058 = vmatprep.mubr.bf16.mxu1 %v993_v2  ;;  %v901_v8 = vadd.f32 1.1920929e-07, %v885_v10  ;;  %v855_v33 = vpop.xlane.xlu0 %854  ;;  %v3918_v59 = vld [vmem:[%s5033_s13 + $0x140] ss:$8 sps:$4 sm:$0xff]  }
 0x1e6   : > { %v5516_v61 = vpop.eup %4162  ;;  %2125 = vmatprep.subr.bf16.mxu1 %v3917_v15  ;;  %v884_v57 = vmul.f32 0.001953125, %v855_v33  ;;  %v997_v2 = vpack.c.bf16 %v949_v37, %v945_v45  ;;  %v3923_v15 = vld [vmem:[%s5033_s13 + $0x154] ss:$8 sps:$4 sm:$0xff]   ;;  %v944_v45 = vmul.f32 %v4161_v42, %v5176_v43  ;;  %v948_v37 = vmul.f32 %v4159_v24, %v5155_v21  ;;  %v6269_v33 = vld [vmem:[#allocation37_spill] sm:$0xff] }
 0x1e7   : > { %4170 = vrsqrt.f32 %v901_v8  ;;  %v5525_v51 = vmul.f32 %v5516_v61, %v5207_v20  ;;  %v5534_v10 = vmul.f32 %v5516_v61, %v5203_v17  ;;  %v3921_v8 = vld [vmem:[%s5033_s13 + $0x150] ss:$8 sps:$4 sm:$0xff]   ;;  %v3926_v43 = vld [vmem:[%s5033_s13 + $0x164] ss:$8 sps:$4 sm:$0xff]  }
 0x1e8   : > { %v900_v40 = vadd.f32 1.1920929e-07, %v884_v57  ;;  %v870_v25 = vpop.xlane.xlu1 %869  ;;  %v6270_v24 = vld [vmem:[#allocation42_spill] sm:$0xff] }
 0x1e9   : > { %v4165_v30 = vpop.eup %4164  ;;  %2126 = vmatpush1.bf16.msra.mxu1 %v3915_v34  ;;  %v887_v62 = vmul.f32 0.001953125, %v870_v25 }
 0x1ea   : > { %2127 = vmatprep.subr.bf16.mxu1 %v3920_v50  ;;  %4172 = vrsqrt.f32 %v900_v40  ;;  %v5530_v56 = vmul.f32 %v4165_v30, %v5226_v48  ;;  %v5537_v52 = vmul.f32 %v4165_v30, %v5224_v47  ;;  %v953_v17 = vmul.f32 %v4165_v30, %v5219_v41  ;;  %v6271_v41 = vld [vmem:[#allocation41_spill] sm:$0xff] }
 0x1eb   : > { %v865_v11 = vpop.xlane.xlu0 %864  ;;  %v903_v0 = vadd.f32 1.1920929e-07, %v887_v62  ;;  %v957_v47 = vmul.f32 %v5516_v61, %v6269_v33  ;;  %v996_v62 = vpack.c.bf16 %v948_v37, %v944_v45  ;;  %v3927_v45 = vld [vmem:[%s5033_s13 + $0x170] ss:$8 sps:$4 sm:$0xff]  }
 0x1ec   : > { %v886_v20 = vmul.f32 0.001953125, %v865_v11  ;;  %v5539_v34 = vpop.eup %4166  ;;  %2059 = vmatmul.mubr.bf16.gmra.mrb[8].mxu1 %v992_v32 }
 0x1ed   : > { %2128 = vmatpush1.bf16.msra.mxu1 %v3918_v59  ;;  %2068 = vmatprep.mubr.bf16.mxu1 %v997_v2  ;;  %4174 = vrsqrt.f32 %v903_v0  ;;  %v1045_v57 = vpop.xlane.xlu1 %1044  ;;  %v5554_v40 = vmul.f32 %v5539_v34, %v6270_v24  ;;  %v5558_v25 = vmul.f32 %v5539_v34, %v6271_v41  ;;  %v6272_v59 = vld [vmem:[#allocation46_spill] sm:$0xff]  ;;  %v6273_v0 = vld [vmem:[#allocation45_spill] sm:$0xff]  ;;  %v1001_v24 = vpack.c.bf16 %v957_v47, %v953_v17 }
 0x1ee   : > { %v902_v50 = vadd.f32 1.1920929e-07, %v886_v20  ;;  %2129 = vmatprep.subr.bf16.mxu1 %v3923_v15  ;;  %v1047_v42 = vmul.f32 0.001953125, %v1045_v57  ;;  %v3924_v57 = vld [vmem:[%s5033_s13 + $0x160] ss:$8 sps:$4 sm:$0xff]   ;;  %v6275_v17 = vld [vmem:[#allocation38_spill] sm:$0xff] }
 0x1ef   : > { %v4169_v32 = vpop.eup %4168  ;;  %v952_v47 = vmul.f32 %v4165_v30, %v6275_v17  ;;  %v6281_v17 = vld [vmem:[#allocation53_spill] sm:$0xff] }
 0x1f0   : > { %4176 = vrsqrt.f32 %v902_v50  ;;  %v5561_v2 = vmul.f32 %v4169_v32, %v6272_v59  ;;  %v1049_v15 = vadd.f32 1.1920929e-07, %v1047_v42  ;;  %v1040_v11 = vpop.xlane.xlu0 %1039  ;;  %v5564_v20 = vmul.f32 %v4169_v32, %v6273_v0  ;;  %v3929_v50 = vld [vmem:[%s5033_s13 + $0x174] ss:$8 sps:$4 sm:$0xff]  }
 0x1f1   : > { %v5566_v33 = vpop.eup %4170  ;;  %2130 = vmatpush1.bf16.msra.mxu1 %v3921_v8  ;;  %v1046_v21 = vmul.f32 0.001953125, %v1040_v11  ;;  %v6274_v42 = vld [vmem:[#allocation50_spill] sm:$0xff]  ;;  %v6276_v11 = vld [vmem:[#allocation36_spill] sm:$0xff] }
 0x1f2   : > { %2131 = vmatprep.subr.bf16.mxu1 %v3926_v43  ;;  %4178 = vrsqrt.f32 %v1049_v15  ;;  %v5576_v59 = vmul.f32 %v5566_v33, %v6274_v42  ;;  %v956_v0 = vmul.f32 %v5516_v61, %v6276_v11  ;;  %v6277_v43 = vld [vmem:[#allocation49_spill] sm:$0xff]  ;;  %v6279_v42 = vld [vmem:[#allocation40_spill] sm:$0xff] }
 0x1f3   : > { %v1048_v37 = vadd.f32 1.1920929e-07, %v1046_v21  ;;  %v5585_v15 = vmul.f32 %v5566_v33, %v6277_v43  ;;  %v6278_v21 = vld [vmem:[#allocation44_spill] sm:$0xff]  ;;  %v965_v48 = vmul.f32 %v5539_v34, %v6279_v42 }
 0x1f4   : > { %v5578_v8 = vpop.eup %4172  ;;  %2069 = vmatmul.mubr.bf16.gmra.mrb[12].mxu1 %v996_v62  ;;  %v961_v41 = vmul.f32 %v4169_v32, %v6278_v21  ;;  %v6280_v62 = vld [vmem:[#allocation54_spill] sm:$0xff]  ;;  %v3932_v61 = vld [vmem:[%s5033_s13 + $0x184] ss:$8 sps:$4 sm:$0xff]   ;;  %v1000_v43 = vpack.c.bf16 %v956_v0, %v952_v47 }
 0x1f5   : > { %2132 = vmatpush1.bf16.msra.mxu1 %v3924_v57  ;;  %2078 = vmatprep.mubr.bf16.mxu1 %v1001_v24  ;;  %4180 = vrsqrt.f32 %v1048_v37  ;;  %v5593_v30 = vmul.f32 %v5578_v8, %v6280_v62  ;;  %v5598_v11 = vmul.f32 %v5578_v8, %v6281_v17  ;;  %v6282_v21 = vld [vmem:[#allocation58_spill] sm:$0xff]  ;;  %v6284_v37 = vld [vmem:[#allocation43_spill] sm:$0xff] }
 0x1f6   : > { %2133 = vmatprep.subr.bf16.mxu1 %v3929_v50  ;;  %v3930_v50 = vld [vmem:[%s5033_s13 + $0x180] ss:$8 sps:$4 sm:$0xff]   ;;  %v1005_v17 = vpack.c.bf16 %v965_v48, %v961_v41  ;;  %v3935_v47 = vld [vmem:[%s5033_s13 + $0x194] ss:$8 sps:$4 sm:$0xff]   ;;  %v960_v24 = vmul.f32 %v4169_v32, %v6284_v37  ;;  %v973_v32 = vmul.f32 %v5566_v33, %v6287_v49 }
 0x1f7   : > { %v5600_v57 = vpop.eup %4174  ;;  %v6288_v37 = vld [vmem:[#allocation61_spill] sm:$0xff] }
 0x1f8   : > { %v5608_v42 = vmul.f32 %v5600_v57, %v6282_v21  ;;  %v5615_v22 = vmul.f32 %v5600_v57, %v6283_v44 }
 0x1f9   : > { %2134 = vmatpush1.bf16.msra.mxu1 %v3927_v45  ;;  %v6285_v45 = vld [vmem:[#allocation39_spill] sm:$0xff] }
 0x1fa   : > { %v5610_v62 = vpop.eup %4176  ;;  %2135 = vmatprep.subr.bf16.mxu1 %v3932_v61  ;;  %v964_v48 = vmul.f32 %v5539_v34, %v6285_v45  ;;  %v3938_v34 = vld [vmem:[%s5033_s13 + $0x1a4] ss:$8 sps:$4 sm:$0xff]  }
 0x1fb   : > { %v5620_v0 = vmul.f32 %v5610_v62, %v5345_v12  ;;  %v5624_v21 = vmul.f32 %v5610_v62, %v5342_v38  ;;  %v3933_v12 = vld [vmem:[%s5033_s13 + $0x190] ss:$8 sps:$4 sm:$0xff]   ;;  %v969_v38 = vmul.f32 %v5578_v8, %v6286_v14 }
 0x1fc   : > { %v4179_v41 = vpop.eup %4178  ;;  %2079 = vmatmul.mubr.bf16.gmra.mrb[16].mxu1 %v1000_v43 }
 0x1fd   : > { %2136 = vmatpush1.bf16.msra.mxu1 %v3930_v50  ;;  %2088 = vmatprep.mubr.bf16.mxu1 %v1005_v17  ;;  %v1057_v43 = vmul.f32 %v4179_v41, %v5356_v7  ;;  %v1056_v45 = vmul.f32 %v4179_v41, %v6288_v37  ;;  %v5642_v44 = vmul.f32 %v4179_v41, %v5360_v19  ;;  %v6289_v19 = vld [vmem:[#allocation51_spill] sm:$0xff] }
 0x1fe   : > { %2137 = vmatprep.subr.bf16.mxu1 %v3935_v47  ;;  %v1004_v17 = vpack.c.bf16 %v964_v48, %v960_v24  ;;  %v1059_v61 = vmul.f32 %v4179_v41, %v5363_v23  ;;  %v1009_v26 = vpack.c.bf16 %v973_v32, %v969_v38  ;;  %v4002_v41 = vld [vmem:[%s5031_s10 + $0x100] ss:$8 sps:$4 sm:$0xff]   ;;  %v6290_v37 = vld [vmem:[#allocation47_spill] sm:$0xff] }
 0x1ff   : > { %v4181_v50 = vpop.eup %4180  ;;  %v4007_v38 = vld [vmem:[%s5031_s10 + $0x114] ss:$8 sps:$4 sm:$0xff]   ;;  %v3939_v32 = vld [vmem:[%s5033_s13 + $0x1b0] ss:$8 sps:$4 sm:$0xff]  }
 0x200   : > { %v1053_v14 = vmul.f32 %v4181_v50, %v5373_v36  ;;  %v1052_v5 = vmul.f32 %v4181_v50, %v5369_v13  ;;  %v1055_v49 = vmul.f32 %v4181_v50, %v5379_v60  ;;  %v5649_v47 = vmul.f32 %v4181_v50, %v5377_v53 }
 0x201   : > { %2138 = vmatpush1.bf16.msra.mxu1 %v3933_v12  ;;  %v968_v50 = vmul.f32 %v5578_v8, %v6289_v19  ;;  %v972_v12 = vmul.f32 %v5566_v33, %v6290_v37  ;;  %v3946_v19 = vld [vmem:[%s5033_s13 + $0x1c4] ss:$8 sps:$4 sm:$0xff]   ;;  %v4005_v33 = vld [vmem:[%s5031_s10 + $0x110] ss:$8 sps:$4 sm:$0xff]   ;;  %v3952_v37 = vld [vmem:[%s5033_s13 + $0x1d4] ss:$8 sps:$4 sm:$0xff]  }
 0x202   : > { %2139 = vmatprep.subr.bf16.mxu1 %v3938_v34  ;;  %v1061_v7 = vpack.c.bf16 %v1057_v43, %v1053_v14  ;;  %v1060_v24 = vpack.c.bf16 %v1056_v45, %v1052_v5  ;;  %v1062_v48 = vpack.c.bf16 %v5642_v44, %v5649_v47  ;;  %v1063_v23 = vpack.c.bf16 %v1059_v61, %v1055_v49  ;;  %v6291_v5 = vld [vmem:[#allocation60_spill] sm:$0xff]  ;;  %v6293_v45 = vld [vmem:[#allocation59_spill] sm:$0xff] }
 0x203   : > { %v977_v34 = vmul.f32 %v5610_v62, %v6291_v5  ;;  %v6292_v43 = vld [vmem:[#allocation56_spill] sm:$0xff]  ;;  %v4013_v49 = vld [vmem:[%s5031_s10 + $0x134] ss:$8 sps:$4 sm:$0xff]  }
 0x204   : > { %2089 = vmatmul.mubr.bf16.gmra.mrb[20].mxu1 %v1004_v17  ;;  %1501 = vmatprep.mubr.bf16.mxu0 %v1061_v7  ;;  %v981_v61 = vmul.f32 %v5600_v57, %v6292_v43  ;;  %v1008_v7 = vpack.c.bf16 %v972_v12, %v968_v50  ;;  %v976_v17 = vmul.f32 %v5610_v62, %v6293_v45  ;;  %v4011_v50 = vld [vmem:[%s5031_s10 + $0x130] ss:$8 sps:$4 sm:$0xff]   ;;  %v4016_v62 = vld [vmem:[%s5031_s10 + $0x144] ss:$8 sps:$4 sm:$0xff]   ;;  %v4019_v5 = vld [vmem:[%s5031_s10 + $0x154] ss:$8 sps:$4 sm:$0xff]  }
 0x205   : > { %2140 = vmatpush1.bf16.msra.mxu1 %v3936_v4  ;;  %2098 = vmatprep.mubr.bf16.mxu1 %v1009_v26  ;;  %v4010_v4 = vld [vmem:[%s5031_s10 + $0x124] ss:$8 sps:$4 sm:$0xff]   ;;  %v3944_v26 = vld [vmem:[%s5033_s13 + $0x1c0] ss:$8 sps:$4 sm:$0xff]   ;;  %v3962_v43 = vld [vmem:[%s5033_s13 + $0x1f0] ss:$8 sps:$4 sm:$0xff]  }
 0x206   : > { %2141 = vmatprep.subr.bf16.mxu1 %v3941_v29  ;;  %1502 = vmatmul.mubr.bf16.vlgmr.msra.gmra.mrb[0].mxu0 %v1060_v24  ;;  %v1013_v8 = vpack.c.bf16 %v981_v61, %v977_v34  ;;  %v4008_v29 = vld [vmem:[%s5031_s10 + $0x120] ss:$8 sps:$4 sm:$0xff]   ;;  %v3950_v24 = vld [vmem:[%s5033_s13 + $0x1d0] ss:$8 sps:$4 sm:$0xff]   ;;  %v6295_v34 = vpack.c.bf16 %v5447_v3, %v5439_v27  ;;  %v4025_v27 = vld [vmem:[%s5031_s10 + $0x174] ss:$8 sps:$4 sm:$0xff]   ;;  %v6297_v3 = vpack.c.bf16 %v5466_v31, %v5453_v6 }
 0x207   : > { %1513 = vmatpush1.bf16.msra.mxu0 %v4002_v41  ;;  %1544 = vmatprep.mubr.bf16.mxu0 %v1063_v23  ;;  %v6294_v23 = vld [vmem:[#allocation55_spill] sm:$0xff]  ;;  %v3958_v41 = vld [vmem:[%s5033_s13 + $0x1e4] ss:$8 sps:$4 sm:$0xff]   ;;  %v6299_v6 = vpack.c.bf16 %v5481_v46, %v5485_v1  ;;  %v6301_v46 = vpack.c.bf16 %v5500_v18, %v5508_v39 }
 0x208   : > { %1514 = vmatprep.subr.bf16.mxu0 %v4007_v38  ;;  %v980_v14 = vmul.f32 %v5600_v57, %v6294_v23  ;;  %v3956_v57 = vld [vmem:[%s5033_s13 + $0x1e0] ss:$8 sps:$4 sm:$0xff]   ;;  %v3964_v38 = vld [vmem:[%s5033_s13 + $0x1f4] ss:$8 sps:$4 sm:$0xff]   ;;  %v4017_v61 = vld [vmem:[%s5031_s10 + $0x150] ss:$8 sps:$4 sm:$0xff]   ;;  %v6303_v23 = vpack.c.bf16 %v5525_v51, %v5530_v56  ;;  %v6307_v56 = vpack.c.bf16 %v5558_v25, %v5564_v20  ;;  %v1131_v25 = vlaneseq }
 0x209   : > { %2142 = vmatpush1.bf16.msra.mxu1 %v3939_v32  ;;  %v4014_v32 = vld [vmem:[%s5031_s10 + $0x140] ss:$8 sps:$4 sm:$0xff]   ;;  %v4029_v31 = vld [vmem:[%s5031_s10 + $0x190] ss:$8 sps:$4 sm:$0xff]   ;;  %v4040_v45 = vld [vmem:[%s5031_s10 + $0x1c4] ss:$8 sps:$4 sm:$0xff]  }
 0x20a   : > { %2143 = vmatprep.subr.bf16.mxu1 %v3946_v19  ;;  %v1012_v12 = vpack.c.bf16 %v980_v14, %v976_v17  ;;  %v4022_v19 = vld [vmem:[%s5031_s10 + $0x164] ss:$8 sps:$4 sm:$0xff]   ;;  %v4035_v1 = vld [vmem:[%s5031_s10 + $0x1b0] ss:$8 sps:$4 sm:$0xff]   ;;  %v4038_v17 = vld [vmem:[%s5031_s10 + $0x1c0] ss:$8 sps:$4 sm:$0xff]  }
 0x20b   : > { %1515 = vmatpush1.bf16.msra.mxu0 %v4005_v33  ;;  %v4020_v33 = vld [vmem:[%s5031_s10 + $0x160] ss:$8 sps:$4 sm:$0xff]   ;;  %v4041_v18 = vld [vmem:[%s5031_s10 + $0x1d0] ss:$8 sps:$4 sm:$0xff]   ;;  %v4046_v39 = vld [vmem:[%s5031_s10 + $0x1e4] ss:$8 sps:$4 sm:$0xff]  }
 0x20c   : > { %2099 = vmatmul.mubr.bf16.gmra.mrb[24].mxu1 %v1008_v7  ;;  %1516 = vmatprep.subr.bf16.mxu0 %v4010_v4  ;;  %v6296_v7 = vpack.c.bf16 %v5450_v9, %v5442_v35  ;;  %v4023_v4 = vld [vmem:[%s5031_s10 + $0x170] ss:$8 sps:$4 sm:$0xff]   ;;  %v6298_v35 = vpack.c.bf16 %v5469_v63, %v5463_v58  ;;  %v4031_v9 = vld [vmem:[%s5031_s10 + $0x194] ss:$8 sps:$4 sm:$0xff]   ;;  %v6300_v58 = vpack.c.bf16 %v5488_v54, %v5491_v28  ;;  %v4044_v14 = vld [vmem:[%s5031_s10 + $0x1e0] ss:$8 sps:$4 sm:$0xff]  }
 0x20d   : > { %2144 = vmatpush1.bf16.msra.mxu1 %v3944_v26  ;;  %2108 = vmatprep.mubr.bf16.mxu1 %v1013_v8  ;;  %v4028_v26 = vld [vmem:[%s5031_s10 + $0x184] ss:$8 sps:$4 sm:$0xff]   ;;  %v4026_v8 = vld [vmem:[%s5031_s10 + $0x180] ss:$8 sps:$4 sm:$0xff]   ;;  %v4037_v63 = vld [vmem:[%s5031_s10 + $0x1b4] ss:$8 sps:$4 sm:$0xff]   ;;  %v6302_v54 = vpack.c.bf16 %v5503_v16, %v5514_v55  ;;  %v6306_v55 = vpack.c.bf16 %v5554_v40, %v5561_v2  ;;  %v6311_v40 = vpack.c.bf16 %v5615_v22, %v5624_v21 }
 0x20e   : > { %2145 = vmatprep.subr.bf16.mxu1 %v3952_v37  ;;  %v4034_v37 = vld [vmem:[%s5031_s10 + $0x1a4] ss:$8 sps:$4 sm:$0xff]   ;;  %v4043_v28 = vld [vmem:[%s5031_s10 + $0x1d4] ss:$8 sps:$4 sm:$0xff]   ;;  %v4047_v51 = vld [vmem:[%s5031_s10 + $0x1f0] ss:$8 sps:$4 sm:$0xff]  }
 0x20f   : > { %1517 = vmatpush1.bf16.msra.mxu0 %v4008_v29  ;;  %v4032_v29 = vld [vmem:[%s5031_s10 + $0x1a0] ss:$8 sps:$4 sm:$0xff]   ;;  %v4049_v16 = vld [vmem:[%s5031_s10 + $0x1f4] ss:$8 sps:$4 sm:$0xff]   ;;  %v5768_v2 = vshrl.u32 %v1131_v25, 7  ;;  %s629_s10 = scalar_lea.vmem %s6315_s29, %s3363_s6  ;;  %s3561_s13 = sshll.u32 %s6314_s30, 3 }
 0x210   : > { %1518 = vmatprep.subr.bf16.mxu0 %v4013_v49  ;;  %v6305_v49 = vpack.c.bf16 %v5534_v10, %v5537_v52  ;;  %v6309_v10 = vpack.c.bf16 %v5585_v15, %v5598_v11  ;;  %v6310_v52 = vpack.c.bf16 %v5608_v42, %v5620_v0  ;;  %v1665_v20 = vld [vmem:[%s625_s7] sm:$0x3] }
 0x211   : > { %2146 = vmatpush1.bf16.msra.mxu1 %v3950_v24  ;;  %v6308_v24 = vpack.c.bf16 %v5576_v59, %v5593_v30  ;;  %v5771_v59 = vsub.s32 0, %v5768_v2  ;;  %v1666_v22 = vunpack.c.l.bf16 %v1665_v20  ;;  %v5774_v15 = vsub.s32 2, %v5768_v2 }
 0x212   : > { %2147 = vmatprep.subr.bf16.mxu1 %v3958_v41 }
 0x213   : > { %1519 = vmatpush1.bf16.msra.mxu0 %v4011_v50  ;;  %v1671_v30 = vrot.slane %v1666_v22, %v5771_v59  ;;  %v1675_v11 = vrot.slane %v1666_v22, %v5774_v15 }
 0x214   : > { %2109 = vmatmul.mubr.bf16.gmra.mrb[28].mxu1 %v1012_v12  ;;  %1520 = vmatprep.subr.bf16.mxu0 %v4016_v62 }
 0x215   : > { %2148 = vmatpush1.bf16.msra.mxu1 %v3956_v57  ;;  %2151 = vmatprep.mubr.bf16.mxu1 %v6295_v34  ;;  %v5779_v42 = vrot.slane %v1671_v30, %v5771_v59  ;;  %v5782_v21 = vrot.slane %v1675_v11, %v5771_v59 }
 0x216   : > { %2149 = vmatprep.subr.bf16.mxu1 %v3964_v38 }
 0x217   : > { %1521 = vmatpush1.bf16.msra.mxu0 %v4014_v32 }
 0x218   : > { %1522 = vmatprep.subr.bf16.mxu0 %v4019_v5 }
 0x219   : > { %2150 = vmatpush1.bf16.msra.mxu1 %v3962_v43 }
 0x21b   : > { %1523 = vmatpush1.bf16.msra.mxu0 %v4017_v61 }
 0x21c   : > { %2152 = vmatmul.mubr.bf16.vlgmr.msra.gmra.mrb[0].mxu1 %v6296_v7  ;;  %1524 = vmatprep.subr.bf16.mxu0 %v4022_v19 }
 0x21d   : > { %2161 = vmatprep.mubr.bf16.mxu1 %v6297_v3 }
 0x21f   : > { %1525 = vmatpush1.bf16.msra.mxu0 %v4020_v33 }
 0x220   : > { %1526 = vmatprep.subr.bf16.mxu0 %v4025_v27 }
 0x223   : > { %1527 = vmatpush1.bf16.msra.mxu0 %v4023_v4 }
 0x224   : > { %2162 = vmatmul.mubr.bf16.gmra.mrb[4].mxu1 %v6298_v35  ;;  %1528 = vmatprep.subr.bf16.mxu0 %v4028_v26 }
 0x225   : > { %2171 = vmatprep.mubr.bf16.mxu1 %v6299_v6 }
 0x227   : > { %1529 = vmatpush1.bf16.msra.mxu0 %v4026_v8 }
 0x228   : > { %1530 = vmatprep.subr.bf16.mxu0 %v4031_v9 }
 0x22b   : > { %1531 = vmatpush1.bf16.msra.mxu0 %v4029_v31 }
 0x22c   : > { %2172 = vmatmul.mubr.bf16.gmra.mrb[8].mxu1 %v6300_v58  ;;  %1532 = vmatprep.subr.bf16.mxu0 %v4034_v37 }
 0x22d   : > { %2181 = vmatprep.mubr.bf16.mxu1 %v6301_v46 }
 0x22f   : > { %1533 = vmatpush1.bf16.msra.mxu0 %v4032_v29 }
 0x230   : > { %1534 = vmatprep.subr.bf16.mxu0 %v4037_v63 }
 0x233   : > { %1535 = vmatpush1.bf16.msra.mxu0 %v4035_v1 }
 0x234   : > { %2182 = vmatmul.mubr.bf16.gmra.mrb[12].mxu1 %v6302_v54  ;;  %1536 = vmatprep.subr.bf16.mxu0 %v4040_v45  ;;  %v1128_v54 = vld [vmem:[%s621_s14] sm:$0x3]  ;;  %s4554_s14 = smov [#allocation14]  }
 0x235   : > { %2191 = vmatprep.mubr.bf16.mxu1 %v6303_v23  ;;  %v1129_v23 = vunpack.c.l.bf16 %v1128_v54  ;;  %s4408_s30 = sshll.u32 %s4554_s14, 4  ;;  %s4409_s30 = int_to_ptr.vmem [resolvable:$false] %s4408_s30 }
 0x236   : > { %s4410_s6 = scalar_lea.vmem %s4409_s30, 1024  ;;  %p4411_p12 = scmp.lt.s32.totalorder %s6017_s11, %s4409_s30 }
 0x237   : > { %1537 = vmatpush1.bf16.msra.mxu0 %v4038_v17  ;;  %p4412_p5 = scmp.lt.s32.totalorder %s4410_s6, %s4404_s26 }
 0x238   : > { %1538 = vmatprep.subr.bf16.mxu0 %v4043_v28 }
 0x239   : > { %p4413_p2 = por %p4412_p5, %p4411_p12 }
 0x23b   : > { %1539 = vmatpush1.bf16.msra.mxu0 %v4041_v18  ;;  %p4414_p13 = pnand %p4413_p2, %p4407_p9 }
 0x23c   : > { %2192 = vmatmul.mubr.bf16.gmra.mrb[16].mxu1 %v6305_v49  ;;  %1540 = vmatprep.subr.bf16.mxu0 %v4046_v39 }
 0x23d   : > { %2201 = vmatprep.mubr.bf16.mxu1 %v6306_v55 }
 0x23f   : > { %1541 = vmatpush1.bf16.msra.mxu0 %v4044_v14 }
 0x240   : > { %1542 = vmatprep.subr.bf16.mxu0 %v4049_v16 }
 0x243   : > { %1543 = vmatpush1.bf16.msra.mxu0 %v4047_v51  ;;  %v1134_v51 = vrot.slane %v1129_v23, %v5771_v59 }
 0x244   : > { %2202 = vmatmul.mubr.bf16.gmra.mrb[20].mxu1 %v6307_v56 }
 0x245   : > { %2211 = vmatprep.mubr.bf16.mxu1 %v6308_v24  ;;  %v1144_v20 = vrot.slane %v1134_v51, %v5771_v59 }
 0x246   : > { %1545 = vmatmul.mubr.bf16.vlgmr.msra.gmra.mrb[0].mxu0 %v1062_v48 }
 0x24c   : > { %2212 = vmatmul.mubr.bf16.gmra.mrb[24].mxu1 %v6309_v10  ;;  %v1138_v10 = vrot.slane %v1129_v23, %v5774_v15 }
 0x24d   : > { %2221 = vmatprep.mubr.bf16.mxu1 %v6310_v52 }
 0x24e   : > { %v1148_v30 = vrot.slane %v1138_v10, %v5771_v59 }
 0x254   : > { %2222 = vmatmul.mubr.bf16.gmra.mrb[28].mxu1 %v6311_v40  ;;  %v4552_v40 = vmov 1935823168  }
 0x255   : > { %v1572_v25 = vunpack.c.l.s4 %v4552_v40 }
 0x2ef   : > { %v2153_v0 = vpop.f32.mrb[0].mxu1 }
 0x2f0   : > { %v5785_v44 = vadd.f32 %v2153_v0, %v5779_v42  ;;  %v2155_v47 = vpop.f32.mrb[1].mxu1 }
 0x2f1   : > { %v2157_v48 = vpop.f32.mrb[2].mxu1  ;;  %v3639_v12 = vadd.f32 %v2155_v47, %v5782_v21 }
 0x2f2   : > { %v5788_v41 = vadd.f32 %v2157_v48, %v5779_v42  ;;  %v2159_v50 = vpop.f32.mrb[3].mxu1  ;;  %2240 = vrot.lane.b32.xlu0 %v5785_v44, %s4551_s8 }
 0x2f3   : > { %v3641_v62 = vadd.f32 %v2159_v50, %v5782_v21  ;;  %v1573_v50 = vunpack.c.0.s8 %v1572_v25 }
 0x2f4   : > { %2242 = vrot.lane.b32.xlu1 %v5788_v41, %s4551_s8 }
 0x2f5   : > { %v2232_v57 = vpack.c.bf16 %v3641_v62, %v3639_v12 }
 0x2f7   : > { %v2163_v38 = vpop.f32.mrb[4].mxu1  ;;  %3614 = vmatprep.subr.bf16.mxu1 %v2232_v57 }
 0x2f8   : > { %v5797_v32 = vadd.f32 %v2163_v38, %v5779_v42  ;;  %v2165_v5 = vpop.f32.mrb[5].mxu1  ;;  %3615 = vmatpush3.bf16.msra.mxu1 %v2232_v57 }
 0x2f9   : > { %v2167_v34 = vpop.f32.mrb[6].mxu1  ;;  %v3643_v61 = vadd.f32 %v2165_v5, %v5782_v21 }
 0x2fa   : > { %v2169_v43 = vpop.f32.mrb[7].mxu1  ;;  %2244 = vrot.lane.b32.xlu1 %v5797_v32, %s4551_s8  ;;  %v5804_v33 = vadd.f32 %v2167_v34, %v5779_v42 }
 0x2fb   : > { %v3645_v19 = vadd.f32 %v2169_v43, %v5782_v21 }
 0x2fd   : > { %v2233_v7 = vpack.c.bf16 %v3645_v19, %v3643_v61 }
 0x2fe   : > { %2246 = vrot.lane.b32.xlu1 %v5804_v33, %s4551_s8 }
 0x2ff   : > { %v2173_v27 = vpop.f32.mrb[8].mxu1  ;;  %3616 = vmatprep.subr.bf16.mxu1 %v2233_v7 }
 0x300   : > { %v5809_v3 = vadd.f32 %v2173_v27, %v5779_v42  ;;  %v2175_v4 = vpop.f32.mrb[9].mxu1  ;;  %3617 = vmatpush3.bf16.msra.mxu1 %v2233_v7 }
 0x301   : > { %v2177_v26 = vpop.f32.mrb[10].mxu1  ;;  %v3647_v9 = vadd.f32 %v2175_v4, %v5782_v21 }
 0x302   : > { %v5812_v8 = vadd.f32 %v2177_v26, %v5779_v42  ;;  %v2179_v35 = vpop.f32.mrb[11].mxu1  ;;  %2248 = vrot.lane.b32.xlu0 %v5809_v3, %s4551_s8 }
 0x303   : > { %v3649_v6 = vadd.f32 %v2179_v35, %v5782_v21  ;;  %v1576_v35 = vsub.s32 %v1573_v50, %v5768_v2 }
 0x304   : > { %2250 = vrot.lane.b32.xlu1 %v5812_v8, %s4551_s8 }
 0x305   : > { %v2234_v31 = vpack.c.bf16 %v3649_v6, %v3647_v9 }
 0x307   : > { %v2183_v37 = vpop.f32.mrb[12].mxu1  ;;  %3618 = vmatprep.subr.bf16.mxu1 %v2234_v31 }
 0x308   : > { %v5821_v29 = vadd.f32 %v2183_v37, %v5779_v42  ;;  %v2185_v58 = vpop.f32.mrb[13].mxu1  ;;  %3619 = vmatpush3.bf16.msra.mxu1 %v2234_v31 }
 0x309   : > { %v2187_v63 = vpop.f32.mrb[14].mxu1  ;;  %v3651_v45 = vadd.f32 %v2185_v58, %v5782_v21 }
 0x30a   : > { %v5829_v46 = vadd.f32 %v2187_v63, %v5779_v42  ;;  %v2189_v1 = vpop.f32.mrb[15].mxu1  ;;  %2252 = vrot.lane.b32.xlu0 %v5821_v29, %s4551_s8 }
 0x30b   : > { %v3653_v17 = vadd.f32 %v2189_v1, %v5782_v21 }
 0x30c   : > { %2254 = vrot.lane.b32.xlu1 %v5829_v46, %s4551_s8 }
 0x30d   : > { %v2235_v28 = vpack.c.bf16 %v3653_v17, %v3651_v45 }
 0x30f   : > { %v2193_v18 = vpop.f32.mrb[16].mxu1  ;;  %3620 = vmatprep.subr.bf16.mxu1 %v2235_v28 }
 0x310   : > { %v5838_v39 = vadd.f32 %v2193_v18, %v5779_v42  ;;  %v2195_v14 = vpop.f32.mrb[17].mxu1  ;;  %3621 = vmatpush3.bf16.msra.mxu1 %v2235_v28 }
 0x311   : > { %v2197_v49 = vpop.f32.mrb[18].mxu1  ;;  %v3655_v56 = vadd.f32 %v2195_v14, %v5782_v21 }
 0x312   : > { %v5841_v16 = vadd.f32 %v2197_v49, %v5779_v42  ;;  %v2199_v55 = vpop.f32.mrb[19].mxu1  ;;  %2256 = vrot.lane.b32.xlu0 %v5838_v39, %s4551_s8 }
 0x313   : > { %v3657_v24 = vadd.f32 %v2199_v55, %v5782_v21 }
 0x314   : > { %2258 = vrot.lane.b32.xlu1 %v5841_v16, %s4551_s8 }
 0x315   : > { %v2236_v52 = vpack.c.bf16 %v3657_v24, %v3655_v56 }
 0x317   : > { %v2203_v22 = vpop.f32.mrb[20].mxu1  ;;  %3622 = vmatprep.subr.bf16.mxu1 %v2236_v52 }
 0x318   : > { %v5854_v11 = vadd.f32 %v2203_v22, %v5779_v42  ;;  %v2205_v0 = vpop.f32.mrb[21].mxu1  ;;  %3623 = vmatpush3.bf16.msra.mxu1 %v2236_v52 }
 0x319   : > { %v2207_v47 = vpop.f32.mrb[22].mxu1  ;;  %v1546_v48 = vpop.f32.mrb[0].mxu0  ;;  %v3659_v5 = vadd.f32 %v2205_v0, %v5782_v21 }
 0x31a   : > { %v5857_v12 = vadd.f32 %v2207_v47, %v5779_v42  ;;  %v2209_v62 = vpop.f32.mrb[23].mxu1  ;;  %2260 = vrot.lane.b32.xlu0 %v5854_v11, %s4551_s8  ;;  %v3634_v57 = vadd.f32 %v1546_v48, %v1144_v20  ;;  %v1548_v38 = vpop.f32.mrb[1].mxu0 }
 0x31b   : > { %v3661_v34 = vadd.f32 %v2209_v62, %v5782_v21  ;;  %v3635_v43 = vadd.f32 %v1548_v38, %v1148_v30  ;;  %v1550_v61 = vpop.f32.mrb[2].mxu0  ;;  %v2272_v38 = vld [vmem:[#allocation11] sm:$0xff] }
 0x31c   : > { %2262 = vrot.lane.b32.xlu1 %v5857_v12, %s4551_s8  ;;  %v1555_v19 = vmul.f32 0.088388346, %v3634_v57  ;;  %v3636_v7 = vadd.f32 %v1550_v61, %v1144_v20  ;;  %v1552_v27 = vpop.f32.mrb[3].mxu0  ;;  %v2304_v57 = vld [vmem:[#allocation13] sm:$0xff] }
 0x31d   : > { %v2237_v4 = vpack.c.bf16 %v3661_v34, %v3659_v5  ;;  %v1556_v26 = vmul.f32 0.088388346, %v3635_v43  ;;  %v3637_v9 = vadd.f32 %v1552_v27, %v1148_v30  ;;  %v2273_v5 = vld [vmem:[#allocation11 + $0x8] sm:$0xff] }
 0x31e   : > { %v1557_v6 = vmul.f32 0.088388346, %v3636_v7  ;;  %v2289_v7 = vmul.f32 %v5788_v41, %v2273_v5 }
 0x31f   : > { %v2213_v31 = vpop.f32.mrb[24].mxu1  ;;  %3624 = vmatprep.subr.bf16.mxu1 %v2237_v4  ;;  %v1563_v37 = vcombine.low %v1555_v19, %v1556_v26  ;;  %v1564_v58 = vcombine.high %v1555_v19, %v1556_v26  ;;  %v1558_v63 = vmul.f32 0.088388346, %v3637_v9  ;;  %v2288_v19 = vmul.f32 %v5785_v44, %v2272_v38  ;;  %v2311_v38 = vld [vmem:[#allocation13 + $0x38] sm:$0xff] }
 0x320   : > { %v5867_v1 = vadd.f32 %v2213_v31, %v5779_v42  ;;  %v2215_v45 = vpop.f32.mrb[25].mxu1  ;;  %3625 = vmatpush3.bf16.msra.mxu1 %v2237_v4  ;;  %v2275_v31 = vld [vmem:[#allocation11 + $0x18] sm:$0xff] }
 0x321   : > { %v2217_v17 = vpop.f32.mrb[26].mxu1  ;;  %v1577_v54 = vrot.slane %v1563_v37, %v1576_v35  ;;  %v1584_v28 = vrot.slane %v1564_v58, %v1576_v35  ;;  %v1565_v23 = vcombine.low %v1557_v6, %v1558_v63  ;;  %v1566_v49 = vcombine.high %v1557_v6, %v1558_v63  ;;  %v2274_v6 = vld [vmem:[#allocation11 + $0x10] sm:$0xff]  ;;  %v2307_v37 = vld [vmem:[#allocation13 + $0x18] sm:$0xff] }
 0x322   : > { %v5870_v18 = vadd.f32 %v2217_v17, %v5779_v42  ;;  %v2219_v14 = vpop.f32.mrb[27].mxu1  ;;  %2264 = vrot.lane.b32.xlu0 %v5867_v1, %s4551_s8  ;;  %v3663_v55 = vadd.f32 %v2215_v45, %v5782_v21  ;;  %v2290_v45 = vmul.f32 %v5797_v32, %v2274_v6  ;;  %v2291_v17 = vmul.f32 %v5804_v33, %v2275_v31 }
 0x323   : > { %v3665_v51 = vadd.f32 %v2219_v14, %v5782_v21  ;;  %v5876_v56 = vrot.slane %v1565_v23, %v1576_v35  ;;  %v1599_v24 = vpack.c.bf16 %v1584_v28, %v1577_v54  ;;  %v5880_v10 = vrot.slane %v1566_v49, %v1576_v35  ;;  %v2306_v35 = vld [vmem:[#allocation13 + $0x10] sm:$0xff]  ;;  %v2308_v54 = vld [vmem:[#allocation13 + $0x20] sm:$0xff]  ;;  %v2277_v14 = vld [vmem:[#allocation11 + $0x28] sm:$0xff] }
 0x324   : > { %2266 = vrot.lane.b32.xlu1 %v5870_v18, %s4551_s8  ;;  %v2276_v23 = vld [vmem:[#allocation11 + $0x20] sm:$0xff] }
 0x325   : > { %v2238_v52 = vpack.c.bf16 %v3665_v51, %v3663_v55  ;;  %3610 = vmatprep.mubr.bf16.mxu0 %v1599_v24  ;;  %v1600_v40 = vpack.c.bf16 %v5880_v10, %v5876_v56  ;;  %v2309_v55 = vld [vmem:[#allocation13 + $0x28] sm:$0xff] }
 0x327   : > { %v2223_v25 = vpop.f32.mrb[28].mxu1  ;;  %3626 = vmatprep.subr.bf16.mxu1 %v2238_v52 }
 0x328   : > { %v5885_v20 = vadd.f32 %v2223_v25, %v5779_v42  ;;  %v2225_v22 = vpop.f32.mrb[29].mxu1  ;;  %3627 = vmatpush3.bf16.msra.mxu1 %v2238_v52  ;;  %v2292_v25 = vmul.f32 %v5809_v3, %v2276_v23 }
 0x329   : > { %v2227_v30 = vpop.f32.mrb[30].mxu1  ;;  %v3667_v48 = vadd.f32 %v2225_v22, %v5782_v21  ;;  %v2293_v22 = vmul.f32 %v5812_v8, %v2277_v14 }
 0x32a   : > { %v5888_v0 = vadd.f32 %v2227_v30, %v5779_v42  ;;  %v2229_v47 = vpop.f32.mrb[31].mxu1  ;;  %2268 = vrot.lane.b32.xlu0 %v5885_v20, %s4551_s8  ;;  %v2305_v42 = vld [vmem:[#allocation13 + $0x8] sm:$0xff] }
 0x32b   : > { %v3669_v50 = vadd.f32 %v2229_v47, %v5782_v21  ;;  %v2310_v47 = vld [vmem:[#allocation13 + $0x30] sm:$0xff] }
 0x32c   : > { %2270 = vrot.lane.b32.xlu1 %v5888_v0, %s4551_s8  ;;  %s6321_s8 = sld [smem:[#allocation73_spill]] }
 0x32d   : > { %v2239_v62 = vpack.c.bf16 %v3669_v50, %v3667_v48  ;;  %v2278_v50 = vld [vmem:[#allocation11 + $0x30] sm:$0xff] }
 0x32f   : > { %3628 = vmatprep.subr.bf16.mxu1 %v2239_v62 }
 0x330   : > { %3629 = vmatpush3.bf16.msra.mxu1 %v2239_v62  ;;  %v2279_v62 = vld [vmem:[#allocation11 + $0x38] sm:$0xff] }
 0x331   : > { %v2295_v3 = vmul.f32 %v5829_v46, %v2279_v62 }
 0x364   : > { %v2241_v34 = vpop.permute.xlu0 %2240 }
 0x365   : > { %v2320_v43 = vmul.f32 %v2304_v57, %v2241_v34 }
 0x366   : > { %v2243_v61 = vpop.permute.xlu1 %2242 }
 0x367   : > { %v2321_v27 = vmul.f32 %v2305_v42, %v2243_v61  ;;  %v2336_v4 = vadd.f32 %v2320_v43, %v2288_v19  ;;  %v2294_v42 = vmul.f32 %v5821_v29, %v2278_v50  ;;  %v2312_v19 = vld [vmem:[#allocation13 + $0x40] sm:$0xff]  ;;  %v2318_v50 = vld [vmem:[#allocation13 + $0x70] sm:$0xff] }
 0x369   : > { %v2337_v21 = vadd.f32 %v2321_v27, %v2289_v7  ;;  %v2280_v27 = vld [vmem:[#allocation11 + $0x40] sm:$0xff] }
 0x36a   : > { %v2296_v6 = vmul.f32 %v5838_v39, %v2280_v27 }
 0x36b   : > { %v2352_v26 = vpack.c.bf16 %v2337_v21, %v2336_v4  ;;  %v2281_v4 = vld [vmem:[#allocation11 + $0x48] sm:$0xff] }
 0x36c   : > { %v2245_v9 = vpop.permute.xlu1 %2244  ;;  %v2297_v31 = vmul.f32 %v5841_v16, %v2281_v4 }
 0x36d   : > { %3594 = vmatprep.subr.bf16.mxu0 %v2352_v26  ;;  %v2322_v58 = vmul.f32 %v2306_v35, %v2245_v9 }
 0x36e   : > { %3595 = vmatpush3.bf16.xpose.msra.mxu0 %v2352_v26  ;;  %v2313_v26 = vld [vmem:[#allocation13 + $0x48] sm:$0xff] }
 0x36f   : > { %v2338_v41 = vadd.f32 %v2322_v58, %v2290_v45  ;;  %v2314_v58 = vld [vmem:[#allocation13 + $0x50] sm:$0xff] }
 0x370   : > { %v2247_v63 = vpop.permute.xlu1 %2246  ;;  %v2282_v45 = vld [vmem:[#allocation11 + $0x50] sm:$0xff] }
 0x371   : > { %v2323_v44 = vmul.f32 %v2307_v37, %v2247_v63  ;;  %v2298_v23 = vmul.f32 %v5854_v11, %v2282_v45 }
 0x373   : > { %v2339_v28 = vadd.f32 %v2323_v44, %v2291_v17  ;;  %v2283_v17 = vld [vmem:[#allocation11 + $0x58] sm:$0xff] }
 0x374   : > { %v2249_v49 = vpop.permute.xlu0 %2248  ;;  %v2299_v14 = vmul.f32 %v5857_v12, %v2283_v17  ;;  %v4050_v17 = vld [vmem:[%s5039_s12] ss:$16 sps:$4 sm:$0xff]  }
 0x375   : > { %v2324_v51 = vmul.f32 %v2308_v54, %v2249_v49  ;;  %v2353_v24 = vpack.c.bf16 %v2339_v28, %v2338_v41  ;;  %v2315_v54 = vld [vmem:[#allocation13 + $0x58] sm:$0xff] }
 0x376   : > { %v2251_v52 = vpop.permute.xlu1 %2250 }
 0x377   : > { %v2325_v30 = vmul.f32 %v2309_v55, %v2251_v52  ;;  %3596 = vmatprep.subr.bf16.mxu0 %v2353_v24  ;;  %v2340_v32 = vadd.f32 %v2324_v51, %v2292_v25  ;;  %v2316_v55 = vld [vmem:[#allocation13 + $0x60] sm:$0xff]  ;;  %v2285_v52 = vld [vmem:[#allocation11 + $0x68] sm:$0xff] }
 0x378   : > { %3597 = vmatpush3.bf16.xpose.msra.mxu0 %v2353_v24  ;;  %v2284_v24 = vld [vmem:[#allocation11 + $0x60] sm:$0xff] }
 0x379   : > { %v2341_v33 = vadd.f32 %v2325_v30, %v2293_v22  ;;  %v2317_v22 = vld [vmem:[#allocation13 + $0x68] sm:$0xff] }
 0x37b   : > { %v2354_v48 = vpack.c.bf16 %v2341_v33, %v2340_v32  ;;  %v2300_v33 = vmul.f32 %v5867_v1, %v2284_v24  ;;  %v4080_v24 = vld [vmem:[%s5039_s12 + $0xa0] ss:$16 sps:$4 sm:$0xff]  }
 0x37c   : > { %v2253_v57 = vpop.permute.xlu0 %2252 }
 0x37d   : > { %v2326_v5 = vmul.f32 %v2310_v47, %v2253_v57  ;;  %3598 = vmatprep.subr.bf16.mxu0 %v2354_v48  ;;  %v2301_v47 = vmul.f32 %v5870_v18, %v2285_v52  ;;  %v2286_v57 = vld [vmem:[#allocation11 + $0x70] sm:$0xff] }
 0x37e   : > { %v2255_v34 = vpop.permute.xlu1 %2254  ;;  %v4088_v52 = vld [vmem:[%s5039_s12 + $0xc4] ss:$16 sps:$4 sm:$0xff]  }
 0x37f   : > { %v2327_v43 = vmul.f32 %v2311_v38, %v2255_v34  ;;  %v2342_v8 = vadd.f32 %v2326_v5, %v2294_v42  ;;  %v2287_v38 = vld [vmem:[#allocation11 + $0x78] sm:$0xff] }
 0x380   : > { %3599 = vmatpush3.bf16.xpose.msra.mxu0 %v2354_v48  ;;  %v2319_v34 = vld [vmem:[#allocation13 + $0x78] sm:$0xff] }
 0x381   : > { %v2343_v61 = vadd.f32 %v2327_v43, %v2295_v3  ;;  %v2302_v43 = vmul.f32 %v5885_v20, %v2286_v57  ;;  %v4124_v57 = vld [vmem:[%s5039_s12 + $0x184] ss:$16 sps:$4 sm:$0xff]  }
 0x383   : > { %v2355_v7 = vpack.c.bf16 %v2343_v61, %v2342_v8  ;;  %v2303_v8 = vmul.f32 %v5888_v0, %v2287_v38  ;;  %v4122_v38 = vld [vmem:[%s5039_s12 + $0x180] ss:$16 sps:$4 sm:$0xff]  }
 0x384   : > { %v2257_v21 = vpop.permute.xlu0 %2256 }
 0x385   : > { %v2328_v35 = vmul.f32 %v2312_v19, %v2257_v21  ;;  %3600 = vmatprep.subr.bf16.mxu0 %v2355_v7 }
 0x386   : > { %v2259_v9 = vpop.permute.xlu1 %2258 }
 0x387   : > { %v2329_v29 = vmul.f32 %v2313_v26, %v2259_v9  ;;  %v2344_v46 = vadd.f32 %v2328_v35, %v2296_v6 }
 0x388   : > { %3601 = vmatpush3.bf16.xpose.msra.mxu0 %v2355_v7 }
 0x389   : > { %v2345_v37 = vadd.f32 %v2329_v29, %v2297_v31 }
 0x38b   : > { %v2356_v63 = vpack.c.bf16 %v2345_v37, %v2344_v46 }
 0x38c   : > { %v2261_v44 = vpop.permute.xlu0 %2260 }
 0x38d   : > { %v2330_v41 = vmul.f32 %v2314_v58, %v2261_v44  ;;  %3602 = vmatprep.subr.bf16.mxu0 %v2356_v63  ;;  %v4052_v44 = vld [vmem:[%s5039_s12 + $0x4] ss:$16 sps:$4 sm:$0xff]  }
 0x38e   : > { %v2263_v28 = vpop.permute.xlu1 %2262 }
 0x38f   : > { %v2331_v39 = vmul.f32 %v2315_v54, %v2263_v28  ;;  %v2346_v16 = vadd.f32 %v2330_v41, %v2298_v23  ;;  %v4055_v54 = vld [vmem:[%s5039_s12 + $0xc] ss:$16 sps:$4 sm:$0xff]   ;;  %v4058_v41 = vld [vmem:[%s5039_s12 + $0x24] ss:$16 sps:$4 sm:$0xff]   ;;  %v4056_v28 = vld [vmem:[%s5039_s12 + $0x20] ss:$16 sps:$4 sm:$0xff]  }
 0x390   : > { %3603 = vmatpush3.bf16.xpose.msra.mxu0 %v2356_v63  ;;  %3004 = vmatprep.subr.bf16.mxu1 %v4055_v54  ;;  %v4064_v23 = vld [vmem:[%s5039_s12 + $0x44] ss:$16 sps:$4 sm:$0xff]   ;;  %v4101_v54 = vld [vmem:[%s5039_s12 + $0x108] ss:$16 sps:$4 sm:$0xff]  }
 0x391   : > { %v2347_v49 = vadd.f32 %v2331_v39, %v2299_v14  ;;  %v4062_v14 = vld [vmem:[%s5039_s12 + $0x40] ss:$16 sps:$4 sm:$0xff]   ;;  %v4070_v39 = vld [vmem:[%s5039_s12 + $0x64] ss:$16 sps:$4 sm:$0xff]  }
 0x393   : > { %v2357_v51 = vpack.c.bf16 %v2347_v49, %v2346_v16  ;;  %v4068_v16 = vld [vmem:[%s5039_s12 + $0x60] ss:$16 sps:$4 sm:$0xff]   ;;  %v4076_v49 = vld [vmem:[%s5039_s12 + $0x84] ss:$16 sps:$4 sm:$0xff]  }
 0x394   : > { %v2265_v25 = vpop.permute.xlu0 %2264 }
 0x395   : > { %v2332_v30 = vmul.f32 %v2316_v55, %v2265_v25  ;;  %3604 = vmatprep.subr.bf16.mxu0 %v2357_v51  ;;  %v4074_v55 = vld [vmem:[%s5039_s12 + $0x80] ss:$16 sps:$4 sm:$0xff]  }
 0x396   : > { %v2267_v32 = vpop.permute.xlu1 %2266  ;;  %v4086_v25 = vld [vmem:[%s5039_s12 + $0xc0] ss:$16 sps:$4 sm:$0xff]  }
 0x397   : > { %v2333_v11 = vmul.f32 %v2317_v22, %v2267_v32  ;;  %v2348_v12 = vadd.f32 %v2332_v30, %v2300_v33  ;;  %v4094_v22 = vld [vmem:[%s5039_s12 + $0xe4] ss:$16 sps:$4 sm:$0xff]   ;;  %v4092_v30 = vld [vmem:[%s5039_s12 + $0xe0] ss:$16 sps:$4 sm:$0xff]  }
 0x398   : > { %3605 = vmatpush3.bf16.xpose.msra.mxu0 %v2357_v51  ;;  %v4082_v51 = vld [vmem:[%s5039_s12 + $0xa4] ss:$16 sps:$4 sm:$0xff]   ;;  %v4098_v33 = vld [vmem:[%s5039_s12 + $0x100] ss:$16 sps:$4 sm:$0xff]  }
 0x399   : > { %v2349_v48 = vadd.f32 %v2333_v11, %v2301_v47  ;;  %v4100_v32 = vld [vmem:[%s5039_s12 + $0x104] ss:$16 sps:$4 sm:$0xff]   ;;  %v4104_v11 = vld [vmem:[%s5039_s12 + $0x120] ss:$16 sps:$4 sm:$0xff]  }
 0x39a   : > { %v4106_v47 = vld [vmem:[%s5039_s12 + $0x124] ss:$16 sps:$4 sm:$0xff]  }
 0x39b   : > { %v2358_v62 = vpack.c.bf16 %v2349_v48, %v2348_v12  ;;  %v4112_v12 = vld [vmem:[%s5039_s12 + $0x144] ss:$16 sps:$4 sm:$0xff]   ;;  %v4110_v48 = vld [vmem:[%s5039_s12 + $0x140] ss:$16 sps:$4 sm:$0xff]  }
 0x39c   : > { %v2269_v5 = vpop.permute.xlu0 %2268 }
 0x39d   : > { %v2334_v42 = vmul.f32 %v2318_v50, %v2269_v5  ;;  %3606 = vmatprep.subr.bf16.mxu0 %v2358_v62  ;;  %v4118_v50 = vld [vmem:[%s5039_s12 + $0x164] ss:$16 sps:$4 sm:$0xff]  }
 0x39e   : > { %v2271_v3 = vpop.permute.xlu1 %2270  ;;  %v4130_v5 = vld [vmem:[%s5039_s12 + $0x1a4] ss:$16 sps:$4 sm:$0xff]  }
 0x39f   : > { %v2335_v1 = vmul.f32 %v2319_v34, %v2271_v3  ;;  %v2350_v18 = vadd.f32 %v2334_v42, %v2302_v43  ;;  %v4128_v34 = vld [vmem:[%s5039_s12 + $0x1a0] ss:$16 sps:$4 sm:$0xff]  }
 0x3a0   : > { %3607 = vmatpush3.bf16.xpose.msra.mxu0 %v2358_v62  ;;  %v4116_v62 = vld [vmem:[%s5039_s12 + $0x160] ss:$16 sps:$4 sm:$0xff]  }
 0x3a1   : > { %v2351_v61 = vadd.f32 %v2335_v1, %v2303_v8 }
 0x3a3   : > { %v2359_v19 = vpack.c.bf16 %v2351_v61, %v2350_v18 }
 0x3a5   : > { %3608 = vmatprep.subr.bf16.mxu0 %v2359_v19 }
 0x3a8   : > { %3609 = vmatpush3.bf16.xpose.msra.mxu0 %v2359_v19 }
 0x3a9   : > { %2961 = vmatprep.subr.bf16.mxu0 %v4052_v44  ;;  %v4103_v44 = vld [vmem:[%s5039_s12 + $0x10c] ss:$16 sps:$4 sm:$0xff]  }
 0x3af   : > { %3611 = vmatmul.mubr.bf16.vlgmr.msra.gmra.mrb[4].mxu0 %v1600_v40 }
 0x3b0   : > { %2962 = vmatpush1.bf16.msra.mxu0 %v4050_v17  ;;  %v4095_v17 = vld [vmem:[%s5039_s12 + $0xe8] ss:$16 sps:$4 sm:$0xff]  }
 0x3b1   : > { %2963 = vmatprep.subr.bf16.mxu0 %v4058_v41  ;;  %v4109_v41 = vld [vmem:[%s5039_s12 + $0x12c] ss:$16 sps:$4 sm:$0xff]  }
 0x3b4   : > { %2964 = vmatpush1.bf16.msra.mxu0 %v4056_v28  ;;  %v4107_v28 = vld [vmem:[%s5039_s12 + $0x128] ss:$16 sps:$4 sm:$0xff]  }
 0x3b5   : > { %2965 = vmatprep.subr.bf16.mxu0 %v4064_v23  ;;  %v4115_v23 = vld [vmem:[%s5039_s12 + $0x14c] ss:$16 sps:$4 sm:$0xff]  }
 0x3b8   : > { %2966 = vmatpush1.bf16.msra.mxu0 %v4062_v14  ;;  %v4113_v14 = vld [vmem:[%s5039_s12 + $0x148] ss:$16 sps:$4 sm:$0xff]  }
 0x3b9   : > { %2967 = vmatprep.subr.bf16.mxu0 %v4070_v39  ;;  %v4121_v39 = vld [vmem:[%s5039_s12 + $0x16c] ss:$16 sps:$4 sm:$0xff]  }
 0x3bc   : > { %2968 = vmatpush1.bf16.msra.mxu0 %v4068_v16  ;;  %v4119_v16 = vld [vmem:[%s5039_s12 + $0x168] ss:$16 sps:$4 sm:$0xff]  }
 0x3bd   : > { %2969 = vmatprep.subr.bf16.mxu0 %v4076_v49  ;;  %v4127_v49 = vld [vmem:[%s5039_s12 + $0x18c] ss:$16 sps:$4 sm:$0xff]  }
 0x3c0   : > { %2970 = vmatpush1.bf16.msra.mxu0 %v4074_v55  ;;  %v4125_v55 = vld [vmem:[%s5039_s12 + $0x188] ss:$16 sps:$4 sm:$0xff]  }
 0x3c1   : > { %2971 = vmatprep.subr.bf16.mxu0 %v4082_v51  ;;  %v4133_v51 = vld [vmem:[%s5039_s12 + $0x1ac] ss:$16 sps:$4 sm:$0xff]  }
 0x3c4   : > { %2972 = vmatpush1.bf16.msra.mxu0 %v4080_v24  ;;  %v4131_v24 = vld [vmem:[%s5039_s12 + $0x1a8] ss:$16 sps:$4 sm:$0xff]  }
 0x3c5   : > { %2973 = vmatprep.subr.bf16.mxu0 %v4088_v52  ;;  %v4136_v52 = vld [vmem:[%s5039_s12 + $0x1c4] ss:$16 sps:$4 sm:$0xff]  }
 0x3c8   : > { %2974 = vmatpush1.bf16.msra.mxu0 %v4086_v25  ;;  %v4139_v25 = vld [vmem:[%s5039_s12 + $0x1cc] ss:$16 sps:$4 sm:$0xff]  }
 0x3c9   : > { %2975 = vmatprep.subr.bf16.mxu0 %v4094_v22  ;;  %v4134_v22 = vld [vmem:[%s5039_s12 + $0x1c0] ss:$16 sps:$4 sm:$0xff]  }
 0x3cc   : > { %2976 = vmatpush1.bf16.msra.mxu0 %v4092_v30  ;;  %v4137_v30 = vld [vmem:[%s5039_s12 + $0x1c8] ss:$16 sps:$4 sm:$0xff]  }
 0x3cd   : > { %2977 = vmatprep.subr.bf16.mxu0 %v4100_v32  ;;  %v4142_v32 = vld [vmem:[%s5039_s12 + $0x1e4] ss:$16 sps:$4 sm:$0xff]  }
 0x3d0   : > { %2978 = vmatpush1.bf16.msra.mxu0 %v4098_v33  ;;  %v4145_v33 = vld [vmem:[%s5039_s12 + $0x1ec] ss:$16 sps:$4 sm:$0xff]  }
 0x3d1   : > { %2979 = vmatprep.subr.bf16.mxu0 %v4106_v47  ;;  %v4140_v47 = vld [vmem:[%s5039_s12 + $0x1e0] ss:$16 sps:$4 sm:$0xff]  }
 0x3d4   : > { %2980 = vmatpush1.bf16.msra.mxu0 %v4104_v11  ;;  %v4143_v11 = vld [vmem:[%s5039_s12 + $0x1e8] ss:$16 sps:$4 sm:$0xff]  }
 0x3d5   : > { %2981 = vmatprep.subr.bf16.mxu0 %v4112_v12  ;;  %v4553_v12 = vmov 1966171168  }
 0x3d8   : > { %2982 = vmatpush1.bf16.msra.mxu0 %v4110_v48  ;;  %v2497_v48 = vunpack.c.l.s4 %v4553_v12 }
 0x3d9   : > { %2983 = vmatprep.subr.bf16.mxu0 %v4118_v50 }
 0x3da   : > { %v2498_v50 = vunpack.c.0.s8 %v2497_v48 }
 0x3dc   : > { %2984 = vmatpush1.bf16.msra.mxu0 %v4116_v62  ;;  %v2501_v62 = vsub.s32 %v2498_v50, %v5768_v2 }
 0x3dd   : > { %2985 = vmatprep.subr.bf16.mxu0 %v4124_v57 }
 0x3e0   : > { %2986 = vmatpush1.bf16.msra.mxu0 %v4122_v38 }
 0x3e1   : > { %2987 = vmatprep.subr.bf16.mxu0 %v4130_v5 }
 0x3e4   : > { %2988 = vmatpush1.bf16.msra.mxu0 %v4128_v34 }
 0x3e5   : > { %2989 = vmatprep.subr.bf16.mxu0 %v4136_v52  ;;  %v6317_v52 = vld [vmem:[#allocation63_spill] sm:$0xff] }
 0x3e8   : > { %2990 = vmatpush1.bf16.msra.mxu0 %v4134_v22  ;;  %v6319_v22 = vld [vmem:[#allocation62_spill] sm:$0xff] }
 0x3e9   : > { %2991 = vmatprep.subr.bf16.mxu0 %v4142_v32 }
 0x3ec   : > { %2992 = vmatpush1.bf16.msra.mxu0 %v4140_v47 }
 0x482   : > { %v3612_v7 = vpop.f32.mrb[4].mxu0 }
 0x483   : > { %v2394_v27 = vpop.f32.mrb[5].mxu0 }
 0x484   : > { %2409 = vmax.xlane.f32.xlu0 %v2394_v27  ;;  %v3613_v4 = vpop.f32.mrb[6].mxu0 }
 0x485   : > { %v2397_v21 = vpop.f32.mrb[7].mxu0 }
 0x486   : > { %2411 = vmax.xlane.f32.xlu1 %v2397_v21 }
 0x488   : > { %2413 = vmax.xlane.f32.xlu0 %v3612_v7 }
 0x48c   : > { %2415 = vmax.xlane.f32.xlu0 %v3613_v4 }
 0x511   : > { %v2410_v20 = vpop.xlane.xlu0 %2409 }
 0x512   : > { %v2417_v0 = vsub.f32 %v2394_v27, %v2410_v20 }
 0x513   : > { %v2412_v26 = vpop.xlane.xlu1 %2411 }
 0x514   : > { %v2421_v35 = vmul.f32 1.442695, %v2417_v0  ;;  %v2418_v9 = vsub.f32 %v2397_v21, %v2412_v26  ;;  %v4053_v0 = vld [vmem:[%s5039_s12 + $0x8] ss:$16 sps:$4 sm:$0xff]  }
 0x515   : > { %v2414_v6 = vpop.xlane.xlu0 %2413 }
 0x516   : > { %4182 = vpow2.f32 %v2421_v35  ;;  %v2423_v31 = vmul.f32 1.442695, %v2418_v9  ;;  %v2419_v29 = vsub.f32 %v3612_v7, %v2414_v6  ;;  %v4061_v35 = vld [vmem:[%s5039_s12 + $0x2c] ss:$16 sps:$4 sm:$0xff]   ;;  %v4059_v9 = vld [vmem:[%s5039_s12 + $0x28] ss:$16 sps:$4 sm:$0xff]  }
 0x517   : > { %v4067_v6 = vld [vmem:[%s5039_s12 + $0x4c] ss:$16 sps:$4 sm:$0xff]  }
 0x518   : > { %4184 = vpow2.f32 %v2423_v31  ;;  %v2425_v56 = vmul.f32 1.442695, %v2419_v29  ;;  %v4065_v31 = vld [vmem:[%s5039_s12 + $0x48] ss:$16 sps:$4 sm:$0xff]   ;;  %v4073_v29 = vld [vmem:[%s5039_s12 + $0x6c] ss:$16 sps:$4 sm:$0xff]  }
 0x519   : > { %v2416_v10 = vpop.xlane.xlu0 %2415 }
 0x51a   : > { %4186 = vpow2.f32 %v2425_v56  ;;  %v2420_v40 = vsub.f32 %v3613_v4, %v2416_v10  ;;  %v4071_v56 = vld [vmem:[%s5039_s12 + $0x68] ss:$16 sps:$4 sm:$0xff]   ;;  %v4079_v10 = vld [vmem:[%s5039_s12 + $0x8c] ss:$16 sps:$4 sm:$0xff]  }
 0x51c   : > { %v2427_v46 = vmul.f32 1.442695, %v2420_v40  ;;  %v4077_v40 = vld [vmem:[%s5039_s12 + $0x88] ss:$16 sps:$4 sm:$0xff]  }
 0x51e   : > { %4188 = vpow2.f32 %v2427_v46  ;;  %v4085_v46 = vld [vmem:[%s5039_s12 + $0xac] ss:$16 sps:$4 sm:$0xff]  }
 0x520   : > { %v5915_v37 = vpop.eup %4182 }
 0x521   : > { %2429 = vadd.xlane.f32.xlu0 %v5915_v37 }
 0x522   : > { %v5918_v58 = vpop.eup %4184 }
 0x523   : > { %2431 = vadd.xlane.f32.xlu1 %v5918_v58 }
 0x524   : > { %v5921_v63 = vpop.eup %4186 }
 0x525   : > { %2433 = vadd.xlane.f32.xlu0 %v5921_v63 }
 0x528   : > { %v5924_v45 = vpop.eup %4188 }
 0x529   : > { %2435 = vadd.xlane.f32.xlu1 %v5924_v45 }
 0x5ae   : > { %v2430_v42 = vpop.xlane.xlu0 %2429 }
 0x5af   : > { %4190 = vrcp.f32 %v2430_v42 }
 0x5b0   : > { %v2432_v3 = vpop.xlane.xlu1 %2431 }
 0x5b1   : > { %4192 = vrcp.f32 %v2432_v3 }
 0x5b2   : > { %v2434_v43 = vpop.xlane.xlu0 %2433 }
 0x5b3   : > { %4194 = vrcp.f32 %v2434_v43 }
 0x5b6   : > { %v2436_v8 = vpop.xlane.xlu1 %2435 }
 0x5b7   : > { %4196 = vrcp.f32 %v2436_v8 }
 0x5b9   : > { %v4191_v1 = vpop.eup %4190 }
 0x5ba   : > { %v2441_v61 = vmul.f32 %v4191_v1, %v5915_v37  ;;  %v4083_v37 = vld [vmem:[%s5039_s12 + $0xa8] ss:$16 sps:$4 sm:$0xff]  }
 0x5bb   : > { %v4193_v18 = vpop.eup %4192 }
 0x5bc   : > { %v2442_v19 = vmul.f32 %v4193_v18, %v5918_v58  ;;  %v4091_v58 = vld [vmem:[%s5039_s12 + $0xcc] ss:$16 sps:$4 sm:$0xff]  }
 0x5bd   : > { %v4195_v27 = vpop.eup %4194 }
 0x5be   : > { %v2445_v7 = vpack.c.bf16 %v2442_v19, %v2441_v61  ;;  %v2443_v21 = vmul.f32 %v4195_v27, %v5921_v63  ;;  %v4089_v63 = vld [vmem:[%s5039_s12 + $0xc8] ss:$16 sps:$4 sm:$0xff]  }
 0x5c0   : > { %3630 = vmatprep.mubr.bf16.mxu1 %v2445_v7 }
 0x5c1   : > { %v4197_v4 = vpop.eup %4196 }
 0x5c2   : > { %v2444_v20 = vmul.f32 %v4197_v4, %v5924_v45  ;;  %v4097_v45 = vld [vmem:[%s5039_s12 + $0xec] ss:$16 sps:$4 sm:$0xff]   ;;  %v2602_v4 = vld [vmem:[%s629_s10] sm:$0xf]  ;;  %s3562_s12 = sshll.u32 %s6304_s3, 4 }
 0x5c3   : > { %s3096_s1 = sadd.s32 %s3562_s12, %s3561_s13 }
 0x5c4   : > { %v2446_v26 = vpack.c.bf16 %v2444_v20, %v2443_v21  ;;  %v2603_v21 = vunpack.c.l.bf16 %v2602_v4  ;;  %v2615_v20 = vsub.s32 4, %v5768_v2  ;;  %s3563_s3 = sshll.u32 %s3096_s1, 6 }
 0x5c5   : > { %s6024_s19 = scalar_lea.hbm %s6321_s8, %s3563_s3 }
 0x5c6   : > { %3631 = vmatmul.mubr.bf16.vlgmr.msra.gmra.mrb[32].mxu1 %v2446_v26  ;;  %v2608_v26 = vrot.slane %v2603_v21, %v5771_v59 }
 0x5c7   : > { %3005 = vmatpush1.bf16.msra.mxu1 %v4053_v0  ;;  %v2619_v0 = vsub.s32 6, %v5768_v2 }
 0x5c8   : > { %3006 = vmatprep.subr.bf16.mxu1 %v4061_v35  ;;  %v2616_v35 = vrot.slane %v2603_v21, %v2615_v20 }
 0x5cb   : > { %3007 = vmatpush1.bf16.msra.mxu1 %v4059_v9  ;;  %v2612_v9 = vrot.slane %v2603_v21, %v5774_v15 }
 0x5cc   : > { %3008 = vmatprep.subr.bf16.mxu1 %v4067_v6  ;;  %v2620_v6 = vrot.slane %v2603_v21, %v2619_v0 }
 0x5cf   : > { %3009 = vmatpush1.bf16.msra.mxu1 %v4065_v31  ;;  %v2628_v31 = vrot.slane %v2608_v26, %v5771_v59 }
 0x5d0   : > { %3010 = vmatprep.subr.bf16.mxu1 %v4073_v29  ;;  %v2636_v29 = vrot.slane %v2616_v35, %v5771_v59 }
 0x5d3   : > { %3011 = vmatpush1.bf16.msra.mxu1 %v4071_v56  ;;  %v2632_v56 = vrot.slane %v2612_v9, %v5771_v59 }
 0x5d4   : > { %3012 = vmatprep.subr.bf16.mxu1 %v4079_v10  ;;  %v2640_v10 = vrot.slane %v2620_v6, %v5771_v59 }
 0x5d7   : > { %3013 = vmatpush1.bf16.msra.mxu1 %v4077_v40 }
 0x5d8   : > { %3014 = vmatprep.subr.bf16.mxu1 %v4085_v46 }
 0x5db   : > { %3015 = vmatpush1.bf16.msra.mxu1 %v4083_v37 }
 0x5dc   : > { %3016 = vmatprep.subr.bf16.mxu1 %v4091_v58 }
 0x5df   : > { %3017 = vmatpush1.bf16.msra.mxu1 %v4089_v63 }
 0x5e0   : > { %3018 = vmatprep.subr.bf16.mxu1 %v4097_v45 }
 0x5e3   : > { %3019 = vmatpush1.bf16.msra.mxu1 %v4095_v17 }
 0x5e4   : > { %3020 = vmatprep.subr.bf16.mxu1 %v4103_v44 }
 0x5e7   : > { %3021 = vmatpush1.bf16.msra.mxu1 %v4101_v54 }
 0x5e8   : > { %3022 = vmatprep.subr.bf16.mxu1 %v4109_v41 }
 0x5eb   : > { %3023 = vmatpush1.bf16.msra.mxu1 %v4107_v28 }
 0x5ec   : > { %3024 = vmatprep.subr.bf16.mxu1 %v4115_v23 }
 0x5ef   : > { %3025 = vmatpush1.bf16.msra.mxu1 %v4113_v14 }
 0x5f0   : > { %3026 = vmatprep.subr.bf16.mxu1 %v4121_v39 }
 0x5f3   : > { %3027 = vmatpush1.bf16.msra.mxu1 %v4119_v16 }
 0x5f4   : > { %3028 = vmatprep.subr.bf16.mxu1 %v4127_v49 }
 0x5f7   : > { %3029 = vmatpush1.bf16.msra.mxu1 %v4125_v55 }
 0x5f8   : > { %3030 = vmatprep.subr.bf16.mxu1 %v4133_v51  ;;  %v6316_v51 = vld [vmem:[#allocation61_spill] sm:$0xff] }
 0x5fb   : > { %3031 = vmatpush1.bf16.msra.mxu1 %v4131_v24 }
 0x5fc   : > { %3032 = vmatprep.subr.bf16.mxu1 %v4139_v25 }
 0x5ff   : > { %3033 = vmatpush1.bf16.msra.mxu1 %v4137_v30 }
 0x600   : > { %3034 = vmatprep.subr.bf16.mxu1 %v4145_v33 }
 0x603   : > { %3035 = vmatpush1.bf16.msra.mxu1 %v4143_v11 }
 0x699   : > { %v3632_v57 = vpop.f32.mrb[32].mxu1 }
 0x69a   : > { %v2481_v38 = vpop.f32.mrb[33].mxu1  ;;  %v2516_v34 = vrot.slane %v3632_v57, %v2501_v62 }
 0x69b   : > { %v3633_v5 = vpop.f32.mrb[34].mxu1  ;;  %v2502_v43 = vrot.slane %v2481_v38, %v2501_v62 }
 0x69c   : > { %v2523_v42 = vrot.slane %v3633_v5, %v2501_v62  ;;  %v2484_v3 = vpop.f32.mrb[35].mxu1 }
 0x69d   : > { %v2509_v8 = vrot.slane %v2484_v3, %v2501_v62 }
 0x69e   : > { %v2530_v1 = vcombine.low %v2516_v34, %v2523_v42  ;;  %v2531_v18 = vcombine.high %v2516_v34, %v2523_v42 }
 0x69f   : > { %v2528_v61 = vcombine.low %v2502_v43, %v2509_v8  ;;  %v2529_v19 = vcombine.high %v2502_v43, %v2509_v8 }
 0x6a1   : > { %v2536_v7 = vpack.c.bf16 %v2530_v1, %v2528_v61  ;;  %v2537_v27 = vpack.c.bf16 %v2531_v18, %v2529_v19 }
 0x6a3   : > { %2993 = vmatprep.mubr.bf16.mxu0 %v2537_v27  ;;  %3036 = vmatprep.mubr.bf16.mxu1 %v2537_v27 }
 0x6a4   : > { %2994 = vmatmul.mubr.bf16.vlgmr.msra.gmra.mrb[8].mxu0 %v2536_v7  ;;  %3037 = vmatmul.mubr.bf16.vlgmr.msra.gmra.mrb[36].mxu1 %v2536_v7 }
 0x777   : > { %v2995_v40 = vpop.f32.mrb[8].mxu0  ;;  %v3038_v46 = vpop.f32.mrb[36].mxu1 }
 0x778   : > { %v2996_v2 = vadd.f32 %v2995_v40, %v2628_v31  ;;  %v3039_v37 = vadd.f32 %v3038_v46, %v2636_v29  ;;  %v2997_v58 = vpop.f32.mrb[9].mxu0  ;;  %v3040_v63 = vpop.f32.mrb[37].mxu1 }
 0x779   : > { %v2998_v45 = vadd.f32 %v2997_v58, %v2632_v56  ;;  %v3041_v15 = vadd.f32 %v3040_v63, %v2640_v10  ;;  %v2999_v17 = vpop.f32.mrb[10].mxu0  ;;  %v3042_v44 = vpop.f32.mrb[38].mxu1 }
 0x77a   : > { %v3047_v54 = vadd.f32 %v2996_v2, %v5369_v13  ;;  %v3049_v41 = vadd.f32 %v3039_v37, %v5377_v53  ;;  %v3000_v59 = vadd.f32 %v2999_v17, %v2628_v31  ;;  %v3043_v28 = vadd.f32 %v3042_v44, %v2636_v29  ;;  %v3001_v23 = vpop.f32.mrb[11].mxu0  ;;  %v3044_v14 = vpop.f32.mrb[39].mxu1 }
 0x77b   : > { %v3048_v39 = vadd.f32 %v2998_v45, %v5373_v36  ;;  %v3050_v16 = vadd.f32 %v3041_v15, %v5379_v60  ;;  %v3002_v49 = vadd.f32 %v3001_v23, %v2632_v56  ;;  %v3045_v55 = vadd.f32 %v3044_v14, %v2640_v10  ;;  %v6320_v36 = vld [vmem:[#allocation64_spill] sm:$0xff] }
 0x77c   : > { %v3051_v24 = vadd.f32 %v3000_v59, %v6316_v51  ;;  %v3053_v25 = vadd.f32 %v3043_v28, %v6317_v52 }
 0x77d   : > { %v3570_v13 = vpack.c.bf16 %v3048_v39, %v3047_v54  ;;  %v3571_v53 = vpack.c.bf16 %v3050_v16, %v3049_v41  ;;  %v3052_v30 = vadd.f32 %v3002_v49, %v6319_v22  ;;  %v3054_v32 = vadd.f32 %v3045_v55, %v6320_v36 }
 0x77f   : > { %3079 = vst [vmem:[%s617_s20] sm:$0xff] %v3570_v13  ;;  %3080 = vst [vmem:[%s617_s20 + $0x8] sm:$0xff] %v3571_v53  ;;  %v3572_v60 = vpack.c.bf16 %v3052_v30, %v3051_v24  ;;  %v3573_v33 = vpack.c.bf16 %v3054_v32, %v3053_v25 }
 0x781   : > { %3081 = vst [vmem:[%s617_s20 + $0x10] sm:$0xff] %v3572_v60  ;;  %3082 = vst [vmem:[%s617_s20 + $0x18] sm:$0xff] %v3573_v33 }
 0x782   : > { %4417 = shalt.err (!%p4414_p13)
}
 0x783   : > { %s4418_s5 = scalar_lea.hbm %s6024_s19, 512  ;;  %s4422_s10 = scalar_lea.hbm %s6321_s8, 2048 }
 0x784   : > { %p4419_p8 = scmp.ne.s32.totalorder %s6024_s19, %s4418_s5  ;;  %p4423_p3 = scmp.lt.u32.totalorder %s6024_s19, %s6321_s8 }
 0x785   : > { %p4424_p4 = scmp.lt.u32.totalorder %s4422_s10, %s4418_s5  ;;  %p4426_p11 = scmp.lt.u32.totalorder %s4418_s5, %s6024_s19 }
 0x786   : > { %p4420_p0 = pnand %p4419_p8, %p6322_p1 }
 0x787   : > { %p4425_p6 = por %p4424_p4, %p4423_p3 }
 0x788   : > { %p4421_p10 = pneg %p4420_p0 }
 0x789   : > { %p4427_p7 = por %p4426_p11, %p4425_p6 }
 0x78b   : > { %p4428_p9 = pnand %p4427_p7, %p4421_p10 }
 0x78d   : > { %4431 = shalt.err (!%p4428_p9)
}
 0x78e   : > { %s4555_s12 = smov 256   ;;  %s4556_s1 = smov 16  }
 0x78f   : > { %3724 = dma.vmem_to_hbm [thread:$0]  (%p6322_p1), %s6017_s11, 512, %s6024_s19, %s3084_s25, %s4555_s12, %s4555_s12, %s4556_s1  }
 0x790 PF: > { %s6323_s20 = sld [smem:[#allocation21_spill]]  ;;  %s6324_s3 = sld [smem:[#allocation29_spill]] }
 0x791   : > { %p3758_p12 = scmp.ge.s32.totalorder %s4538_s23, 2 }
 0x796   : > { %s3114_s16 = sand.u32 1, %s6323_s20   ;;  %p6325_p5 = scmp.ne.s32.totalorder %s6324_s3, 0 }
 0x797   : > { %s3115_s7 = scalar_lea.sflag [#allocation4], %s3114_s16 }
 0x798   : > { %p3750_p2 = pnand %p3758_p12, %p6325_p5 }
 0x79a   : > { %4493 = dma.done.wait (!%p3750_p2), %s3115_s7, 512  }
 0x79b   : > { %4495 = vsyncadd (!%p3750_p2), %s3115_s7, 4294966784  ;;  %s33_s23 = sadd.s32 1, %s4538_s23   ;;  %s6326_s13 = sld [smem:[#allocation20_spill]] }
 0x79c   : > { %p30_p13 = scmp.ge.s32.totalorder %s33_s23, 6   ;;  %s6327_s16 = sld [smem:[#allocation22_spill]] }
 0x79d   : > { %s6328_s21 = smov %s4891_s17  ;;  %s6329_s19 = sld [smem:[#allocation25_spill]] }
 0x79e   : > { %s6330_s11 = sld [smem:[#allocation33_spill]]  ;;  %s6331_s9 = sld [smem:[#allocation35_spill]] }
 0x79f   : > { %s6332_s14 = smov %s4506_s15  ;;  %s6333_s15 = smov %s4888_s24 }
 0x7a0   : > { %s6334_s17 = smov %s4518_s18  ;;  %s6335_s18 = smov %s6328_s21 }
 0x7a1   : > { %s6336_s20 = smov %s4534_s22  ;;  %32 = sbr.rel (!%p30_p13) target bundleno = 24 (0x18), region = 170 }
 0x7a4   : > { %s6337_s21 = smov %s6330_s11  ;;  %s6338_s22 = smov %s6331_s9 }
 0x7a8   :  { %3120 = vsyncpa [#allocation3], 1 }
 0x7a9   :  { %3122 = vsyncpa [#allocation3 + $0x1], 1 }
 0x7aa   :  { %3123 = vsyncpa [#allocation6], 1 }
 0x7ab   :  { %3125 = vsyncpa [#allocation6 + $0x1], 1 }
 0x7ac   :  { %3126 = vsyncpa [#allocation9], 1 }
 0x7ad   :  { %3128 = vsyncpa [#allocation9 + $0x1], 1 }
 0x7ae   :  { %3129 = vsyncpa [#allocation12], 1 }
 0x7af   :  { %3130 = vsyncpa [#allocation4], 1 }
 0x7b0   :  { %3132 = vsyncpa [#allocation4 + $0x1], 1 }

</bundles_post_ra>
